<compile_context>
chip_gen: v7x
topology: tpu7x:2x2x1
jax: 0.10.0
libtpu: 0.0.40
codegen_flags: <defaults>
</compile_context>

<pallas_src>
import numpy as np

import jax
import jax.numpy as jnp
from jax.experimental import pallas as pl
from jax.experimental.pallas import tpu as pltpu


def _round_up(x, m):
    return (x + m - 1) // m * m


# ----------------------------- Pallas kernel -------------------------------

def _make_encoder_kernel(M1, M1p, M2, M2p, KK, C1p, C2p, eps):
    inv_m1 = 1.0 / M1
    inv_m2 = 1.0 / M2

    def kernel(p1_ref, w1_ref, w2_ref, idx_ref, o_ref):
        # ---------------- conv1: one lane-dense GEMM (bf16 -> f32 acc) -------
        y1 = jnp.dot(p1_ref[...], w1_ref[...],
                     preferred_element_type=jnp.float32)           # (M1p, C1p)

        # BatchNorm2d (training batch stats, gamma=1, beta=0) + ReLU, in f32.
        # Rows >= M1 are zero patches -> y1 == 0 there, so the plain sum is
        # already the sum over the M1 real rows; variance uses an explicit row
        # mask, and the mask also forces pad rows of h1 to exactly zero (they
        # double as conv2's spatial zero-padding source).
        mask1 = jnp.where(
            jax.lax.broadcasted_iota(jnp.int32, (M1p, C1p), 0) < M1, 1.0, 0.0)
        mean1 = jnp.sum(y1, axis=0, keepdims=True) * inv_m1
        cent1 = y1 - mean1
        var1 = jnp.sum(cent1 * cent1 * mask1, axis=0, keepdims=True) * inv_m1
        h1 = jnp.maximum(cent1 * jax.lax.rsqrt(var1 + eps), 0.0) * mask1
        h1_bf = h1.astype(jnp.bfloat16)                            # (M1p, C1p)

        # ---------------- conv2: implicit GEMM over KK taps ------------------
        # For tap t, the shifted load of h1 is a one-hot gather matmul
        # sel_t @ h1 (sel_t built from iota/compare against static indices),
        # accumulated into an f32 accumulator with the tap's weight slab.
        row_iota = jax.lax.broadcasted_iota(jnp.int32, (M2p, M1p), 1)
        acc2 = jnp.zeros((M2p, C2p), jnp.float32)
        for t in range(KK):
            idx_t = idx_ref[t * M2p:(t + 1) * M2p, :]              # (M2p, 1) i32
            sel_t = jnp.where(row_iota == idx_t, 1.0, 0.0).astype(jnp.bfloat16)
            g_t = jnp.dot(sel_t, h1_bf,
                          preferred_element_type=jnp.float32)      # (M2p, C1p)
            w2_t = w2_ref[t * C1p:(t + 1) * C1p, :]                # (C1p, C2p)
            acc2 = acc2 + jnp.dot(g_t.astype(jnp.bfloat16), w2_t,
                                  preferred_element_type=jnp.float32)

        # ---------------- BN2 (training stats) + ReLU, f32 -------------------
        mask2 = jnp.where(
            jax.lax.broadcasted_iota(jnp.int32, (M2p, C2p), 0) < M2, 1.0, 0.0)
        mean2 = jnp.sum(acc2, axis=0, keepdims=True) * inv_m2
        cent2 = acc2 - mean2
        var2 = jnp.sum(cent2 * cent2 * mask2, axis=0, keepdims=True) * inv_m2
        o_ref[...] = jnp.maximum(cent2 * jax.lax.rsqrt(var2 + eps), 0.0)

    return kernel


# ------------------------------ JAX glue ------------------------------------

def _im2col(x_nhwc, kh, kw, stride, pad):
    """Conv patches (wrapper-side layout glue). Rows ordered (n, ho, wo),
    columns ordered (kh, kw, cin)."""
    N, H, W, C = x_nhwc.shape
    xp = jnp.pad(x_nhwc, ((0, 0), (pad, pad), (pad, pad), (0, 0)))
    Ho = (H + 2 * pad - kh) // stride + 1
    Wo = (W + 2 * pad - kw) // stride + 1
    cols = []
    for i in range(kh):
        for j in range(kw):
            patch = jax.lax.slice(
                xp,
                (0, i, j, 0),
                (N, i + (Ho - 1) * stride + 1, j + (Wo - 1) * stride + 1, C),
                (1, stride, stride, 1),
            )  # (N, Ho, Wo, C)
            cols.append(patch)
    patches = jnp.stack(cols, axis=3)                 # (N, Ho, Wo, kh*kw, C)
    return patches.reshape(N * Ho * Wo, kh * kw * C), Ho, Wo


def _conv2_gather_indices(N, Ho1, Wo1, Ho2, Wo2, k, stride, pad, M2p, zero_row):
    """Static h1-row index for every (tap, conv2-output-pixel). Out-of-bounds
    taps and pad rows point at `zero_row` (an h1 row forced to zero)."""
    KK = k * k
    idx = np.full((KK * M2p, 1), zero_row, dtype=np.int32)
    for t in range(KK):
        i, j = divmod(t, k)
        for m in range(N * Ho2 * Wo2):
            n, rem = divmod(m, Ho2 * Wo2)
            y2, x2 = divmod(rem, Wo2)
            h = stride * y2 + i - pad
            w = stride * x2 + j - pad
            if 0 <= h < Ho1 and 0 <= w < Wo1:
                idx[t * M2p + m, 0] = n * Ho1 * Wo1 + h * Wo1 + w
    return idx


def init_encoder_params(key, in_ch, filters, kernel_size, expansions):
    """Deterministic synthetic init mirroring Encoder._initialize_weights."""
    k1, k2 = jax.random.split(key)
    c1_out = filters
    c2_out = filters * expansions[0]

    def kaiming_normal_fan_out(k, shape):
        # shape = (C_out, C_in, kh, kw); fan_out = C_out*kh*kw; gain=sqrt(2)
        fan_out = shape[0] * shape[2] * shape[3]
        std = (2.0 / fan_out) ** 0.5
        return std * jax.random.normal(k, shape, dtype=jnp.float32)

    return {
        "w1": kaiming_normal_fan_out(k1, (c1_out, in_ch, kernel_size, kernel_size)),
        "w2": kaiming_normal_fan_out(k2, (c2_out, c1_out, kernel_size, kernel_size)),
        # Conv biases are init'd to 0 in the module and are cancelled exactly
        # by the BatchNorm mean subtraction -> not used by the kernel.
        "b1": jnp.zeros((c1_out,), jnp.float32),
        "b2": jnp.zeros((c2_out,), jnp.float32),
        # BatchNorm: weight=1, bias=0 (identity affine, folded into the kernel).
    }


@jax.jit
def encoder_forward(params, x_nchw):
    """Forward pass of Encoder. Input/output NCHW, matching PyTorch."""
    w1, w2 = params["w1"], params["w2"]
    C1, C_in, k, _ = w1.shape
    C2 = w2.shape[0]
    N = x_nchw.shape[0]
    stride, pad, eps = 2, 1, 1e-5
    KK = k * k

    x = jnp.transpose(x_nchw, (0, 2, 3, 1))           # NCHW -> NHWC
    patches1, Ho1, Wo1 = _im2col(x, k, k, stride, pad)
    Ho2 = (Ho1 + 2 * pad - k) // stride + 1
    Wo2 = (Wo1 + 2 * pad - k) // stride + 1

    M1, K1 = patches1.shape                           # (N*Ho1*Wo1, k*k*C_in)
    M2 = N * Ho2 * Wo2
    M1p = _round_up(M1, 128)                          # also K of the gather GEMMs
    K1p = _round_up(K1, 128)
    C1p = _round_up(C1, 128)
    C2p = _round_up(C2, 128)
    M2p = _round_up(M2, 8)

    # bf16 MXU operands, zero-padded to lane-dense tiles (f32 accumulation in-kernel).
    p1 = jnp.pad(patches1, ((0, M1p - M1), (0, K1p - K1))).astype(jnp.bfloat16)
    w1_mat = jnp.transpose(w1, (2, 3, 1, 0)).reshape(K1, C1)
    w1_mat = jnp.pad(w1_mat, ((0, K1p - K1), (0, C1p - C1))).astype(jnp.bfloat16)
    w2_mat = jnp.transpose(w2, (2, 3, 1, 0)).reshape(KK, C1, C2)
    w2_mat = jnp.pad(w2_mat, ((0, 0), (0, C1p - C1), (0, C2p - C2)))
    w2_mat = w2_mat.reshape(KK * C1p, C2p).astype(jnp.bfloat16)
    idx2 = jnp.asarray(_conv2_gather_indices(
        N, Ho1, Wo1, Ho2, Wo2, k, stride, pad, M2p, zero_row=M1))

    kernel = _make_encoder_kernel(M1, M1p, M2, M2p, KK, C1p, C2p, eps)

    flops = 2 * (M1p * K1p * C1p + KK * (M2p * M1p * C1p + M2p * C1p * C2p))
    bytes_accessed = ((p1.size + w1_mat.size + w2_mat.size) * 2
                      + idx2.size * 4 + M2p * C2p * 4)

    out = pl.pallas_call(
        kernel,
        out_shape=jax.ShapeDtypeStruct((M2p, C2p), jnp.float32),
        in_specs=[pl.BlockSpec(memory_space=pltpu.VMEM)] * 4,
        out_specs=pl.BlockSpec(memory_space=pltpu.VMEM),
        compiler_params=pltpu.CompilerParams(vmem_limit_bytes=32 * 1024 * 1024),
        cost_estimate=pl.CostEstimate(flops=int(flops),
                                      transcendentals=int(C1p + C2p),
                                      bytes_accessed=int(bytes_accessed)),
    )(p1, w1_mat, w2_mat, idx2)

    out = out[:M2, :C2].reshape(N, Ho2, Wo2, C2)
    return jnp.transpose(out, (0, 3, 1, 2))           # NHWC -> NCHW


# ------------------------------- main ---------------------------------------

if __name__ == "__main__":
    key = jax.random.PRNGKey(0)
    k_x, k_p = jax.random.split(key)

    # Small shapes consistent with the module: in_shape=(4,16,16), filters=8, expansions=[2]
    N, C_in, H, W = 2, 4, 16, 16
    filters, kernel_size, expansions = 8, 5, [2]

    x = jax.random.normal(k_x, (N, C_in, H, W), dtype=jnp.float32)
    params = init_encoder_params(k_p, C_in, filters, kernel_size, expansions)

    out = encoder_forward(params, x)
    out = jax.block_until_ready(out)

    # Expected: conv1 -> (2, 8, 7, 7); conv2 -> (2, 16, 3, 3)
    assert out.shape == (N, filters * expansions[0], 3, 3), out.shape
    assert out.dtype == jnp.float32
    # ReLU output must be non-negative
    assert bool(jnp.all(out >= 0.0))

    print("KERNEL_OK")
</pallas_src>

<mosaic_0001>
module attributes {stable_mosaic.version = 11 : i64} {
  func.func @kernel(%arg0: memref<128x128xbf16, #tpu.memory_space<vmem>>, %arg1: memref<128x128xbf16, #tpu.memory_space<vmem>>, %arg2: memref<3200x128xbf16, #tpu.memory_space<vmem>>, %arg3: memref<600x1xi32, #tpu.memory_space<vmem>>, %arg4: memref<24x128xf32, #tpu.memory_space<vmem>>) attributes {dimension_semantics = [], scalar_prefetch = 0 : i64, scratch_operands = 0 : i64, tpu.core_type = #tpu.core_type<tc>} {
    %c0 = arith.constant 0 : index
    %c0_0 = arith.constant 0 : index
    %0 = vector.load %arg0[%c0, %c0_0] : memref<128x128xbf16, #tpu.memory_space<vmem>>, vector<128x128xbf16>
    %c0_1 = arith.constant 0 : index
    %c0_2 = arith.constant 0 : index
    %1 = vector.load %arg1[%c0_1, %c0_2] : memref<128x128xbf16, #tpu.memory_space<vmem>>, vector<128x128xbf16>
    %cst = arith.constant dense<0.000000e+00> : vector<128x128xf32>
    %2 = tpu.matmul %0, %1, %cst {dimension_numbers = #tpu.dot_dimension_numbers<[1], [0], [0], [1], [0, 0, 1, 1], [], []>} : vector<128x128xbf16>, vector<128x128xbf16>, vector<128x128xf32> -> vector<128x128xf32>
    %3 = tpu.iota {dimensions = array<i32: 0>} : vector<128x128xi32>
    %c98_i32 = arith.constant 98 : i32
    %4 = vector.broadcast %c98_i32 : i32 to vector<128x128xi32>
    %5 = arith.cmpi slt, %3, %4 : vector<128x128xi32>
    %cst_3 = arith.constant 1.000000e+00 : f32
    %cst_4 = arith.constant 0.000000e+00 : f32
    %6 = vector.broadcast %cst_3 : f32 to vector<128x128xf32>
    %7 = vector.broadcast %cst_4 : f32 to vector<128x128xf32>
    %8 = arith.select %5, %6, %7 : vector<128x128xi1>, vector<128x128xf32>
    %cst_5 = arith.constant dense<0.000000e+00> : vector<128xf32>
    %9 = vector.multi_reduction <add>, %2, %cst_5 [0] : vector<128x128xf32> to vector<128xf32>
    %10 = vector.shape_cast %9 : vector<128xf32> to vector<1x128xf32>
    %cst_6 = arith.constant 0.0102040814 : f32
    %11 = vector.broadcast %cst_6 : f32 to vector<1x128xf32>
    %12 = arith.mulf %10, %11 : vector<1x128xf32>
    %13 = vector.broadcast %12 : vector<1x128xf32> to vector<128x128xf32>
    %14 = arith.subf %2, %13 : vector<128x128xf32>
    %15 = arith.mulf %14, %14 : vector<128x128xf32>
    %16 = arith.mulf %15, %8 : vector<128x128xf32>
    %cst_7 = arith.constant dense<0.000000e+00> : vector<128xf32>
    %17 = vector.multi_reduction <add>, %16, %cst_7 [0] : vector<128x128xf32> to vector<128xf32>
    %18 = vector.shape_cast %17 : vector<128xf32> to vector<1x128xf32>
    %cst_8 = arith.constant 0.0102040814 : f32
    %19 = vector.broadcast %cst_8 : f32 to vector<1x128xf32>
    %20 = arith.mulf %18, %19 : vector<1x128xf32>
    %cst_9 = arith.constant 9.99999974E-6 : f32
    %21 = vector.broadcast %cst_9 : f32 to vector<1x128xf32>
    %22 = arith.addf %20, %21 : vector<1x128xf32>
    %23 = math.rsqrt %22 : vector<1x128xf32>
    %24 = vector.broadcast %23 : vector<1x128xf32> to vector<128x128xf32>
    %25 = arith.mulf %14, %24 : vector<128x128xf32>
    %cst_10 = arith.constant 0.000000e+00 : f32
    %26 = vector.broadcast %cst_10 : f32 to vector<128x128xf32>
    %27 = arith.maximumf %25, %26 : vector<128x128xf32>
    %28 = arith.mulf %27, %8 : vector<128x128xf32>
    %29 = arith.truncf %28 : vector<128x128xf32> to vector<128x128xbf16>
    %30 = tpu.iota {dimensions = array<i32: 1>} : vector<24x128xi32>
    %cst_11 = arith.constant 0.000000e+00 : f32
    %31 = vector.broadcast %cst_11 : f32 to vector<24x128xf32>
    %c0_12 = arith.constant 0 : index
    %c0_13 = arith.constant 0 : index
    %32 = vector.load %arg3[%c0_12, %c0_13] : memref<600x1xi32, #tpu.memory_space<vmem>>, vector<24x1xi32>
    %33 = vector.broadcast %32 : vector<24x1xi32> to vector<24x128xi32>
    %34 = arith.cmpi eq, %30, %33 : vector<24x128xi32>
    %cst_14 = arith.constant 1.000000e+00 : f32
    %cst_15 = arith.constant 0.000000e+00 : f32
    %35 = vector.broadcast %cst_14 : f32 to vector<24x128xf32>
    %36 = vector.broadcast %cst_15 : f32 to vector<24x128xf32>
    %37 = arith.select %34, %35, %36 : vector<24x128xi1>, vector<24x128xf32>
    %38 = arith.truncf %37 : vector<24x128xf32> to vector<24x128xbf16>
    %cst_16 = arith.constant dense<0.000000e+00> : vector<24x128xf32>
    %39 = tpu.matmul %38, %29, %cst_16 {dimension_numbers = #tpu.dot_dimension_numbers<[1], [0], [0], [1], [0, 0, 1, 1], [], []>} : vector<24x128xbf16>, vector<128x128xbf16>, vector<24x128xf32> -> vector<24x128xf32>
    %c0_17 = arith.constant 0 : index
    %c0_18 = arith.constant 0 : index
    %40 = vector.load %arg2[%c0_17, %c0_18] : memref<3200x128xbf16, #tpu.memory_space<vmem>>, vector<128x128xbf16>
    %41 = arith.truncf %39 : vector<24x128xf32> to vector<24x128xbf16>
    %cst_19 = arith.constant dense<0.000000e+00> : vector<24x128xf32>
    %42 = tpu.matmul %41, %40, %cst_19 {dimension_numbers = #tpu.dot_dimension_numbers<[1], [0], [0], [1], [0, 0, 1, 1], [], []>} : vector<24x128xbf16>, vector<128x128xbf16>, vector<24x128xf32> -> vector<24x128xf32>
    %43 = arith.addf %31, %42 : vector<24x128xf32>
    %c24 = arith.constant 24 : index
    %c0_20 = arith.constant 0 : index
    %44 = vector.load %arg3[%c24, %c0_20] : memref<600x1xi32, #tpu.memory_space<vmem>>, vector<24x1xi32>
    %45 = vector.broadcast %44 : vector<24x1xi32> to vector<24x128xi32>
    %46 = arith.cmpi eq, %30, %45 : vector<24x128xi32>
    %cst_21 = arith.constant 1.000000e+00 : f32
    %cst_22 = arith.constant 0.000000e+00 : f32
    %47 = vector.broadcast %cst_21 : f32 to vector<24x128xf32>
    %48 = vector.broadcast %cst_22 : f32 to vector<24x128xf32>
    %49 = arith.select %46, %47, %48 : vector<24x128xi1>, vector<24x128xf32>
    %50 = arith.truncf %49 : vector<24x128xf32> to vector<24x128xbf16>
    %cst_23 = arith.constant dense<0.000000e+00> : vector<24x128xf32>
    %51 = tpu.matmul %50, %29, %cst_23 {dimension_numbers = #tpu.dot_dimension_numbers<[1], [0], [0], [1], [0, 0, 1, 1], [], []>} : vector<24x128xbf16>, vector<128x128xbf16>, vector<24x128xf32> -> vector<24x128xf32>
    %c128 = arith.constant 128 : index
    %c0_24 = arith.constant 0 : index
    %52 = vector.load %arg2[%c128, %c0_24] : memref<3200x128xbf16, #tpu.memory_space<vmem>>, vector<128x128xbf16>
    %53 = arith.truncf %51 : vector<24x128xf32> to vector<24x128xbf16>
    %cst_25 = arith.constant dense<0.000000e+00> : vector<24x128xf32>
    %54 = tpu.matmul %53, %52, %cst_25 {dimension_numbers = #tpu.dot_dimension_numbers<[1], [0], [0], [1], [0, 0, 1, 1], [], []>} : vector<24x128xbf16>, vector<128x128xbf16>, vector<24x128xf32> -> vector<24x128xf32>
    %55 = arith.addf %43, %54 : vector<24x128xf32>
    %c48 = arith.constant 48 : index
    %c0_26 = arith.constant 0 : index
    %56 = vector.load %arg3[%c48, %c0_26] : memref<600x1xi32, #tpu.memory_space<vmem>>, vector<24x1xi32>
    %57 = vector.broadcast %56 : vector<24x1xi32> to vector<24x128xi32>
    %58 = arith.cmpi eq, %30, %57 : vector<24x128xi32>
    %cst_27 = arith.constant 1.000000e+00 : f32
    %cst_28 = arith.constant 0.000000e+00 : f32
    %59 = vector.broadcast %cst_27 : f32 to vector<24x128xf32>
    %60 = vector.broadcast %cst_28 : f32 to vector<24x128xf32>
    %61 = arith.select %58, %59, %60 : vector<24x128xi1>, vector<24x128xf32>
    %62 = arith.truncf %61 : vector<24x128xf32> to vector<24x128xbf16>
    %cst_29 = arith.constant dense<0.000000e+00> : vector<24x128xf32>
    %63 = tpu.matmul %62, %29, %cst_29 {dimension_numbers = #tpu.dot_dimension_numbers<[1], [0], [0], [1], [0, 0, 1, 1], [], []>} : vector<24x128xbf16>, vector<128x128xbf16>, vector<24x128xf32> -> vector<24x128xf32>
    %c256 = arith.constant 256 : index
    %c0_30 = arith.constant 0 : index
    %64 = vector.load %arg2[%c256, %c0_30] : memref<3200x128xbf16, #tpu.memory_space<vmem>>, vector<128x128xbf16>
    %65 = arith.truncf %63 : vector<24x128xf32> to vector<24x128xbf16>
    %cst_31 = arith.constant dense<0.000000e+00> : vector<24x128xf32>
    %66 = tpu.matmul %65, %64, %cst_31 {dimension_numbers = #tpu.dot_dimension_numbers<[1], [0], [0], [1], [0, 0, 1, 1], [], []>} : vector<24x128xbf16>, vector<128x128xbf16>, vector<24x128xf32> -> vector<24x128xf32>
    %67 = arith.addf %55, %66 : vector<24x128xf32>
    %c72 = arith.constant 72 : index
    %c0_32 = arith.constant 0 : index
    %68 = vector.load %arg3[%c72, %c0_32] : memref<600x1xi32, #tpu.memory_space<vmem>>, vector<24x1xi32>
    %69 = vector.broadcast %68 : vector<24x1xi32> to vector<24x128xi32>
    %70 = arith.cmpi eq, %30, %69 : vector<24x128xi32>
    %cst_33 = arith.constant 1.000000e+00 : f32
    %cst_34 = arith.constant 0.000000e+00 : f32
    %71 = vector.broadcast %cst_33 : f32 to vector<24x128xf32>
    %72 = vector.broadcast %cst_34 : f32 to vector<24x128xf32>
    %73 = arith.select %70, %71, %72 : vector<24x128xi1>, vector<24x128xf32>
    %74 = arith.truncf %73 : vector<24x128xf32> to vector<24x128xbf16>
    %cst_35 = arith.constant dense<0.000000e+00> : vector<24x128xf32>
    %75 = tpu.matmul %74, %29, %cst_35 {dimension_numbers = #tpu.dot_dimension_numbers<[1], [0], [0], [1], [0, 0, 1, 1], [], []>} : vector<24x128xbf16>, vector<128x128xbf16>, vector<24x128xf32> -> vector<24x128xf32>
    %c384 = arith.constant 384 : index
    %c0_36 = arith.constant 0 : index
    %76 = vector.load %arg2[%c384, %c0_36] : memref<3200x128xbf16, #tpu.memory_space<vmem>>, vector<128x128xbf16>
    %77 = arith.truncf %75 : vector<24x128xf32> to vector<24x128xbf16>
    %cst_37 = arith.constant dense<0.000000e+00> : vector<24x128xf32>
    %78 = tpu.matmul %77, %76, %cst_37 {dimension_numbers = #tpu.dot_dimension_numbers<[1], [0], [0], [1], [0, 0, 1, 1], [], []>} : vector<24x128xbf16>, vector<128x128xbf16>, vector<24x128xf32> -> vector<24x128xf32>
    %79 = arith.addf %67, %78 : vector<24x128xf32>
    %c96 = arith.constant 96 : index
    %c0_38 = arith.constant 0 : index
    %80 = vector.load %arg3[%c96, %c0_38] : memref<600x1xi32, #tpu.memory_space<vmem>>, vector<24x1xi32>
    %81 = vector.broadcast %80 : vector<24x1xi32> to vector<24x128xi32>
    %82 = arith.cmpi eq, %30, %81 : vector<24x128xi32>
    %cst_39 = arith.constant 1.000000e+00 : f32
    %cst_40 = arith.constant 0.000000e+00 : f32
    %83 = vector.broadcast %cst_39 : f32 to vector<24x128xf32>
    %84 = vector.broadcast %cst_40 : f32 to vector<24x128xf32>
    %85 = arith.select %82, %83, %84 : vector<24x128xi1>, vector<24x128xf32>
    %86 = arith.truncf %85 : vector<24x128xf32> to vector<24x128xbf16>
    %cst_41 = arith.constant dense<0.000000e+00> : vector<24x128xf32>
    %87 = tpu.matmul %86, %29, %cst_41 {dimension_numbers = #tpu.dot_dimension_numbers<[1], [0], [0], [1], [0, 0, 1, 1], [], []>} : vector<24x128xbf16>, vector<128x128xbf16>, vector<24x128xf32> -> vector<24x128xf32>
    %c512 = arith.constant 512 : index
    %c0_42 = arith.constant 0 : index
    %88 = vector.load %arg2[%c512, %c0_42] : memref<3200x128xbf16, #tpu.memory_space<vmem>>, vector<128x128xbf16>
    %89 = arith.truncf %87 : vector<24x128xf32> to vector<24x128xbf16>
    %cst_43 = arith.constant dense<0.000000e+00> : vector<24x128xf32>
    %90 = tpu.matmul %89, %88, %cst_43 {dimension_numbers = #tpu.dot_dimension_numbers<[1], [0], [0], [1], [0, 0, 1, 1], [], []>} : vector<24x128xbf16>, vector<128x128xbf16>, vector<24x128xf32> -> vector<24x128xf32>
    %91 = arith.addf %79, %90 : vector<24x128xf32>
    %c120 = arith.constant 120 : index
    %c0_44 = arith.constant 0 : index
    %92 = vector.load %arg3[%c120, %c0_44] : memref<600x1xi32, #tpu.memory_space<vmem>>, vector<24x1xi32>
    %93 = vector.broadcast %92 : vector<24x1xi32> to vector<24x128xi32>
    %94 = arith.cmpi eq, %30, %93 : vector<24x128xi32>
    %cst_45 = arith.constant 1.000000e+00 : f32
    %cst_46 = arith.constant 0.000000e+00 : f32
    %95 = vector.broadcast %cst_45 : f32 to vector<24x128xf32>
    %96 = vector.broadcast %cst_46 : f32 to vector<24x128xf32>
    %97 = arith.select %94, %95, %96 : vector<24x128xi1>, vector<24x128xf32>
    %98 = arith.truncf %97 : vector<24x128xf32> to vector<24x128xbf16>
    %cst_47 = arith.constant dense<0.000000e+00> : vector<24x128xf32>
    %99 = tpu.matmul %98, %29, %cst_47 {dimension_numbers = #tpu.dot_dimension_numbers<[1], [0], [0], [1], [0, 0, 1, 1], [], []>} : vector<24x128xbf16>, vector<128x128xbf16>, vector<24x128xf32> -> vector<24x128xf32>
    %c640 = arith.constant 640 : index
    %c0_48 = arith.constant 0 : index
    %100 = vector.load %arg2[%c640, %c0_48] : memref<3200x128xbf16, #tpu.memory_space<vmem>>, vector<128x128xbf16>
    %101 = arith.truncf %99 : vector<24x128xf32> to vector<24x128xbf16>
    %cst_49 = arith.constant dense<0.000000e+00> : vector<24x128xf32>
    %102 = tpu.matmul %101, %100, %cst_49 {dimension_numbers = #tpu.dot_dimension_numbers<[1], [0], [0], [1], [0, 0, 1, 1], [], []>} : vector<24x128xbf16>, vector<128x128xbf16>, vector<24x128xf32> -> vector<24x128xf32>
    %103 = arith.addf %91, %102 : vector<24x128xf32>
    %c144 = arith.constant 144 : index
    %c0_50 = arith.constant 0 : index
    %104 = vector.load %arg3[%c144, %c0_50] : memref<600x1xi32, #tpu.memory_space<vmem>>, vector<24x1xi32>
    %105 = vector.broadcast %104 : vector<24x1xi32> to vector<24x128xi32>
    %106 = arith.cmpi eq, %30, %105 : vector<24x128xi32>
    %cst_51 = arith.constant 1.000000e+00 : f32
    %cst_52 = arith.constant 0.000000e+00 : f32
    %107 = vector.broadcast %cst_51 : f32 to vector<24x128xf32>
    %108 = vector.broadcast %cst_52 : f32 to vector<24x128xf32>
    %109 = arith.select %106, %107, %108 : vector<24x128xi1>, vector<24x128xf32>
    %110 = arith.truncf %109 : vector<24x128xf32> to vector<24x128xbf16>
    %cst_53 = arith.constant dense<0.000000e+00> : vector<24x128xf32>
    %111 = tpu.matmul %110, %29, %cst_53 {dimension_numbers = #tpu.dot_dimension_numbers<[1], [0], [0], [1], [0, 0, 1, 1], [], []>} : vector<24x128xbf16>, vector<128x128xbf16>, vector<24x128xf32> -> vector<24x128xf32>
    %c768 = arith.constant 768 : index
    %c0_54 = arith.constant 0 : index
    %112 = vector.load %arg2[%c768, %c0_54] : memref<3200x128xbf16, #tpu.memory_space<vmem>>, vector<128x128xbf16>
    %113 = arith.truncf %111 : vector<24x128xf32> to vector<24x128xbf16>
    %cst_55 = arith.constant dense<0.000000e+00> : vector<24x128xf32>
    %114 = tpu.matmul %113, %112, %cst_55 {dimension_numbers = #tpu.dot_dimension_numbers<[1], [0], [0], [1], [0, 0, 1, 1], [], []>} : vector<24x128xbf16>, vector<128x128xbf16>, vector<24x128xf32> -> vector<24x128xf32>
    %115 = arith.addf %103, %114 : vector<24x128xf32>
    %c168 = arith.constant 168 : index
    %c0_56 = arith.constant 0 : index
    %116 = vector.load %arg3[%c168, %c0_56] : memref<600x1xi32, #tpu.memory_space<vmem>>, vector<24x1xi32>
    %117 = vector.broadcast %116 : vector<24x1xi32> to vector<24x128xi32>
    %118 = arith.cmpi eq, %30, %117 : vector<24x128xi32>
    %cst_57 = arith.constant 1.000000e+00 : f32
    %cst_58 = arith.constant 0.000000e+00 : f32
    %119 = vector.broadcast %cst_57 : f32 to vector<24x128xf32>
    %120 = vector.broadcast %cst_58 : f32 to vector<24x128xf32>
    %121 = arith.select %118, %119, %120 : vector<24x128xi1>, vector<24x128xf32>
    %122 = arith.truncf %121 : vector<24x128xf32> to vector<24x128xbf16>
    %cst_59 = arith.constant dense<0.000000e+00> : vector<24x128xf32>
    %123 = tpu.matmul %122, %29, %cst_59 {dimension_numbers = #tpu.dot_dimension_numbers<[1], [0], [0], [1], [0, 0, 1, 1], [], []>} : vector<24x128xbf16>, vector<128x128xbf16>, vector<24x128xf32> -> vector<24x128xf32>
    %c896 = arith.constant 896 : index
    %c0_60 = arith.constant 0 : index
    %124 = vector.load %arg2[%c896, %c0_60] : memref<3200x128xbf16, #tpu.memory_space<vmem>>, vector<128x128xbf16>
    %125 = arith.truncf %123 : vector<24x128xf32> to vector<24x128xbf16>
    %cst_61 = arith.constant dense<0.000000e+00> : vector<24x128xf32>
    %126 = tpu.matmul %125, %124, %cst_61 {dimension_numbers = #tpu.dot_dimension_numbers<[1], [0], [0], [1], [0, 0, 1, 1], [], []>} : vector<24x128xbf16>, vector<128x128xbf16>, vector<24x128xf32> -> vector<24x128xf32>
    %127 = arith.addf %115, %126 : vector<24x128xf32>
    %c192 = arith.constant 192 : index
    %c0_62 = arith.constant 0 : index
    %128 = vector.load %arg3[%c192, %c0_62] : memref<600x1xi32, #tpu.memory_space<vmem>>, vector<24x1xi32>
    %129 = vector.broadcast %128 : vector<24x1xi32> to vector<24x128xi32>
    %130 = arith.cmpi eq, %30, %129 : vector<24x128xi32>
    %cst_63 = arith.constant 1.000000e+00 : f32
    %cst_64 = arith.constant 0.000000e+00 : f32
    %131 = vector.broadcast %cst_63 : f32 to vector<24x128xf32>
    %132 = vector.broadcast %cst_64 : f32 to vector<24x128xf32>
    %133 = arith.select %130, %131, %132 : vector<24x128xi1>, vector<24x128xf32>
    %134 = arith.truncf %133 : vector<24x128xf32> to vector<24x128xbf16>
    %cst_65 = arith.constant dense<0.000000e+00> : vector<24x128xf32>
    %135 = tpu.matmul %134, %29, %cst_65 {dimension_numbers = #tpu.dot_dimension_numbers<[1], [0], [0], [1], [0, 0, 1, 1], [], []>} : vector<24x128xbf16>, vector<128x128xbf16>, vector<24x128xf32> -> vector<24x128xf32>
    %c1024 = arith.constant 1024 : index
    %c0_66 = arith.constant 0 : index
    %136 = vector.load %arg2[%c1024, %c0_66] : memref<3200x128xbf16, #tpu.memory_space<vmem>>, vector<128x128xbf16>
    %137 = arith.truncf %135 : vector<24x128xf32> to vector<24x128xbf16>
    %cst_67 = arith.constant dense<0.000000e+00> : vector<24x128xf32>
    %138 = tpu.matmul %137, %136, %cst_67 {dimension_numbers = #tpu.dot_dimension_numbers<[1], [0], [0], [1], [0, 0, 1, 1], [], []>} : vector<24x128xbf16>, vector<128x128xbf16>, vector<24x128xf32> -> vector<24x128xf32>
    %139 = arith.addf %127, %138 : vector<24x128xf32>
    %c216 = arith.constant 216 : index
    %c0_68 = arith.constant 0 : index
    %140 = vector.load %arg3[%c216, %c0_68] : memref<600x1xi32, #tpu.memory_space<vmem>>, vector<24x1xi32>
    %141 = vector.broadcast %140 : vector<24x1xi32> to vector<24x128xi32>
    %142 = arith.cmpi eq, %30, %141 : vector<24x128xi32>
    %cst_69 = arith.constant 1.000000e+00 : f32
    %cst_70 = arith.constant 0.000000e+00 : f32
    %143 = vector.broadcast %cst_69 : f32 to vector<24x128xf32>
    %144 = vector.broadcast %cst_70 : f32 to vector<24x128xf32>
    %145 = arith.select %142, %143, %144 : vector<24x128xi1>, vector<24x128xf32>
    %146 = arith.truncf %145 : vector<24x128xf32> to vector<24x128xbf16>
    %cst_71 = arith.constant dense<0.000000e+00> : vector<24x128xf32>
    %147 = tpu.matmul %146, %29, %cst_71 {dimension_numbers = #tpu.dot_dimension_numbers<[1], [0], [0], [1], [0, 0, 1, 1], [], []>} : vector<24x128xbf16>, vector<128x128xbf16>, vector<24x128xf32> -> vector<24x128xf32>
    %c1152 = arith.constant 1152 : index
    %c0_72 = arith.constant 0 : index
    %148 = vector.load %arg2[%c1152, %c0_72] : memref<3200x128xbf16, #tpu.memory_space<vmem>>, vector<128x128xbf16>
    %149 = arith.truncf %147 : vector<24x128xf32> to vector<24x128xbf16>
    %cst_73 = arith.constant dense<0.000000e+00> : vector<24x128xf32>
    %150 = tpu.matmul %149, %148, %cst_73 {dimension_numbers = #tpu.dot_dimension_numbers<[1], [0], [0], [1], [0, 0, 1, 1], [], []>} : vector<24x128xbf16>, vector<128x128xbf16>, vector<24x128xf32> -> vector<24x128xf32>
    %151 = arith.addf %139, %150 : vector<24x128xf32>
    %c240 = arith.constant 240 : index
    %c0_74 = arith.constant 0 : index
    %152 = vector.load %arg3[%c240, %c0_74] : memref<600x1xi32, #tpu.memory_space<vmem>>, vector<24x1xi32>
    %153 = vector.broadcast %152 : vector<24x1xi32> to vector<24x128xi32>
    %154 = arith.cmpi eq, %30, %153 : vector<24x128xi32>
    %cst_75 = arith.constant 1.000000e+00 : f32
    %cst_76 = arith.constant 0.000000e+00 : f32
    %155 = vector.broadcast %cst_75 : f32 to vector<24x128xf32>
    %156 = vector.broadcast %cst_76 : f32 to vector<24x128xf32>
    %157 = arith.select %154, %155, %156 : vector<24x128xi1>, vector<24x128xf32>
    %158 = arith.truncf %157 : vector<24x128xf32> to vector<24x128xbf16>
    %cst_77 = arith.constant dense<0.000000e+00> : vector<24x128xf32>
    %159 = tpu.matmul %158, %29, %cst_77 {dimension_numbers = #tpu.dot_dimension_numbers<[1], [0], [0], [1], [0, 0, 1, 1], [], []>} : vector<24x128xbf16>, vector<128x128xbf16>, vector<24x128xf32> -> vector<24x128xf32>
    %c1280 = arith.constant 1280 : index
    %c0_78 = arith.constant 0 : index
    %160 = vector.load %arg2[%c1280, %c0_78] : memref<3200x128xbf16, #tpu.memory_space<vmem>>, vector<128x128xbf16>
    %161 = arith.truncf %159 : vector<24x128xf32> to vector<24x128xbf16>
    %cst_79 = arith.constant dense<0.000000e+00> : vector<24x128xf32>
    %162 = tpu.matmul %161, %160, %cst_79 {dimension_numbers = #tpu.dot_dimension_numbers<[1], [0], [0], [1], [0, 0, 1, 1], [], []>} : vector<24x128xbf16>, vector<128x128xbf16>, vector<24x128xf32> -> vector<24x128xf32>
    %163 = arith.addf %151, %162 : vector<24x128xf32>
    %c264 = arith.constant 264 : index
    %c0_80 = arith.constant 0 : index
    %164 = vector.load %arg3[%c264, %c0_80] : memref<600x1xi32, #tpu.memory_space<vmem>>, vector<24x1xi32>
    %165 = vector.broadcast %164 : vector<24x1xi32> to vector<24x128xi32>
    %166 = arith.cmpi eq, %30, %165 : vector<24x128xi32>
    %cst_81 = arith.constant 1.000000e+00 : f32
    %cst_82 = arith.constant 0.000000e+00 : f32
    %167 = vector.broadcast %cst_81 : f32 to vector<24x128xf32>
    %168 = vector.broadcast %cst_82 : f32 to vector<24x128xf32>
    %169 = arith.select %166, %167, %168 : vector<24x128xi1>, vector<24x128xf32>
    %170 = arith.truncf %169 : vector<24x128xf32> to vector<24x128xbf16>
    %cst_83 = arith.constant dense<0.000000e+00> : vector<24x128xf32>
    %171 = tpu.matmul %170, %29, %cst_83 {dimension_numbers = #tpu.dot_dimension_numbers<[1], [0], [0], [1], [0, 0, 1, 1], [], []>} : vector<24x128xbf16>, vector<128x128xbf16>, vector<24x128xf32> -> vector<24x128xf32>
    %c1408 = arith.constant 1408 : index
    %c0_84 = arith.constant 0 : index
    %172 = vector.load %arg2[%c1408, %c0_84] : memref<3200x128xbf16, #tpu.memory_space<vmem>>, vector<128x128xbf16>
    %173 = arith.truncf %171 : vector<24x128xf32> to vector<24x128xbf16>
    %cst_85 = arith.constant dense<0.000000e+00> : vector<24x128xf32>
    %174 = tpu.matmul %173, %172, %cst_85 {dimension_numbers = #tpu.dot_dimension_numbers<[1], [0], [0], [1], [0, 0, 1, 1], [], []>} : vector<24x128xbf16>, vector<128x128xbf16>, vector<24x128xf32> -> vector<24x128xf32>
    %175 = arith.addf %163, %174 : vector<24x128xf32>
    %c288 = arith.constant 288 : index
    %c0_86 = arith.constant 0 : index
    %176 = vector.load %arg3[%c288, %c0_86] : memref<600x1xi32, #tpu.memory_space<vmem>>, vector<24x1xi32>
    %177 = vector.broadcast %176 : vector<24x1xi32> to vector<24x128xi32>
    %178 = arith.cmpi eq, %30, %177 : vector<24x128xi32>
    %cst_87 = arith.constant 1.000000e+00 : f32
    %cst_88 = arith.constant 0.000000e+00 : f32
    %179 = vector.broadcast %cst_87 : f32 to vector<24x128xf32>
    %180 = vector.broadcast %cst_88 : f32 to vector<24x128xf32>
    %181 = arith.select %178, %179, %180 : vector<24x128xi1>, vector<24x128xf32>
    %182 = arith.truncf %181 : vector<24x128xf32> to vector<24x128xbf16>
    %cst_89 = arith.constant dense<0.000000e+00> : vector<24x128xf32>
    %183 = tpu.matmul %182, %29, %cst_89 {dimension_numbers = #tpu.dot_dimension_numbers<[1], [0], [0], [1], [0, 0, 1, 1], [], []>} : vector<24x128xbf16>, vector<128x128xbf16>, vector<24x128xf32> -> vector<24x128xf32>
    %c1536 = arith.constant 1536 : index
    %c0_90 = arith.constant 0 : index
    %184 = vector.load %arg2[%c1536, %c0_90] : memref<3200x128xbf16, #tpu.memory_space<vmem>>, vector<128x128xbf16>
    %185 = arith.truncf %183 : vector<24x128xf32> to vector<24x128xbf16>
    %cst_91 = arith.constant dense<0.000000e+00> : vector<24x128xf32>
    %186 = tpu.matmul %185, %184, %cst_91 {dimension_numbers = #tpu.dot_dimension_numbers<[1], [0], [0], [1], [0, 0, 1, 1], [], []>} : vector<24x128xbf16>, vector<128x128xbf16>, vector<24x128xf32> -> vector<24x128xf32>
    %187 = arith.addf %175, %186 : vector<24x128xf32>
    %c312 = arith.constant 312 : index
    %c0_92 = arith.constant 0 : index
    %188 = vector.load %arg3[%c312, %c0_92] : memref<600x1xi32, #tpu.memory_space<vmem>>, vector<24x1xi32>
    %189 = vector.broadcast %188 : vector<24x1xi32> to vector<24x128xi32>
    %190 = arith.cmpi eq, %30, %189 : vector<24x128xi32>
    %cst_93 = arith.constant 1.000000e+00 : f32
    %cst_94 = arith.constant 0.000000e+00 : f32
    %191 = vector.broadcast %cst_93 : f32 to vector<24x128xf32>
    %192 = vector.broadcast %cst_94 : f32 to vector<24x128xf32>
    %193 = arith.select %190, %191, %192 : vector<24x128xi1>, vector<24x128xf32>
    %194 = arith.truncf %193 : vector<24x128xf32> to vector<24x128xbf16>
    %cst_95 = arith.constant dense<0.000000e+00> : vector<24x128xf32>
    %195 = tpu.matmul %194, %29, %cst_95 {dimension_numbers = #tpu.dot_dimension_numbers<[1], [0], [0], [1], [0, 0, 1, 1], [], []>} : vector<24x128xbf16>, vector<128x128xbf16>, vector<24x128xf32> -> vector<24x128xf32>
    %c1664 = arith.constant 1664 : index
    %c0_96 = arith.constant 0 : index
    %196 = vector.load %arg2[%c1664, %c0_96] : memref<3200x128xbf16, #tpu.memory_space<vmem>>, vector<128x128xbf16>
    %197 = arith.truncf %195 : vector<24x128xf32> to vector<24x128xbf16>
    %cst_97 = arith.constant dense<0.000000e+00> : vector<24x128xf32>
    %198 = tpu.matmul %197, %196, %cst_97 {dimension_numbers = #tpu.dot_dimension_numbers<[1], [0], [0], [1], [0, 0, 1, 1], [], []>} : vector<24x128xbf16>, vector<128x128xbf16>, vector<24x128xf32> -> vector<24x128xf32>
    %199 = arith.addf %187, %198 : vector<24x128xf32>
    %c336 = arith.constant 336 : index
    %c0_98 = arith.constant 0 : index
    %200 = vector.load %arg3[%c336, %c0_98] : memref<600x1xi32, #tpu.memory_space<vmem>>, vector<24x1xi32>
    %201 = vector.broadcast %200 : vector<24x1xi32> to vector<24x128xi32>
    %202 = arith.cmpi eq, %30, %201 : vector<24x128xi32>
    %cst_99 = arith.constant 1.000000e+00 : f32
    %cst_100 = arith.constant 0.000000e+00 : f32
    %203 = vector.broadcast %cst_99 : f32 to vector<24x128xf32>
    %204 = vector.broadcast %cst_100 : f32 to vector<24x128xf32>
    %205 = arith.select %202, %203, %204 : vector<24x128xi1>, vector<24x128xf32>
    %206 = arith.truncf %205 : vector<24x128xf32> to vector<24x128xbf16>
    %cst_101 = arith.constant dense<0.000000e+00> : vector<24x128xf32>
    %207 = tpu.matmul %206, %29, %cst_101 {dimension_numbers = #tpu.dot_dimension_numbers<[1], [0], [0], [1], [0, 0, 1, 1], [], []>} : vector<24x128xbf16>, vector<128x128xbf16>, vector<24x128xf32> -> vector<24x128xf32>
    %c1792 = arith.constant 1792 : index
    %c0_102 = arith.constant 0 : index
    %208 = vector.load %arg2[%c1792, %c0_102] : memref<3200x128xbf16, #tpu.memory_space<vmem>>, vector<128x128xbf16>
    %209 = arith.truncf %207 : vector<24x128xf32> to vector<24x128xbf16>
    %cst_103 = arith.constant dense<0.000000e+00> : vector<24x128xf32>
    %210 = tpu.matmul %209, %208, %cst_103 {dimension_numbers = #tpu.dot_dimension_numbers<[1], [0], [0], [1], [0, 0, 1, 1], [], []>} : vector<24x128xbf16>, vector<128x128xbf16>, vector<24x128xf32> -> vector<24x128xf32>
    %211 = arith.addf %199, %210 : vector<24x128xf32>
    %c360 = arith.constant 360 : index
    %c0_104 = arith.constant 0 : index
    %212 = vector.load %arg3[%c360, %c0_104] : memref<600x1xi32, #tpu.memory_space<vmem>>, vector<24x1xi32>
    %213 = vector.broadcast %212 : vector<24x1xi32> to vector<24x128xi32>
    %214 = arith.cmpi eq, %30, %213 : vector<24x128xi32>
    %cst_105 = arith.constant 1.000000e+00 : f32
    %cst_106 = arith.constant 0.000000e+00 : f32
    %215 = vector.broadcast %cst_105 : f32 to vector<24x128xf32>
    %216 = vector.broadcast %cst_106 : f32 to vector<24x128xf32>
    %217 = arith.select %214, %215, %216 : vector<24x128xi1>, vector<24x128xf32>
    %218 = arith.truncf %217 : vector<24x128xf32> to vector<24x128xbf16>
    %cst_107 = arith.constant dense<0.000000e+00> : vector<24x128xf32>
    %219 = tpu.matmul %218, %29, %cst_107 {dimension_numbers = #tpu.dot_dimension_numbers<[1], [0], [0], [1], [0, 0, 1, 1], [], []>} : vector<24x128xbf16>, vector<128x128xbf16>, vector<24x128xf32> -> vector<24x128xf32>
    %c1920 = arith.constant 1920 : index
    %c0_108 = arith.constant 0 : index
    %220 = vector.load %arg2[%c1920, %c0_108] : memref<3200x128xbf16, #tpu.memory_space<vmem>>, vector<128x128xbf16>
    %221 = arith.truncf %219 : vector<24x128xf32> to vector<24x128xbf16>
    %cst_109 = arith.constant dense<0.000000e+00> : vector<24x128xf32>
    %222 = tpu.matmul %221, %220, %cst_109 {dimension_numbers = #tpu.dot_dimension_numbers<[1], [0], [0], [1], [0, 0, 1, 1], [], []>} : vector<24x128xbf16>, vector<128x128xbf16>, vector<24x128xf32> -> vector<24x128xf32>
    %223 = arith.addf %211, %222 : vector<24x128xf32>
    %c384_110 = arith.constant 384 : index
    %c0_111 = arith.constant 0 : index
    %224 = vector.load %arg3[%c384_110, %c0_111] : memref<600x1xi32, #tpu.memory_space<vmem>>, vector<24x1xi32>
    %225 = vector.broadcast %224 : vector<24x1xi32> to vector<24x128xi32>
    %226 = arith.cmpi eq, %30, %225 : vector<24x128xi32>
    %cst_112 = arith.constant 1.000000e+00 : f32
    %cst_113 = arith.constant 0.000000e+00 : f32
    %227 = vector.broadcast %cst_112 : f32 to vector<24x128xf32>
    %228 = vector.broadcast %cst_113 : f32 to vector<24x128xf32>
    %229 = arith.select %226, %227, %228 : vector<24x128xi1>, vector<24x128xf32>
    %230 = arith.truncf %229 : vector<24x128xf32> to vector<24x128xbf16>
    %cst_114 = arith.constant dense<0.000000e+00> : vector<24x128xf32>
    %231 = tpu.matmul %230, %29, %cst_114 {dimension_numbers = #tpu.dot_dimension_numbers<[1], [0], [0], [1], [0, 0, 1, 1], [], []>} : vector<24x128xbf16>, vector<128x128xbf16>, vector<24x128xf32> -> vector<24x128xf32>
    %c2048 = arith.constant 2048 : index
    %c0_115 = arith.constant 0 : index
    %232 = vector.load %arg2[%c2048, %c0_115] : memref<3200x128xbf16, #tpu.memory_space<vmem>>, vector<128x128xbf16>
    %233 = arith.truncf %231 : vector<24x128xf32> to vector<24x128xbf16>
    %cst_116 = arith.constant dense<0.000000e+00> : vector<24x128xf32>
    %234 = tpu.matmul %233, %232, %cst_116 {dimension_numbers = #tpu.dot_dimension_numbers<[1], [0], [0], [1], [0, 0, 1, 1], [], []>} : vector<24x128xbf16>, vector<128x128xbf16>, vector<24x128xf32> -> vector<24x128xf32>
    %235 = arith.addf %223, %234 : vector<24x128xf32>
    %c408 = arith.constant 408 : index
    %c0_117 = arith.constant 0 : index
    %236 = vector.load %arg3[%c408, %c0_117] : memref<600x1xi32, #tpu.memory_space<vmem>>, vector<24x1xi32>
    %237 = vector.broadcast %236 : vector<24x1xi32> to vector<24x128xi32>
    %238 = arith.cmpi eq, %30, %237 : vector<24x128xi32>
    %cst_118 = arith.constant 1.000000e+00 : f32
    %cst_119 = arith.constant 0.000000e+00 : f32
    %239 = vector.broadcast %cst_118 : f32 to vector<24x128xf32>
    %240 = vector.broadcast %cst_119 : f32 to vector<24x128xf32>
    %241 = arith.select %238, %239, %240 : vector<24x128xi1>, vector<24x128xf32>
    %242 = arith.truncf %241 : vector<24x128xf32> to vector<24x128xbf16>
    %cst_120 = arith.constant dense<0.000000e+00> : vector<24x128xf32>
    %243 = tpu.matmul %242, %29, %cst_120 {dimension_numbers = #tpu.dot_dimension_numbers<[1], [0], [0], [1], [0, 0, 1, 1], [], []>} : vector<24x128xbf16>, vector<128x128xbf16>, vector<24x128xf32> -> vector<24x128xf32>
    %c2176 = arith.constant 2176 : index
    %c0_121 = arith.constant 0 : index
    %244 = vector.load %arg2[%c2176, %c0_121] : memref<3200x128xbf16, #tpu.memory_space<vmem>>, vector<128x128xbf16>
    %245 = arith.truncf %243 : vector<24x128xf32> to vector<24x128xbf16>
    %cst_122 = arith.constant dense<0.000000e+00> : vector<24x128xf32>
    %246 = tpu.matmul %245, %244, %cst_122 {dimension_numbers = #tpu.dot_dimension_numbers<[1], [0], [0], [1], [0, 0, 1, 1], [], []>} : vector<24x128xbf16>, vector<128x128xbf16>, vector<24x128xf32> -> vector<24x128xf32>
    %247 = arith.addf %235, %246 : vector<24x128xf32>
    %c432 = arith.constant 432 : index
    %c0_123 = arith.constant 0 : index
    %248 = vector.load %arg3[%c432, %c0_123] : memref<600x1xi32, #tpu.memory_space<vmem>>, vector<24x1xi32>
    %249 = vector.broadcast %248 : vector<24x1xi32> to vector<24x128xi32>
    %250 = arith.cmpi eq, %30, %249 : vector<24x128xi32>
    %cst_124 = arith.constant 1.000000e+00 : f32
    %cst_125 = arith.constant 0.000000e+00 : f32
    %251 = vector.broadcast %cst_124 : f32 to vector<24x128xf32>
    %252 = vector.broadcast %cst_125 : f32 to vector<24x128xf32>
    %253 = arith.select %250, %251, %252 : vector<24x128xi1>, vector<24x128xf32>
    %254 = arith.truncf %253 : vector<24x128xf32> to vector<24x128xbf16>
    %cst_126 = arith.constant dense<0.000000e+00> : vector<24x128xf32>
    %255 = tpu.matmul %254, %29, %cst_126 {dimension_numbers = #tpu.dot_dimension_numbers<[1], [0], [0], [1], [0, 0, 1, 1], [], []>} : vector<24x128xbf16>, vector<128x128xbf16>, vector<24x128xf32> -> vector<24x128xf32>
    %c2304 = arith.constant 2304 : index
    %c0_127 = arith.constant 0 : index
    %256 = vector.load %arg2[%c2304, %c0_127] : memref<3200x128xbf16, #tpu.memory_space<vmem>>, vector<128x128xbf16>
    %257 = arith.truncf %255 : vector<24x128xf32> to vector<24x128xbf16>
    %cst_128 = arith.constant dense<0.000000e+00> : vector<24x128xf32>
    %258 = tpu.matmul %257, %256, %cst_128 {dimension_numbers = #tpu.dot_dimension_numbers<[1], [0], [0], [1], [0, 0, 1, 1], [], []>} : vector<24x128xbf16>, vector<128x128xbf16>, vector<24x128xf32> -> vector<24x128xf32>
    %259 = arith.addf %247, %258 : vector<24x128xf32>
    %c456 = arith.constant 456 : index
    %c0_129 = arith.constant 0 : index
    %260 = vector.load %arg3[%c456, %c0_129] : memref<600x1xi32, #tpu.memory_space<vmem>>, vector<24x1xi32>
    %261 = vector.broadcast %260 : vector<24x1xi32> to vector<24x128xi32>
    %262 = arith.cmpi eq, %30, %261 : vector<24x128xi32>
    %cst_130 = arith.constant 1.000000e+00 : f32
    %cst_131 = arith.constant 0.000000e+00 : f32
    %263 = vector.broadcast %cst_130 : f32 to vector<24x128xf32>
    %264 = vector.broadcast %cst_131 : f32 to vector<24x128xf32>
    %265 = arith.select %262, %263, %264 : vector<24x128xi1>, vector<24x128xf32>
    %266 = arith.truncf %265 : vector<24x128xf32> to vector<24x128xbf16>
    %cst_132 = arith.constant dense<0.000000e+00> : vector<24x128xf32>
    %267 = tpu.matmul %266, %29, %cst_132 {dimension_numbers = #tpu.dot_dimension_numbers<[1], [0], [0], [1], [0, 0, 1, 1], [], []>} : vector<24x128xbf16>, vector<128x128xbf16>, vector<24x128xf32> -> vector<24x128xf32>
    %c2432 = arith.constant 2432 : index
    %c0_133 = arith.constant 0 : index
    %268 = vector.load %arg2[%c2432, %c0_133] : memref<3200x128xbf16, #tpu.memory_space<vmem>>, vector<128x128xbf16>
    %269 = arith.truncf %267 : vector<24x128xf32> to vector<24x128xbf16>
    %cst_134 = arith.constant dense<0.000000e+00> : vector<24x128xf32>
    %270 = tpu.matmul %269, %268, %cst_134 {dimension_numbers = #tpu.dot_dimension_numbers<[1], [0], [0], [1], [0, 0, 1, 1], [], []>} : vector<24x128xbf16>, vector<128x128xbf16>, vector<24x128xf32> -> vector<24x128xf32>
    %271 = arith.addf %259, %270 : vector<24x128xf32>
    %c480 = arith.constant 480 : index
    %c0_135 = arith.constant 0 : index
    %272 = vector.load %arg3[%c480, %c0_135] : memref<600x1xi32, #tpu.memory_space<vmem>>, vector<24x1xi32>
    %273 = vector.broadcast %272 : vector<24x1xi32> to vector<24x128xi32>
    %274 = arith.cmpi eq, %30, %273 : vector<24x128xi32>
    %cst_136 = arith.constant 1.000000e+00 : f32
    %cst_137 = arith.constant 0.000000e+00 : f32
    %275 = vector.broadcast %cst_136 : f32 to vector<24x128xf32>
    %276 = vector.broadcast %cst_137 : f32 to vector<24x128xf32>
    %277 = arith.select %274, %275, %276 : vector<24x128xi1>, vector<24x128xf32>
    %278 = arith.truncf %277 : vector<24x128xf32> to vector<24x128xbf16>
    %cst_138 = arith.constant dense<0.000000e+00> : vector<24x128xf32>
    %279 = tpu.matmul %278, %29, %cst_138 {dimension_numbers = #tpu.dot_dimension_numbers<[1], [0], [0], [1], [0, 0, 1, 1], [], []>} : vector<24x128xbf16>, vector<128x128xbf16>, vector<24x128xf32> -> vector<24x128xf32>
    %c2560 = arith.constant 2560 : index
    %c0_139 = arith.constant 0 : index
    %280 = vector.load %arg2[%c2560, %c0_139] : memref<3200x128xbf16, #tpu.memory_space<vmem>>, vector<128x128xbf16>
    %281 = arith.truncf %279 : vector<24x128xf32> to vector<24x128xbf16>
    %cst_140 = arith.constant dense<0.000000e+00> : vector<24x128xf32>
    %282 = tpu.matmul %281, %280, %cst_140 {dimension_numbers = #tpu.dot_dimension_numbers<[1], [0], [0], [1], [0, 0, 1, 1], [], []>} : vector<24x128xbf16>, vector<128x128xbf16>, vector<24x128xf32> -> vector<24x128xf32>
    %283 = arith.addf %271, %282 : vector<24x128xf32>
    %c504 = arith.constant 504 : index
    %c0_141 = arith.constant 0 : index
    %284 = vector.load %arg3[%c504, %c0_141] : memref<600x1xi32, #tpu.memory_space<vmem>>, vector<24x1xi32>
    %285 = vector.broadcast %284 : vector<24x1xi32> to vector<24x128xi32>
    %286 = arith.cmpi eq, %30, %285 : vector<24x128xi32>
    %cst_142 = arith.constant 1.000000e+00 : f32
    %cst_143 = arith.constant 0.000000e+00 : f32
    %287 = vector.broadcast %cst_142 : f32 to vector<24x128xf32>
    %288 = vector.broadcast %cst_143 : f32 to vector<24x128xf32>
    %289 = arith.select %286, %287, %288 : vector<24x128xi1>, vector<24x128xf32>
    %290 = arith.truncf %289 : vector<24x128xf32> to vector<24x128xbf16>
    %cst_144 = arith.constant dense<0.000000e+00> : vector<24x128xf32>
    %291 = tpu.matmul %290, %29, %cst_144 {dimension_numbers = #tpu.dot_dimension_numbers<[1], [0], [0], [1], [0, 0, 1, 1], [], []>} : vector<24x128xbf16>, vector<128x128xbf16>, vector<24x128xf32> -> vector<24x128xf32>
    %c2688 = arith.constant 2688 : index
    %c0_145 = arith.constant 0 : index
    %292 = vector.load %arg2[%c2688, %c0_145] : memref<3200x128xbf16, #tpu.memory_space<vmem>>, vector<128x128xbf16>
    %293 = arith.truncf %291 : vector<24x128xf32> to vector<24x128xbf16>
    %cst_146 = arith.constant dense<0.000000e+00> : vector<24x128xf32>
    %294 = tpu.matmul %293, %292, %cst_146 {dimension_numbers = #tpu.dot_dimension_numbers<[1], [0], [0], [1], [0, 0, 1, 1], [], []>} : vector<24x128xbf16>, vector<128x128xbf16>, vector<24x128xf32> -> vector<24x128xf32>
    %295 = arith.addf %283, %294 : vector<24x128xf32>
    %c528 = arith.constant 528 : index
    %c0_147 = arith.constant 0 : index
    %296 = vector.load %arg3[%c528, %c0_147] : memref<600x1xi32, #tpu.memory_space<vmem>>, vector<24x1xi32>
    %297 = vector.broadcast %296 : vector<24x1xi32> to vector<24x128xi32>
    %298 = arith.cmpi eq, %30, %297 : vector<24x128xi32>
    %cst_148 = arith.constant 1.000000e+00 : f32
    %cst_149 = arith.constant 0.000000e+00 : f32
    %299 = vector.broadcast %cst_148 : f32 to vector<24x128xf32>
    %300 = vector.broadcast %cst_149 : f32 to vector<24x128xf32>
    %301 = arith.select %298, %299, %300 : vector<24x128xi1>, vector<24x128xf32>
    %302 = arith.truncf %301 : vector<24x128xf32> to vector<24x128xbf16>
    %cst_150 = arith.constant dense<0.000000e+00> : vector<24x128xf32>
    %303 = tpu.matmul %302, %29, %cst_150 {dimension_numbers = #tpu.dot_dimension_numbers<[1], [0], [0], [1], [0, 0, 1, 1], [], []>} : vector<24x128xbf16>, vector<128x128xbf16>, vector<24x128xf32> -> vector<24x128xf32>
    %c2816 = arith.constant 2816 : index
    %c0_151 = arith.constant 0 : index
    %304 = vector.load %arg2[%c2816, %c0_151] : memref<3200x128xbf16, #tpu.memory_space<vmem>>, vector<128x128xbf16>
    %305 = arith.truncf %303 : vector<24x128xf32> to vector<24x128xbf16>
    %cst_152 = arith.constant dense<0.000000e+00> : vector<24x128xf32>
    %306 = tpu.matmul %305, %304, %cst_152 {dimension_numbers = #tpu.dot_dimension_numbers<[1], [0], [0], [1], [0, 0, 1, 1], [], []>} : vector<24x128xbf16>, vector<128x128xbf16>, vector<24x128xf32> -> vector<24x128xf32>
    %307 = arith.addf %295, %306 : vector<24x128xf32>
    %c552 = arith.constant 552 : index
    %c0_153 = arith.constant 0 : index
    %308 = vector.load %arg3[%c552, %c0_153] : memref<600x1xi32, #tpu.memory_space<vmem>>, vector<24x1xi32>
    %309 = vector.broadcast %308 : vector<24x1xi32> to vector<24x128xi32>
    %310 = arith.cmpi eq, %30, %309 : vector<24x128xi32>
    %cst_154 = arith.constant 1.000000e+00 : f32
    %cst_155 = arith.constant 0.000000e+00 : f32
    %311 = vector.broadcast %cst_154 : f32 to vector<24x128xf32>
    %312 = vector.broadcast %cst_155 : f32 to vector<24x128xf32>
    %313 = arith.select %310, %311, %312 : vector<24x128xi1>, vector<24x128xf32>
    %314 = arith.truncf %313 : vector<24x128xf32> to vector<24x128xbf16>
    %cst_156 = arith.constant dense<0.000000e+00> : vector<24x128xf32>
    %315 = tpu.matmul %314, %29, %cst_156 {dimension_numbers = #tpu.dot_dimension_numbers<[1], [0], [0], [1], [0, 0, 1, 1], [], []>} : vector<24x128xbf16>, vector<128x128xbf16>, vector<24x128xf32> -> vector<24x128xf32>
    %c2944 = arith.constant 2944 : index
    %c0_157 = arith.constant 0 : index
    %316 = vector.load %arg2[%c2944, %c0_157] : memref<3200x128xbf16, #tpu.memory_space<vmem>>, vector<128x128xbf16>
    %317 = arith.truncf %315 : vector<24x128xf32> to vector<24x128xbf16>
    %cst_158 = arith.constant dense<0.000000e+00> : vector<24x128xf32>
    %318 = tpu.matmul %317, %316, %cst_158 {dimension_numbers = #tpu.dot_dimension_numbers<[1], [0], [0], [1], [0, 0, 1, 1], [], []>} : vector<24x128xbf16>, vector<128x128xbf16>, vector<24x128xf32> -> vector<24x128xf32>
    %319 = arith.addf %307, %318 : vector<24x128xf32>
    %c576 = arith.constant 576 : index
    %c0_159 = arith.constant 0 : index
    %320 = vector.load %arg3[%c576, %c0_159] : memref<600x1xi32, #tpu.memory_space<vmem>>, vector<24x1xi32>
    %321 = vector.broadcast %320 : vector<24x1xi32> to vector<24x128xi32>
    %322 = arith.cmpi eq, %30, %321 : vector<24x128xi32>
    %cst_160 = arith.constant 1.000000e+00 : f32
    %cst_161 = arith.constant 0.000000e+00 : f32
    %323 = vector.broadcast %cst_160 : f32 to vector<24x128xf32>
    %324 = vector.broadcast %cst_161 : f32 to vector<24x128xf32>
    %325 = arith.select %322, %323, %324 : vector<24x128xi1>, vector<24x128xf32>
    %326 = arith.truncf %325 : vector<24x128xf32> to vector<24x128xbf16>
    %cst_162 = arith.constant dense<0.000000e+00> : vector<24x128xf32>
    %327 = tpu.matmul %326, %29, %cst_162 {dimension_numbers = #tpu.dot_dimension_numbers<[1], [0], [0], [1], [0, 0, 1, 1], [], []>} : vector<24x128xbf16>, vector<128x128xbf16>, vector<24x128xf32> -> vector<24x128xf32>
    %c3072 = arith.constant 3072 : index
    %c0_163 = arith.constant 0 : index
    %328 = vector.load %arg2[%c3072, %c0_163] : memref<3200x128xbf16, #tpu.memory_space<vmem>>, vector<128x128xbf16>
    %329 = arith.truncf %327 : vector<24x128xf32> to vector<24x128xbf16>
    %cst_164 = arith.constant dense<0.000000e+00> : vector<24x128xf32>
    %330 = tpu.matmul %329, %328, %cst_164 {dimension_numbers = #tpu.dot_dimension_numbers<[1], [0], [0], [1], [0, 0, 1, 1], [], []>} : vector<24x128xbf16>, vector<128x128xbf16>, vector<24x128xf32> -> vector<24x128xf32>
    %331 = arith.addf %319, %330 : vector<24x128xf32>
    %332 = tpu.iota {dimensions = array<i32: 0>} : vector<24x128xi32>
    %c18_i32 = arith.constant 18 : i32
    %333 = vector.broadcast %c18_i32 : i32 to vector<24x128xi32>
    %334 = arith.cmpi slt, %332, %333 : vector<24x128xi32>
    %cst_165 = arith.constant 1.000000e+00 : f32
    %cst_166 = arith.constant 0.000000e+00 : f32
    %335 = vector.broadcast %cst_165 : f32 to vector<24x128xf32>
    %336 = vector.broadcast %cst_166 : f32 to vector<24x128xf32>
    %337 = arith.select %334, %335, %336 : vector<24x128xi1>, vector<24x128xf32>
    %cst_167 = arith.constant dense<0.000000e+00> : vector<128xf32>
    %338 = vector.multi_reduction <add>, %331, %cst_167 [0] : vector<24x128xf32> to vector<128xf32>
    %339 = vector.shape_cast %338 : vector<128xf32> to vector<1x128xf32>
    %cst_168 = arith.constant 0.055555556 : f32
    %340 = vector.broadcast %cst_168 : f32 to vector<1x128xf32>
    %341 = arith.mulf %339, %340 : vector<1x128xf32>
    %342 = vector.broadcast %341 : vector<1x128xf32> to vector<24x128xf32>
    %343 = arith.subf %331, %342 : vector<24x128xf32>
    %344 = arith.mulf %343, %343 : vector<24x128xf32>
    %345 = arith.mulf %344, %337 : vector<24x128xf32>
    %cst_169 = arith.constant dense<0.000000e+00> : vector<128xf32>
    %346 = vector.multi_reduction <add>, %345, %cst_169 [0] : vector<24x128xf32> to vector<128xf32>
    %347 = vector.shape_cast %346 : vector<128xf32> to vector<1x128xf32>
    %cst_170 = arith.constant 0.055555556 : f32
    %348 = vector.broadcast %cst_170 : f32 to vector<1x128xf32>
    %349 = arith.mulf %347, %348 : vector<1x128xf32>
    %cst_171 = arith.constant 9.99999974E-6 : f32
    %350 = vector.broadcast %cst_171 : f32 to vector<1x128xf32>
    %351 = arith.addf %349, %350 : vector<1x128xf32>
    %352 = math.rsqrt %351 : vector<1x128xf32>
    %353 = vector.broadcast %352 : vector<1x128xf32> to vector<24x128xf32>
    %354 = arith.mulf %343, %353 : vector<24x128xf32>
    %cst_172 = arith.constant 0.000000e+00 : f32
    %355 = vector.broadcast %cst_172 : f32 to vector<24x128xf32>
    %356 = arith.maximumf %354, %355 : vector<24x128xf32>
    %c0_173 = arith.constant 0 : index
    %c0_174 = arith.constant 0 : index
    %357 = vector.load %arg4[%c0_173, %c0_174] : memref<24x128xf32, #tpu.memory_space<vmem>>, vector<24x128xf32>
    tpu.vector_store %arg4[%c0_173, %c0_174], %356 {strides = array<i32>} : memref<24x128xf32, #tpu.memory_space<vmem>>, vector<24x128xf32>,
    return
  }
}

</mosaic_0001>

<bundles_post_ra>
// kernel: encoder_forward.1
= control target key start
LH: loop header
LB: loop body
LE: loop exit
PB: predicated region body
PF: predicated region fallthrough
CT: control target
= control target key end

     0   :  { %v7296_v1 = vmov 0   ;;  %s8908_s1 = inlined_call_operand.vmem [shape: bf16[128,128], index: 1, kind: input, shape index: {}]   ;;  %s8909_s0 = inlined_call_operand.vmem [shape: bf16[128,128], index: 0, kind: input, shape index: {}]   ;;  %s8910_s3 = inlined_call_operand.vmem [shape: s32[600,1], index: 3, kind: input, shape index: {}]   ;;  %s8911_s2 = inlined_call_operand.vmem [shape: bf16[3200,128], index: 2, kind: input, shape index: {}]   ;;  %s8912_s4 = inlined_call_operand.vmem [shape: f32[24,128], index: 4, kind: output, shape index: {}]  }
   0x1   :  { %v7076_v0 = vld [vmem:[%s8908_s1] sm:$0xff]   ;;  %7074 = vset.pattern.permute.xlu0 %v7296_v1  ;;  %7075 = vset.pattern.permute.xlu1 %v7296_v1  ;;  %v7077_v2 = vld [vmem:[%s8908_s1 + $0x8] sm:$0xff]   ;;  %v7078_v3 = vld [vmem:[%s8908_s1 + $0x10] sm:$0xff]  }
   0x2   :  { %5943 = vmatprep.subr.bf16.mxu0 %v7076_v0  ;;  %v7079_v4 = vld [vmem:[%s8908_s1 + $0x18] sm:$0xff]   ;;  %v7084_v5 = vld [vmem:[%s8909_s0] sm:$0xff]   ;;  %v7081_v7 = vld [vmem:[%s8908_s1 + $0x28] sm:$0xff]  }
   0x3   :  { %5944 = vmatpush3.bf16.msra.mxu0 %v7076_v0  ;;  %5959 = vmatprep.mubr.bf16.mxu0 %v7084_v5  ;;  %v7080_v6 = vld [vmem:[%s8908_s1 + $0x20] sm:$0xff]   ;;  %v530_v8 = vld [vmem:[%s8910_s3 + $0x18] sm:$0xff]  ;;  %v532_v9 = vld [vmem:[%s8910_s3 + $0x28] sm:$0xff] }
   0x4   :  { %5945 = vmatprep.subr.bf16.mxu0 %v7077_v2  ;;  %534 = vperm.xlu0 %7074, %v530_v8   ;;  %v531_v10 = vld [vmem:[%s8910_s3 + $0x20] sm:$0xff]  ;;  %v7082_v12 = vld [vmem:[%s8908_s1 + $0x30] sm:$0xff]   ;;  %v445_v13 = vld [vmem:[%s8910_s3 + $0x8] sm:$0xff] }
   0x5   :  { %540 = vperm.xlu1 %7075, %v532_v9   ;;  %v444_v11 = vld [vmem:[%s8910_s3] sm:$0xff]  ;;  %v446_v14 = vld [vmem:[%s8910_s3 + $0x10] sm:$0xff]  ;;  %v7083_v15 = vld [vmem:[%s8908_s1 + $0x38] sm:$0xff]  }
   0x6   :  { %v808_v16 = vld [vmem:[%s8910_s3 + $0x30] sm:$0xff]  ;;  %v809_v17 = vld [vmem:[%s8910_s3 + $0x38] sm:$0xff]  ;;  %v7085_v18 = vld [vmem:[%s8909_s0 + $0x8] sm:$0xff]  }
   0x7   :  { %5946 = vmatpush3.bf16.msra.mxu0 %v7077_v2  ;;  %v810_v19 = vld [vmem:[%s8910_s3 + $0x40] sm:$0xff]  ;;  %v993_v20 = vld [vmem:[%s8910_s3 + $0x48] sm:$0xff]  ;;  %v7086_v21 = vld [vmem:[%s8909_s0 + $0x10] sm:$0xff]  }
   0x8   :  { %5947 = vmatprep.subr.bf16.mxu0 %v7078_v3  ;;  %537 = vperm.xlu0 %7074, %v531_v10   ;;  %v994_v22 = vld [vmem:[%s8910_s3 + $0x50] sm:$0xff]  ;;  %v995_v23 = vld [vmem:[%s8910_s3 + $0x58] sm:$0xff]  ;;  %v1178_v25 = vld [vmem:[%s8910_s3 + $0x60] sm:$0xff] }
   0x9   :  { %448 = vperm.xlu1 %7075, %v444_v11   ;;  %v7087_v24 = vld [vmem:[%s8909_s0 + $0x18] sm:$0xff]   ;;  %v1179_v26 = vld [vmem:[%s8910_s3 + $0x68] sm:$0xff]  ;;  %v7088_v27 = vld [vmem:[%s8909_s0 + $0x20] sm:$0xff]  }
   0xa   :  { %v1180_v28 = vld [vmem:[%s8910_s3 + $0x70] sm:$0xff]  ;;  %v1363_v29 = vld [vmem:[%s8910_s3 + $0x78] sm:$0xff]  ;;  %v7089_v30 = vld [vmem:[%s8909_s0 + $0x28] sm:$0xff]  }
   0xb   :  { %5948 = vmatpush3.bf16.msra.mxu0 %v7078_v3  ;;  %v1364_v31 = vld [vmem:[%s8910_s3 + $0x80] sm:$0xff]  ;;  %v1365_v32 = vld [vmem:[%s8910_s3 + $0x88] sm:$0xff]  ;;  %v7090_v33 = vld [vmem:[%s8909_s0 + $0x30] sm:$0xff]  }
   0xc   :  { %5949 = vmatprep.subr.bf16.mxu0 %v7079_v4  ;;  %451 = vperm.xlu0 %7074, %v445_v13   ;;  %v1548_v34 = vld [vmem:[%s8910_s3 + $0x90] sm:$0xff]  ;;  %v1549_v35 = vld [vmem:[%s8910_s3 + $0x98] sm:$0xff]  ;;  %v1550_v37 = vld [vmem:[%s8910_s3 + $0xa0] sm:$0xff] }
   0xd   :  { %454 = vperm.xlu1 %7075, %v446_v14   ;;  %v7091_v36 = vld [vmem:[%s8909_s0 + $0x38] sm:$0xff]   ;;  %v1733_v38 = vld [vmem:[%s8910_s3 + $0xa8] sm:$0xff]  ;;  %v1734_v39 = vld [vmem:[%s8910_s3 + $0xb0] sm:$0xff] }
   0xe   :  { %v1735_v40 = vld [vmem:[%s8910_s3 + $0xb8] sm:$0xff]  ;;  %v1918_v41 = vld [vmem:[%s8910_s3 + $0xc0] sm:$0xff]  ;;  %v1919_v42 = vld [vmem:[%s8910_s3 + $0xc8] sm:$0xff] }
   0xf   :  { %5950 = vmatpush3.bf16.msra.mxu0 %v7079_v4  ;;  %v1920_v43 = vld [vmem:[%s8910_s3 + $0xd0] sm:$0xff]  ;;  %v2103_v44 = vld [vmem:[%s8910_s3 + $0xd8] sm:$0xff]  ;;  %v2104_v45 = vld [vmem:[%s8910_s3 + $0xe0] sm:$0xff] }
  0x10   :  { %5951 = vmatprep.subr.bf16.mxu0 %v7080_v6  ;;  %812 = vperm.xlu0 %7074, %v808_v16   ;;  %v2105_v46 = vld [vmem:[%s8910_s3 + $0xe8] sm:$0xff]  ;;  %v2288_v47 = vld [vmem:[%s8910_s3 + $0xf0] sm:$0xff]  ;;  %v2289_v48 = vld [vmem:[%s8910_s3 + $0xf8] sm:$0xff] }
  0x11   :  { %815 = vperm.xlu1 %7075, %v809_v17   ;;  %v2290_v49 = vld [vmem:[%s8910_s3 + $0x100] sm:$0xff]  ;;  %v2473_v50 = vld [vmem:[%s8910_s3 + $0x108] sm:$0xff]  ;;  %v2474_v51 = vld [vmem:[%s8910_s3 + $0x110] sm:$0xff] }
  0x12   :  { %v2475_v52 = vld [vmem:[%s8910_s3 + $0x118] sm:$0xff]  ;;  %v2658_v53 = vld [vmem:[%s8910_s3 + $0x120] sm:$0xff]  ;;  %v2659_v54 = vld [vmem:[%s8910_s3 + $0x128] sm:$0xff] }
  0x13   :  { %5952 = vmatpush3.bf16.msra.mxu0 %v7080_v6  ;;  %v2660_v55 = vld [vmem:[%s8910_s3 + $0x130] sm:$0xff]  ;;  %v2843_v56 = vld [vmem:[%s8910_s3 + $0x138] sm:$0xff]  ;;  %v2844_v57 = vld [vmem:[%s8910_s3 + $0x140] sm:$0xff] }
  0x14   :  { %5953 = vmatprep.subr.bf16.mxu0 %v7081_v7  ;;  %818 = vperm.xlu0 %7074, %v810_v19   ;;  %v2845_v58 = vld [vmem:[%s8910_s3 + $0x148] sm:$0xff]  ;;  %v3028_v59 = vld [vmem:[%s8910_s3 + $0x150] sm:$0xff]  ;;  %v3029_v60 = vld [vmem:[%s8910_s3 + $0x158] sm:$0xff] }
  0x15   :  { %997 = vperm.xlu1 %7075, %v993_v20   ;;  %v3030_v61 = vld [vmem:[%s8910_s3 + $0x160] sm:$0xff]  ;;  %v3213_v62 = vld [vmem:[%s8910_s3 + $0x168] sm:$0xff]  ;;  %v3214_v63 = vld [vmem:[%s8910_s3 + $0x170] sm:$0xff] }
  0x16   :  { %v3215_v0 = vld [vmem:[%s8910_s3 + $0x178] sm:$0xff]  ;;  %v3398_v1 = vld [vmem:[%s8910_s3 + $0x180] sm:$0xff]  ;;  %v3399_v2 = vld [vmem:[%s8910_s3 + $0x188] sm:$0xff] }
  0x17   :  { %5954 = vmatpush3.bf16.msra.mxu0 %v7081_v7  ;;  %v3400_v3 = vld [vmem:[%s8910_s3 + $0x190] sm:$0xff]  ;;  %v3583_v4 = vld [vmem:[%s8910_s3 + $0x198] sm:$0xff]  ;;  %v3584_v5 = vld [vmem:[%s8910_s3 + $0x1a0] sm:$0xff] }
  0x18   :  { %5955 = vmatprep.subr.bf16.mxu0 %v7082_v12  ;;  %1000 = vperm.xlu0 %7074, %v994_v22   ;;  %v3585_v6 = vld [vmem:[%s8910_s3 + $0x1a8] sm:$0xff]  ;;  %v3768_v7 = vld [vmem:[%s8910_s3 + $0x1b0] sm:$0xff]  ;;  %v3769_v8 = vld [vmem:[%s8910_s3 + $0x1b8] sm:$0xff] }
  0x19   :  { %1003 = vperm.xlu1 %7075, %v995_v23   ;;  %v3770_v9 = vld [vmem:[%s8910_s3 + $0x1c0] sm:$0xff]  ;;  %v3953_v10 = vld [vmem:[%s8910_s3 + $0x1c8] sm:$0xff]  ;;  %v3954_v11 = vld [vmem:[%s8910_s3 + $0x1d0] sm:$0xff] }
  0x1a   :  { %v4138_v13 = vld [vmem:[%s8910_s3 + $0x1e0] sm:$0xff]  ;;  %v4139_v14 = vld [vmem:[%s8910_s3 + $0x1e8] sm:$0xff]  ;;  %v4323_v16 = vld [vmem:[%s8910_s3 + $0x1f8] sm:$0xff] }
  0x1b   :  { %5956 = vmatpush3.bf16.msra.mxu0 %v7082_v12  ;;  %v3955_v12 = vld [vmem:[%s8910_s3 + $0x1d8] sm:$0xff]  ;;  %v4324_v17 = vld [vmem:[%s8910_s3 + $0x200] sm:$0xff]  ;;  %v4508_v19 = vld [vmem:[%s8910_s3 + $0x210] sm:$0xff] }
  0x1c   :  { %5957 = vmatprep.subr.bf16.mxu0 %v7083_v15  ;;  %1182 = vperm.xlu0 %7074, %v1178_v25   ;;  %v4509_v20 = vld [vmem:[%s8910_s3 + $0x218] sm:$0xff]  ;;  %v4693_v22 = vld [vmem:[%s8910_s3 + $0x228] sm:$0xff]  ;;  %v4694_v23 = vld [vmem:[%s8910_s3 + $0x230] sm:$0xff] }
  0x1d   :  { %1185 = vperm.xlu1 %7075, %v1179_v26   ;;  %v4878_v25 = vld [vmem:[%s8910_s3 + $0x240] sm:$0xff]  ;;  %v4879_v26 = vld [vmem:[%s8910_s3 + $0x248] sm:$0xff] }
  0x1f   :  { %5958 = vmatpush3.bf16.msra.mxu0 %v7083_v15  ;;  %v4140_v15 = vld [vmem:[%s8910_s3 + $0x1f0] sm:$0xff] }
  0x20   :  { %1188 = vperm.xlu0 %7074, %v1180_v28  }
  0x21   :  { %1367 = vperm.xlu1 %7075, %v1363_v29  }
  0x22   :  { %5960 = vmatmul.mubr.bf16.vlgmr.msra.gmra.mrb[0].mxu0 %v7085_v18  ;;  %v4325_v18 = vld [vmem:[%s8910_s3 + $0x208] sm:$0xff] }
  0x23   :  { %5963 = vmatprep.mubr.bf16.mxu0 %v7086_v21  ;;  %v4510_v21 = vld [vmem:[%s8910_s3 + $0x220] sm:$0xff] }
  0x24   :  { %1370 = vperm.xlu0 %7074, %v1364_v31  }
  0x25   :  { %1373 = vperm.xlu1 %7075, %v1365_v32  }
  0x28   :  { %1552 = vperm.xlu0 %7074, %v1548_v34  }
  0x29   :  { %1555 = vperm.xlu1 %7075, %v1549_v35  }
  0x2a   :  { %5964 = vmatmul.mubr.bf16.gmra.mrb[4].mxu0 %v7087_v24  ;;  %v4695_v24 = vld [vmem:[%s8910_s3 + $0x238] sm:$0xff] }
  0x2b   :  { %5967 = vmatprep.mubr.bf16.mxu0 %v7088_v27  ;;  %v4880_v27 = vld [vmem:[%s8910_s3 + $0x250] sm:$0xff] }
  0x2c   :  { %1558 = vperm.xlu0 %7074, %v1550_v37  }
  0x2d   :  { %1737 = vperm.xlu1 %7075, %v1733_v38   ;;  %v243_v38 = vlaneseq }
  0x30   :  { %1740 = vperm.xlu0 %7074, %v1734_v39  }
  0x31   :  { %1743 = vperm.xlu1 %7075, %v1735_v40  }
  0x32   :  { %5968 = vmatmul.mubr.bf16.gmra.mrb[8].mxu0 %v7089_v30 }
  0x33   :  { %5971 = vmatprep.mubr.bf16.mxu0 %v7090_v33 }
  0x34   :  { %1922 = vperm.xlu0 %7074, %v1918_v41  }
  0x35   :  { %1925 = vperm.xlu1 %7075, %v1919_v42   ;;  %v7598_v42 = vand.u32 127, %v243_v38 }
  0x38   :  { %1928 = vperm.xlu0 %7074, %v1920_v43  }
  0x39   :  { %2107 = vperm.xlu1 %7075, %v2103_v44  }
  0x3a   :  { %5972 = vmatmul.mubr.bf16.gmra.mrb[12].mxu0 %v7091_v36 }
  0x3c   :  { %2110 = vperm.xlu0 %7074, %v2104_v45  }
  0x3d   :  { %2113 = vperm.xlu1 %7075, %v2105_v46  }
  0x40   :  { %2292 = vperm.xlu0 %7074, %v2288_v47  }
  0x41   :  { %2295 = vperm.xlu1 %7075, %v2289_v48  }
  0x44   :  { %2298 = vperm.xlu0 %7074, %v2290_v49  }
  0x45   :  { %2477 = vperm.xlu1 %7075, %v2473_v50  }
  0x48   :  { %2480 = vperm.xlu0 %7074, %v2474_v51  }
  0x49   :  { %2483 = vperm.xlu1 %7075, %v2475_v52  }
  0x4c   :  { %2662 = vperm.xlu0 %7074, %v2658_v53  }
  0x4d   :  { %2665 = vperm.xlu1 %7075, %v2659_v54  }
  0x50   :  { %2668 = vperm.xlu0 %7074, %v2660_v55   ;;  %v7297_v55 = vmov 1.0|1.0  }
  0x51   :  { %2847 = vperm.xlu1 %7075, %v2843_v56  }
  0x54   :  { %2850 = vperm.xlu0 %7074, %v2844_v57  }
  0x55   :  { %2853 = vperm.xlu1 %7075, %v2845_v58  }
  0x58   :  { %3032 = vperm.xlu0 %7074, %v3028_v59  }
  0x59   :  { %3035 = vperm.xlu1 %7075, %v3029_v60  }
  0x5c   :  { %3038 = vperm.xlu0 %7074, %v3030_v61  }
  0x5d   :  { %3217 = vperm.xlu1 %7075, %v3213_v62  }
  0x60   :  { %3220 = vperm.xlu0 %7074, %v3214_v63  }
  0x61   :  { %3223 = vperm.xlu1 %7075, %v3215_v0  }
  0x64   :  { %3402 = vperm.xlu0 %7074, %v3398_v1  }
  0x65   :  { %3405 = vperm.xlu1 %7075, %v3399_v2  }
  0x68   :  { %3408 = vperm.xlu0 %7074, %v3400_v3  }
  0x69   :  { %3587 = vperm.xlu1 %7075, %v3583_v4  }
  0x6c   :  { %3590 = vperm.xlu0 %7074, %v3584_v5  }
  0x6d   :  { %3593 = vperm.xlu1 %7075, %v3585_v6  }
  0x70   :  { %3772 = vperm.xlu0 %7074, %v3768_v7  }
  0x71   :  { %3775 = vperm.xlu1 %7075, %v3769_v8  }
  0x74   :  { %3778 = vperm.xlu0 %7074, %v3770_v9  }
  0x75   :  { %3957 = vperm.xlu1 %7075, %v3953_v10  }
  0x78   :  { %3960 = vperm.xlu0 %7074, %v3954_v11  }
  0x79   :  { %3963 = vperm.xlu1 %7075, %v3955_v12  }
  0x7c   :  { %4142 = vperm.xlu0 %7074, %v4138_v13  }
  0x7d   :  { %4145 = vperm.xlu1 %7075, %v4139_v14  }
  0x80   :  { %4148 = vperm.xlu0 %7074, %v4140_v15  }
  0x81   :  { %4327 = vperm.xlu1 %7075, %v4323_v16  }
  0x83   :  { %v535_v36 = vpop.permute.xlu0 %534 }
  0x84   :  { %4330 = vperm.xlu0 %7074, %v4324_v17   ;;  %vm542_vm0 = vcmp.eq.s32.totalorder %v7598_v42, %v535_v36  ;;  %v7602_v48 = vpop.permute.xlu1 %540 }
  0x85   :  { %4333 = vperm.xlu1 %7075, %v4325_v18   ;;  %vm544_vm7 = vcmp.eq.s32.totalorder %v7598_v42, %v7602_v48 }
  0x86   :  { %vm5133_vm9 = vmpackc.low %vm544_vm7, %vm544_vm7 }
  0x87   :  { %v538_v45 = vpop.permute.xlu0 %537 }
  0x88   :  { %4512 = vperm.xlu0 %7074, %v4508_v19   ;;  %vm543_vm1 = vcmp.eq.s32.totalorder %v7598_v42, %v538_v45  ;;  %v449_v56 = vpop.permute.xlu1 %448 }
  0x89   :  { %4515 = vperm.xlu1 %7075, %v4509_v20   ;;  %vm5131_vm2 = vmpackc.low %vm543_vm1, %vm542_vm0  ;;  %vm456_vm4 = vcmp.eq.s32.totalorder %v7598_v42, %v449_v56 }
  0x8a   :  { %6011 = vmatprep.mubr.msk.bf16.mxu0 %vm5131_vm2, %v7297_v55 }
  0x8b   :  { %v452_v57 = vpop.permute.xlu0 %451 }
  0x8c   :  { %4518 = vperm.xlu0 %7074, %v4510_v21   ;;  %vm457_vm3 = vcmp.eq.s32.totalorder %v7598_v42, %v452_v57 }
  0x8d   :  { %4697 = vperm.xlu1 %7075, %v4693_v22   ;;  %vm5127_vm5 = vmpackc.low %vm457_vm3, %vm456_vm4 }
  0x8e   :  { %5991 = vmatprep.mubr.msk.bf16.mxu1 %vm5127_vm5, %v7297_v55 }
  0x90   :  { %4700 = vperm.xlu0 %7074, %v4694_v23  }
  0x91   :  { %4703 = vperm.xlu1 %7075, %v4695_v24  }
  0x94   :  { %4882 = vperm.xlu0 %7074, %v4878_v25  }
  0x95   :  { %4885 = vperm.xlu1 %7075, %v4879_v26  }
  0x98   :  { %4888 = vperm.xlu0 %7074, %v4880_v27  }
  0xf5   :  { %v5961_v28 = vpop.f32.mrb[0].mxu0 }
  0xf6   :  { %v180_v29 = vpop.f32.mrb[1].mxu0 }
  0xf7   :  { %v5962_v30 = vpop.f32.mrb[2].mxu0 }
  0xf8   :  { %v183_v31 = vpop.f32.mrb[3].mxu0 }
  0xf9   :  { %v292_v32 = vadd.f32 %v183_v31, %v180_v29 }
  0xfb   :  { %v293_v33 = vadd.f32 %v5961_v28, %v292_v32 }
  0xfd   :  { %v5965_v34 = vpop.f32.mrb[4].mxu0  ;;  %v294_v35 = vadd.f32 %v5962_v30, %v293_v33 }
  0xfe   :  { %v196_v37 = vpop.f32.mrb[5].mxu0 }
  0xff   :  { %v295_v39 = vadd.f32 %v294_v35, %v196_v37  ;;  %v5966_v40 = vpop.f32.mrb[6].mxu0 }
 0x100   :  { %v199_v41 = vpop.f32.mrb[7].mxu0 }
 0x101   :  { %v296_v43 = vadd.f32 %v295_v39, %v199_v41 }
 0x103   :  { %v297_v44 = vadd.f32 %v5965_v34, %v296_v43 }
 0x105   :  { %v5969_v46 = vpop.f32.mrb[8].mxu0  ;;  %v298_v47 = vadd.f32 %v5966_v40, %v297_v44 }
 0x106   :  { %v212_v49 = vpop.f32.mrb[9].mxu0 }
 0x107   :  { %v299_v50 = vadd.f32 %v298_v47, %v212_v49  ;;  %v5970_v51 = vpop.f32.mrb[10].mxu0 }
 0x108   :  { %v215_v52 = vpop.f32.mrb[11].mxu0 }
 0x109   :  { %v300_v53 = vadd.f32 %v299_v50, %v215_v52 }
 0x10b   :  { %v301_v54 = vadd.f32 %v5969_v46, %v300_v53 }
 0x10d   :  { %v5973_v58 = vpop.f32.mrb[12].mxu0  ;;  %v302_v59 = vadd.f32 %v5970_v51, %v301_v54 }
 0x10e   :  { %v228_v60 = vpop.f32.mrb[13].mxu0 }
 0x10f   :  { %v303_v61 = vadd.f32 %v302_v59, %v228_v60  ;;  %v5974_v62 = vpop.f32.mrb[14].mxu0 }
 0x110   :  { %v231_v63 = vpop.f32.mrb[15].mxu0 }
 0x111   :  { %v304_v0 = vadd.f32 %v303_v61, %v231_v63 }
 0x113   :  { %v305_v1 = vadd.f32 %v5973_v58, %v304_v0 }
 0x115   :  { %v306_v2 = vadd.f32 %v5974_v62, %v305_v1 }
 0x117   :  { %v307_v3 = vrot.slane %v306_v2, 4 }
 0x119   :  { %v308_v4 = vadd.f32 %v307_v3, %v306_v2 }
 0x11b   :  { %v309_v5 = vrot.slane %v308_v4, 2 }
 0x11d   :  { %v310_v6 = vadd.f32 %v309_v5, %v308_v4 }
 0x11f   :  { %v311_v7 = vrot.slane %v310_v6, 1 }
 0x121   :  { %v312_v8 = vadd.f32 %v311_v7, %v310_v6 }
 0x123   :  { %v313_v9 = vmul.f32 0.010204081, %v312_v8 }
 0x125   :  { %v7608_v10 = vsub.f32 %v180_v29, %v313_v9  ;;  %v7610_v11 = vsub.f32 %v183_v31, %v313_v9  ;;  %v7612_v12 = vsub.f32 %v5961_v28, %v313_v9  ;;  %v7614_v13 = vsub.f32 %v5962_v30, %v313_v9 }
 0x126   :  { %v7616_v14 = vsub.f32 %v196_v37, %v313_v9  ;;  %v7618_v15 = vsub.f32 %v199_v41, %v313_v9  ;;  %v7620_v16 = vsub.f32 %v5965_v34, %v313_v9  ;;  %v7622_v17 = vsub.f32 %v5966_v40, %v313_v9 }
 0x127   :  { %v7624_v18 = vsub.f32 %v212_v49, %v313_v9  ;;  %v7626_v19 = vsub.f32 %v215_v52, %v313_v9  ;;  %v7628_v20 = vsub.f32 %v5969_v46, %v313_v9  ;;  %v7630_v21 = vsub.f32 %v5970_v51, %v313_v9 }
 0x128   :  { %v7632_v22 = vsub.f32 %v228_v60, %v313_v9  ;;  %v7634_v23 = vsub.f32 %v231_v63, %v313_v9  ;;  %v7636_v24 = vsub.f32 %v5973_v58, %v313_v9  ;;  %v7638_v25 = vsub.f32 %v5974_v62, %v313_v9 }
 0x129   :  { %v330_v26 = vmul.f32 %v7608_v10, %v7608_v10  ;;  %v331_v27 = vmul.f32 %v7610_v11, %v7610_v11  ;;  %v332_v28 = vmul.f32 %v7612_v12, %v7612_v12  ;;  %v333_v30 = vmul.f32 %v7614_v13, %v7614_v13 }
 0x12a   :  { %v334_v32 = vmul.f32 %v7616_v14, %v7616_v14  ;;  %v7651_v34 = vshrl.u32 %v243_v38, 7  ;;  %v335_v35 = vmul.f32 %v7618_v15, %v7618_v15  ;;  %v336_v37 = vmul.f32 %v7620_v16, %v7620_v16 }
 0x12b   :  { %v362_v29 = vadd.f32 %v331_v27, %v330_v26  ;;  %v337_v41 = vmul.f32 %v7622_v17, %v7622_v17  ;;  %v338_v44 = vmul.f32 %v7624_v18, %v7624_v18  ;;  %v339_v38 = vmul.f32 %v7626_v19, %v7626_v19 }
 0x12c   :  { %v256_v40 = vadd.s32 96, %v7651_v34  ;;  %v340_v47 = vmul.f32 %v7628_v20, %v7628_v20  ;;  %v342_v49 = vmul.f32 %v7632_v22, %v7632_v22  ;;  %v7298_v51 = vmov 0.0  }
 0x12d   :  { %v363_v31 = vadd.f32 %v362_v29, %v332_v28  ;;  %v341_v53 = vmul.f32 %v7630_v21, %v7630_v21  ;;  %v343_v54 = vmul.f32 %v7634_v23, %v7634_v23  ;;  %v344_v57 = vmul.f32 %v7636_v24, %v7636_v24 }
 0x12e   :  { %vm272_vm6 = vcmp.lt.s32.totalorder %v256_v40, 98  ;;  %v345_v60 = vmul.f32 %v7638_v25, %v7638_v25 }
 0x12f   :  { %v364_v33 = vadd.f32 %v363_v31, %v333_v30  ;;  %v288_v52 = vsel %vm272_vm6, 1.0, %v7298_v51  ;;  %v359_v61 = vmul.f32 0.0, %v343_v54  ;;  %v360_v63 = vmul.f32 0.0, %v344_v57 }
 0x130   :  { %v358_v58 = vmul.f32 %v342_v49, %v288_v52  ;;  %v361_v1 = vmul.f32 0.0, %v345_v60 }
 0x131   :  { %v365_v36 = vadd.f32 %v364_v33, %v334_v32 }
 0x133   :  { %v366_v39 = vadd.f32 %v365_v36, %v335_v35 }
 0x135   :  { %v367_v43 = vadd.f32 %v366_v39, %v336_v37 }
 0x137   :  { %v368_v45 = vadd.f32 %v367_v43, %v337_v41 }
 0x139   :  { %v369_v46 = vadd.f32 %v368_v45, %v338_v44 }
 0x13b   :  { %v370_v50 = vadd.f32 %v369_v46, %v339_v38 }
 0x13d   :  { %v371_v56 = vadd.f32 %v370_v50, %v340_v47 }
 0x13f   :  { %v372_v59 = vadd.f32 %v371_v56, %v341_v53 }
 0x141   :  { %v373_v62 = vadd.f32 %v372_v59, %v358_v58 }
 0x143   :  { %v374_v0 = vadd.f32 %v373_v62, %v359_v61 }
 0x145   :  { %v375_v2 = vadd.f32 %v374_v0, %v360_v63  ;;  %v813_v63 = vpop.permute.xlu0 %812 }
 0x146   :  { %vm820_vm10 = vcmp.eq.s32.totalorder %v7598_v42, %v813_v63  ;;  %v7108_v63 = vld [vmem:[%s8911_s2 + $0x80] sm:$0xff]  }
 0x147   :  { %v376_v3 = vadd.f32 %v375_v2, %v361_v1 }
 0x149   :  { %v377_v4 = vrot.slane %v376_v3, 4  ;;  %v819_v48 = vpop.permute.xlu0 %818 }
 0x14a   :  { %vm822_vm14 = vcmp.eq.s32.totalorder %v7598_v42, %v819_v48 }
 0x14b   :  { %v378_v5 = vadd.f32 %v377_v4, %v376_v3  ;;  %vm5153_vm1 = vmpackc.low %vm822_vm14, %vm822_vm14 }
 0x14d   :  { %v379_v6 = vrot.slane %v378_v5, 2  ;;  %v1001_v1 = vpop.permute.xlu0 %1000 }
 0x14e   :  { %vm1006_vm15 = vcmp.eq.s32.totalorder %v7598_v42, %v1001_v1 }
 0x14f   :  { %v380_v7 = vadd.f32 %v379_v6, %v378_v5  ;;  %v7092_v6 = vld [vmem:[%s8911_s2 + $0x40] sm:$0xff]  }
 0x151   :  { %v381_v8 = vrot.slane %v380_v7, 1  ;;  %v1183_v4 = vpop.permute.xlu0 %1182 }
 0x152   :  { %vm1190_vm4 = vcmp.eq.s32.totalorder %v7598_v42, %v1183_v4  ;;  %v7109_v4 = vld [vmem:[%s8911_s2 + $0x88] sm:$0xff]  }
 0x153   :  { %v382_v9 = vadd.f32 %v381_v8, %v380_v7  ;;  %v7093_v7 = vld [vmem:[%s8911_s2 + $0x48] sm:$0xff]   ;;  %v7094_v8 = vld [vmem:[%s8911_s2 + $0x50] sm:$0xff]  }
 0x155   :  { %v383_v26 = vmul.f32 0.010204081, %v382_v9  ;;  %v7095_v9 = vld [vmem:[%s8911_s2 + $0x58] sm:$0xff]  }
 0x157   :  { %v384_v27 = vadd.f32 1e-05, %v383_v26  ;;  %v7096_v26 = vld [vmem:[%s8911_s2 + $0x60] sm:$0xff]  }
 0x159   :  { %7292 = vrsqrt.f32 %v384_v27  ;;  %v7097_v27 = vld [vmem:[%s8911_s2 + $0x68] sm:$0xff]  }
 0x163   :  { %v7293_v28 = vpop.eup %7292 }
 0x164   :  { %v386_v29 = vmul.f32 %v7293_v28, %v7608_v10  ;;  %v387_v30 = vmul.f32 %v7293_v28, %v7610_v11  ;;  %v388_v31 = vmul.f32 %v7293_v28, %v7612_v12  ;;  %v389_v32 = vmul.f32 %v7293_v28, %v7614_v13 }
 0x165   :  { %v390_v33 = vmul.f32 %v7293_v28, %v7616_v14  ;;  %v391_v35 = vmul.f32 %v7293_v28, %v7618_v15  ;;  %v392_v36 = vmul.f32 %v7293_v28, %v7620_v16  ;;  %v393_v37 = vmul.f32 %v7293_v28, %v7622_v17 }
 0x166   :  { %v394_v39 = vmul.f32 %v7293_v28, %v7624_v18  ;;  %v395_v40 = vmul.f32 %v7293_v28, %v7626_v19  ;;  %v396_v10 = vmul.f32 %v7293_v28, %v7628_v20  ;;  %v397_v11 = vmul.f32 %v7293_v28, %v7630_v21 }
 0x167   :  { %v398_v12 = vmul.f32 %v7293_v28, %v7632_v22  ;;  %v399_v13 = vmul.f32 %v7293_v28, %v7634_v23  ;;  %v400_v14 = vmul.f32 %v7293_v28, %v7636_v24  ;;  %v401_v15 = vmul.f32 %v7293_v28, %v7638_v25  ;;  %v7098_v28 = vld [vmem:[%s8911_s2 + $0x70] sm:$0xff]  }
 0x168   :  { %v402_v41 = vmax.f32 %v386_v29, 0.0  ;;  %v403_v16 = vmax.f32 %v387_v30, 0.0  ;;  %v404_v43 = vmax.f32 %v388_v31, 0.0  ;;  %v405_v17 = vmax.f32 %v389_v32, 0.0  ;;  %v7099_v29 = vld [vmem:[%s8911_s2 + $0x78] sm:$0xff]   ;;  %v1189_v30 = vpop.permute.xlu0 %1188  ;;  %v7833_v31 = vld [vmem:[%s8911_s2] sm:$0xff]  }
 0x169   :  { %v406_v44 = vmax.f32 %v390_v33, 0.0  ;;  %v407_v18 = vmax.f32 %v391_v35, 0.0  ;;  %v408_v45 = vmax.f32 %v392_v36, 0.0  ;;  %v409_v19 = vmax.f32 %v393_v37, 0.0 }
 0x16a   :  { %v410_v38 = vmax.f32 %v394_v39, 0.0  ;;  %v411_v20 = vmax.f32 %v395_v40, 0.0  ;;  %v412_v46 = vmax.f32 %v396_v10, 0.0  ;;  %v413_v21 = vmax.f32 %v397_v11, 0.0 }
 0x16b   :  { %v414_v47 = vmax.f32 %v398_v12, 0.0  ;;  %v415_v22 = vmax.f32 %v399_v13, 0.0  ;;  %v416_v49 = vmax.f32 %v400_v14, 0.0  ;;  %v417_v23 = vmax.f32 %v401_v15, 0.0 }
 0x16c   :  { %v7693_v50 = vpack.c.bf16 %v403_v16, %v402_v41  ;;  %v7695_v24 = vpack.c.bf16 %v405_v17, %v404_v43  ;;  %v7697_v25 = vpack.c.bf16 %v407_v18, %v406_v44  ;;  %v7699_v53 = vpack.c.bf16 %v409_v19, %v408_v45  ;;  %v1371_v32 = vpop.permute.xlu0 %1370 }
 0x16d   :  { %v430_v54 = vmul.f32 %v414_v47, %v288_v52  ;;  %v431_v56 = vmul.f32 0.0, %v415_v22  ;;  %v432_v57 = vmul.f32 0.0, %v416_v49  ;;  %v433_v58 = vmul.f32 0.0, %v417_v23  ;;  %v455_v52 = vpop.permute.xlu1 %454  ;;  %v7102_v22 = vld [vmem:[%s8911_s2 + $0x10] sm:$0xff]   ;;  %v7103_v49 = vld [vmem:[%s8911_s2 + $0x18] sm:$0xff]   ;;  %v7104_v23 = vld [vmem:[%s8911_s2 + $0x20] sm:$0xff]  }
 0x16e   :  { %v7701_v59 = vpack.c.bf16 %v411_v20, %v410_v38  ;;  %v7703_v60 = vpack.c.bf16 %v413_v21, %v412_v46  ;;  %5975 = vmatprep.subr.bf16.mxu1 %v7693_v50  ;;  %5995 = vmatprep.subr.bf16.mxu0 %v7693_v50  ;;  %vm458_vm8 = vcmp.eq.s32.totalorder %v7598_v42, %v455_v52  ;;  %v7101_v46 = vld [vmem:[%s8911_s2 + $0x8] sm:$0xff]  }
 0x16f   :  { %v7707_v61 = vpack.c.bf16 %v431_v56, %v430_v54  ;;  %v7709_v62 = vpack.c.bf16 %v433_v58, %v432_v57  ;;  %5976 = vmatpush3.bf16.msra.mxu1 %v7693_v50  ;;  %5996 = vmatpush3.bf16.msra.mxu0 %v7693_v50  ;;  %vm5129_vm11 = vmpackc.low %vm458_vm8, %vm458_vm8  ;;  %vm1192_vm8 = vcmp.eq.s32.totalorder %v7598_v42, %v1189_v30  ;;  %v7105_v54 = vld [vmem:[%s8911_s2 + $0x28] sm:$0xff]   ;;  %v7106_v56 = vld [vmem:[%s8911_s2 + $0x30] sm:$0xff]  }
 0x170   :  { %5977 = vmatprep.subr.bf16.mxu1 %v7695_v24  ;;  %5997 = vmatprep.subr.bf16.mxu0 %v7695_v24  ;;  %v1553_v36 = vpop.permute.xlu0 %1552  ;;  %v7107_v57 = vld [vmem:[%s8911_s2 + $0x38] sm:$0xff]  }
 0x171   :  { %v816_v0 = vpop.permute.xlu1 %815 }
 0x172   :  { %vm821_vm12 = vcmp.eq.s32.totalorder %v7598_v42, %v816_v0 }
 0x173   :  { %5978 = vmatpush3.bf16.msra.mxu1 %v7695_v24  ;;  %5998 = vmatpush3.bf16.msra.mxu0 %v7695_v24  ;;  %vm5151_vm13 = vmpackc.low %vm821_vm12, %vm820_vm10  ;;  %vm1376_vm10 = vcmp.eq.s32.totalorder %v7598_v42, %v1371_v32 }
 0x174   :  { %5979 = vmatprep.subr.bf16.mxu1 %v7697_v25  ;;  %5999 = vmatprep.subr.bf16.mxu0 %v7697_v25  ;;  %v1559_v39 = vpop.permute.xlu0 %1558 }
 0x175   :  { %v998_v2 = vpop.permute.xlu1 %997 }
 0x176   :  { %vm1005_vm0 = vcmp.eq.s32.totalorder %v7598_v42, %v998_v2 }
 0x177   :  { %5980 = vmatpush3.bf16.msra.mxu1 %v7697_v25  ;;  %6000 = vmatpush3.bf16.msra.mxu0 %v7697_v25  ;;  %vm5163_vm2 = vmpackc.low %vm1006_vm15, %vm1005_vm0  ;;  %vm1560_vm15 = vcmp.eq.s32.totalorder %v7598_v42, %v1553_v36 }
 0x178   :  { %5981 = vmatprep.subr.bf16.mxu1 %v7699_v53  ;;  %6001 = vmatprep.subr.bf16.mxu0 %v7699_v53  ;;  %v1741_v40 = vpop.permute.xlu0 %1740 }
 0x179   :  { %v1004_v3 = vpop.permute.xlu1 %1003 }
 0x17a   :  { %vm1007_vm3 = vcmp.eq.s32.totalorder %v7598_v42, %v1004_v3 }
 0x17b   :  { %5982 = vmatpush3.bf16.msra.mxu1 %v7699_v53  ;;  %6002 = vmatpush3.bf16.msra.mxu0 %v7699_v53  ;;  %vm5165_vm6 = vmpackc.low %vm1007_vm3, %vm1007_vm3 }
 0x17c   :  { %5983 = vmatprep.subr.bf16.mxu1 %v7701_v59  ;;  %6003 = vmatprep.subr.bf16.mxu0 %v7701_v59  ;;  %v1923_v12 = vpop.permute.xlu0 %1922 }
 0x17d   :  { %v1186_v5 = vpop.permute.xlu1 %1185 }
 0x17e   :  { %vm1191_vm5 = vcmp.eq.s32.totalorder %v7598_v42, %v1186_v5 }
 0x17f   :  { %5984 = vmatpush3.bf16.msra.mxu1 %v7701_v59  ;;  %6004 = vmatpush3.bf16.msra.mxu0 %v7701_v59  ;;  %vm5175_vm7 = vmpackc.low %vm1191_vm5, %vm1190_vm4  ;;  %vm1746_vm4 = vcmp.eq.s32.totalorder %v7598_v42, %v1741_v40 }
 0x180   :  { %5985 = vmatprep.subr.bf16.mxu1 %v7703_v60  ;;  %6005 = vmatprep.subr.bf16.mxu0 %v7703_v60  ;;  %v1929_v14 = vpop.permute.xlu0 %1928 }
 0x181   :  { %v1368_v33 = vpop.permute.xlu1 %1367 }
 0x183   :  { %5986 = vmatpush3.bf16.msra.mxu1 %v7703_v60  ;;  %6006 = vmatpush3.bf16.msra.mxu0 %v7703_v60 }
 0x184   :  { %5987 = vmatprep.subr.bf16.mxu1 %v7707_v61  ;;  %6007 = vmatprep.subr.bf16.mxu0 %v7707_v61  ;;  %v2111_v21 = vpop.permute.xlu0 %2110 }
 0x185   :  { %v1374_v35 = vpop.permute.xlu1 %1373 }
 0x187   :  { %5988 = vmatpush3.bf16.msra.mxu1 %v7707_v61  ;;  %6008 = vmatpush3.bf16.msra.mxu0 %v7707_v61 }
 0x188   :  { %5989 = vmatprep.subr.bf16.mxu1 %v7709_v62  ;;  %6009 = vmatprep.subr.bf16.mxu0 %v7709_v62  ;;  %v2293_v5 = vpop.permute.xlu0 %2292 }
 0x189   :  { %v1556_v37 = vpop.permute.xlu1 %1555 }
 0x18a   :  { %vm1561_vm0 = vcmp.eq.s32.totalorder %v7598_v42, %v1556_v37 }
 0x18b   :  { %5990 = vmatpush3.bf16.msra.mxu1 %v7709_v62  ;;  %6010 = vmatpush3.bf16.msra.mxu0 %v7709_v62 }
 0x18c   :  { %6055 = vmatprep.subr.bf16.mxu0 %v7693_v50  ;;  %6015 = vmatprep.subr.bf16.mxu1 %v7092_v6 }
 0x18d   :  { %v1738_v10 = vpop.permute.xlu1 %1737 }
 0x18e   :  { %5992 = vmatmul.mubr.msk.bf16.vlgmr.msra.gmra.mrb[0].mxu1 %vm5129_vm11, %v7297_v55  ;;  %6012 = vmatmul.mubr.msk.bf16.vlgmr.msra.gmra.mrb[16].mxu0 %vm5133_vm9, %v7297_v55  ;;  %vm5177_vm9 = vmpackc.low %vm1192_vm8, %vm1192_vm8  ;;  %vm1375_vm11 = vcmp.eq.s32.totalorder %v7598_v42, %v1368_v33  ;;  %vm1745_vm5 = vcmp.eq.s32.totalorder %v7598_v42, %v1738_v10  ;;  %v2299_v33 = vpop.permute.xlu0 %2298 }
 0x18f   :  { %6056 = vmatpush3.bf16.msra.mxu0 %v7693_v50  ;;  %6071 = vmatprep.mubr.msk.bf16.mxu0 %vm5151_vm13, %v7297_v55  ;;  %vm5187_vm12 = vmpackc.low %vm1376_vm10, %vm1375_vm11  ;;  %vm1377_vm13 = vcmp.eq.s32.totalorder %v7598_v42, %v1374_v35 }
 0x190   :  { %6057 = vmatprep.subr.bf16.mxu0 %v7695_v24  ;;  %6016 = vmatpush3.bf16.msra.mxu1 %v7092_v6  ;;  %vm5189_vm14 = vmpackc.low %vm1377_vm13, %vm1377_vm13  ;;  %vm2116_vm13 = vcmp.eq.s32.totalorder %v7598_v42, %v2111_v21 }
 0x191   :  { %6017 = vmatprep.subr.bf16.mxu1 %v7093_v7  ;;  %v1744_v11 = vpop.permute.xlu1 %1743 }
 0x192   :  { %v2481_v40 = vpop.permute.xlu0 %2480 }
 0x193   :  { %6058 = vmatpush3.bf16.msra.mxu0 %v7695_v24 }
 0x194   :  { %6059 = vmatprep.subr.bf16.mxu0 %v7697_v25  ;;  %6018 = vmatpush3.bf16.msra.mxu1 %v7093_v7  ;;  %v7110_v7 = vld [vmem:[%s8911_s2 + $0x90] sm:$0xff]  }
 0x195   :  { %6019 = vmatprep.subr.bf16.mxu1 %v7094_v8  ;;  %v1926_v13 = vpop.permute.xlu1 %1925 }
 0x196   :  { %vm1931_vm10 = vcmp.eq.s32.totalorder %v7598_v42, %v1926_v13  ;;  %v7120_v13 = vld [vmem:[%s8911_s2 + $0xe0] sm:$0xff]  }
 0x197   :  { %6060 = vmatpush3.bf16.msra.mxu0 %v7697_v25 }
 0x198   :  { %6061 = vmatprep.subr.bf16.mxu0 %v7699_v53  ;;  %6020 = vmatpush3.bf16.msra.mxu1 %v7094_v8  ;;  %v7111_v8 = vld [vmem:[%s8911_s2 + $0x98] sm:$0xff]  }
 0x199   :  { %6021 = vmatprep.subr.bf16.mxu1 %v7095_v9  ;;  %v2108_v47 = vpop.permute.xlu1 %2107 }
 0x19b   :  { %6062 = vmatpush3.bf16.msra.mxu0 %v7699_v53 }
 0x19c   :  { %6063 = vmatprep.subr.bf16.mxu0 %v7701_v59  ;;  %6022 = vmatpush3.bf16.msra.mxu1 %v7095_v9  ;;  %v7112_v9 = vld [vmem:[%s8911_s2 + $0xa0] sm:$0xff]  }
 0x19d   :  { %6023 = vmatprep.subr.bf16.mxu1 %v7096_v26  ;;  %v2114_v48 = vpop.permute.xlu1 %2113 }
 0x19f   :  { %6064 = vmatpush3.bf16.msra.mxu0 %v7701_v59 }
 0x1a0   :  { %6065 = vmatprep.subr.bf16.mxu0 %v7703_v60  ;;  %6024 = vmatpush3.bf16.msra.mxu1 %v7096_v26  ;;  %v7113_v26 = vld [vmem:[%s8911_s2 + $0xa8] sm:$0xff]  }
 0x1a1   :  { %6025 = vmatprep.subr.bf16.mxu1 %v7097_v27  ;;  %v2296_v6 = vpop.permute.xlu1 %2295 }
 0x1a3   :  { %6066 = vmatpush3.bf16.msra.mxu0 %v7703_v60 }
 0x1a4   :  { %6067 = vmatprep.subr.bf16.mxu0 %v7707_v61  ;;  %6026 = vmatpush3.bf16.msra.mxu1 %v7097_v27  ;;  %v7114_v27 = vld [vmem:[%s8911_s2 + $0xb0] sm:$0xff]  }
 0x1a5   :  { %6027 = vmatprep.subr.bf16.mxu1 %v7098_v28  ;;  %v2478_v10 = vpop.permute.xlu1 %2477 }
 0x1a7   :  { %6068 = vmatpush3.bf16.msra.mxu0 %v7707_v61 }
 0x1a8   :  { %6069 = vmatprep.subr.bf16.mxu0 %v7709_v62  ;;  %6028 = vmatpush3.bf16.msra.mxu1 %v7098_v28  ;;  %v7115_v28 = vld [vmem:[%s8911_s2 + $0xb8] sm:$0xff]  }
 0x1a9   :  { %6029 = vmatprep.subr.bf16.mxu1 %v7099_v29 }
 0x1ab   :  { %6070 = vmatpush3.bf16.msra.mxu0 %v7709_v62 }
 0x1ac   :  { %6095 = vmatprep.subr.bf16.mxu0 %v7693_v50  ;;  %6030 = vmatpush3.bf16.msra.mxu1 %v7099_v29 }
 0x1ad   :  { %6035 = vmatprep.subr.bf16.mxu1 %v7833_v31 }
 0x1ae   :  { %6072 = vmatmul.mubr.msk.bf16.vlgmr.msra.gmra.mrb[20].mxu0 %vm5153_vm1, %v7297_v55  ;;  %vm5199_vm1 = vmpackc.low %vm1561_vm0, %vm1560_vm15 }
 0x1af   :  { %6096 = vmatpush3.bf16.msra.mxu0 %v7693_v50  ;;  %6111 = vmatprep.mubr.msk.bf16.mxu0 %vm5163_vm2, %v7297_v55  ;;  %vm1562_vm2 = vcmp.eq.s32.totalorder %v7598_v42, %v1559_v39  ;;  %v7117_v39 = vld [vmem:[%s8911_s2 + $0xc8] sm:$0xff]  }
 0x1b0   :  { %6097 = vmatprep.subr.bf16.mxu0 %v7695_v24  ;;  %vm5201_vm3 = vmpackc.low %vm1562_vm2, %vm1562_vm2  ;;  %vm2300_vm2 = vcmp.eq.s32.totalorder %v7598_v42, %v2293_v5 }
 0x1b3   :  { %6098 = vmatpush3.bf16.msra.mxu0 %v7695_v24 }
 0x1b4   :  { %6099 = vmatprep.subr.bf16.mxu0 %v7697_v25 }
 0x1b7   :  { %6100 = vmatpush3.bf16.msra.mxu0 %v7697_v25 }
 0x1b8   :  { %6101 = vmatprep.subr.bf16.mxu0 %v7699_v53 }
 0x1bb   :  { %6102 = vmatpush3.bf16.msra.mxu0 %v7699_v53 }
 0x1bc   :  { %6103 = vmatprep.subr.bf16.mxu0 %v7701_v59 }
 0x1bf   :  { %6104 = vmatpush3.bf16.msra.mxu0 %v7701_v59 }
 0x1c0   :  { %6105 = vmatprep.subr.bf16.mxu0 %v7703_v60 }
 0x1c3   :  { %6106 = vmatpush3.bf16.msra.mxu0 %v7703_v60 }
 0x1c4   :  { %6107 = vmatprep.subr.bf16.mxu0 %v7707_v61 }
 0x1c7   :  { %6108 = vmatpush3.bf16.msra.mxu0 %v7707_v61 }
 0x1c8   :  { %6109 = vmatprep.subr.bf16.mxu0 %v7709_v62 }
 0x1cb   :  { %6110 = vmatpush3.bf16.msra.mxu0 %v7709_v62 }
 0x1cc   :  { %6135 = vmatprep.subr.bf16.mxu0 %v7693_v50 }
 0x1ce   :  { %6112 = vmatmul.mubr.msk.bf16.vlgmr.msra.gmra.mrb[24].mxu0 %vm5165_vm6, %v7297_v55  ;;  %vm5211_vm6 = vmpackc.low %vm1746_vm4, %vm1745_vm5 }
 0x1cf   :  { %6136 = vmatpush3.bf16.msra.mxu0 %v7693_v50  ;;  %6151 = vmatprep.mubr.msk.bf16.mxu0 %vm5175_vm7, %v7297_v55  ;;  %vm1747_vm7 = vcmp.eq.s32.totalorder %v7598_v42, %v1744_v11  ;;  %v7118_v11 = vld [vmem:[%s8911_s2 + $0xd0] sm:$0xff]  }
 0x1d0   :  { %6137 = vmatprep.subr.bf16.mxu0 %v7695_v24  ;;  %vm5213_vm8 = vmpackc.low %vm1747_vm7, %vm1747_vm7  ;;  %vm2486_vm7 = vcmp.eq.s32.totalorder %v7598_v42, %v2481_v40 }
 0x1d3   :  { %6138 = vmatpush3.bf16.msra.mxu0 %v7695_v24 }
 0x1d4   :  { %6139 = vmatprep.subr.bf16.mxu0 %v7697_v25 }
 0x1d7   :  { %6140 = vmatpush3.bf16.msra.mxu0 %v7697_v25 }
 0x1d8   :  { %6141 = vmatprep.subr.bf16.mxu0 %v7699_v53 }
 0x1db   :  { %6142 = vmatpush3.bf16.msra.mxu0 %v7699_v53 }
 0x1dc   :  { %6143 = vmatprep.subr.bf16.mxu0 %v7701_v59 }
 0x1df   :  { %6144 = vmatpush3.bf16.msra.mxu0 %v7701_v59 }
 0x1e0   :  { %6145 = vmatprep.subr.bf16.mxu0 %v7703_v60 }
 0x1e3   :  { %6146 = vmatpush3.bf16.msra.mxu0 %v7703_v60 }
 0x1e4   :  { %6147 = vmatprep.subr.bf16.mxu0 %v7707_v61 }
 0x1e7   :  { %6148 = vmatpush3.bf16.msra.mxu0 %v7707_v61 }
 0x1e8   :  { %6149 = vmatprep.subr.bf16.mxu0 %v7709_v62 }
 0x1eb   :  { %6150 = vmatpush3.bf16.msra.mxu0 %v7709_v62 }
 0x1ec   :  { %6175 = vmatprep.subr.bf16.mxu0 %v7693_v50 }
 0x1ee   :  { %6152 = vmatmul.mubr.msk.bf16.vlgmr.msra.gmra.mrb[28].mxu0 %vm5177_vm9, %v7297_v55  ;;  %vm1930_vm9 = vcmp.eq.s32.totalorder %v7598_v42, %v1923_v12  ;;  %v7119_v12 = vld [vmem:[%s8911_s2 + $0xd8] sm:$0xff]  }
 0x1ef   :  { %6176 = vmatpush3.bf16.msra.mxu0 %v7693_v50  ;;  %6191 = vmatprep.mubr.msk.bf16.mxu0 %vm5187_vm12, %v7297_v55  ;;  %vm5223_vm11 = vmpackc.low %vm1931_vm10, %vm1930_vm9  ;;  %vm1932_vm12 = vcmp.eq.s32.totalorder %v7598_v42, %v1929_v14  ;;  %v7121_v14 = vld [vmem:[%s8911_s2 + $0xe8] sm:$0xff]  }
 0x1f0   :  { %6177 = vmatprep.subr.bf16.mxu0 %v7695_v24  ;;  %vm5225_vm15 = vmpackc.low %vm1932_vm12, %vm1932_vm12 }
 0x1f3   :  { %6178 = vmatpush3.bf16.msra.mxu0 %v7695_v24 }
 0x1f4   :  { %6179 = vmatprep.subr.bf16.mxu0 %v7697_v25 }
 0x1f7   :  { %6180 = vmatpush3.bf16.msra.mxu0 %v7697_v25 }
 0x1f8   :  { %6181 = vmatprep.subr.bf16.mxu0 %v7699_v53 }
 0x1fb   :  { %6182 = vmatpush3.bf16.msra.mxu0 %v7699_v53 }
 0x1fc   :  { %6183 = vmatprep.subr.bf16.mxu0 %v7701_v59 }
 0x1ff   :  { %6184 = vmatpush3.bf16.msra.mxu0 %v7701_v59 }
 0x200   :  { %6185 = vmatprep.subr.bf16.mxu0 %v7703_v60 }
 0x203   :  { %6186 = vmatpush3.bf16.msra.mxu0 %v7703_v60 }
 0x204   :  { %6187 = vmatprep.subr.bf16.mxu0 %v7707_v61 }
 0x207   :  { %6188 = vmatpush3.bf16.msra.mxu0 %v7707_v61 }
 0x208   :  { %6189 = vmatprep.subr.bf16.mxu0 %v7709_v62 }
 0x20b   :  { %6190 = vmatpush3.bf16.msra.mxu0 %v7709_v62 }
 0x20c   :  { %6215 = vmatprep.subr.bf16.mxu0 %v7693_v50 }
 0x20e   :  { %6192 = vmatmul.mubr.msk.bf16.vlgmr.msra.gmra.mrb[32].mxu0 %vm5189_vm14, %v7297_v55  ;;  %vm2115_vm14 = vcmp.eq.s32.totalorder %v7598_v42, %v2108_v47  ;;  %v7126_v47 = vld [vmem:[%s8911_s2 + $0x110] sm:$0xff]  }
 0x20f   :  { %6216 = vmatpush3.bf16.msra.mxu0 %v7693_v50  ;;  %6231 = vmatprep.mubr.msk.bf16.mxu0 %vm5199_vm1, %v7297_v55  ;;  %vm5235_vm0 = vmpackc.low %vm2116_vm13, %vm2115_vm14  ;;  %vm2117_vm1 = vcmp.eq.s32.totalorder %v7598_v42, %v2114_v48 }
 0x210   :  { %6217 = vmatprep.subr.bf16.mxu0 %v7695_v24  ;;  %vm5237_vm4 = vmpackc.low %vm2117_vm1, %vm2117_vm1 }
 0x213   :  { %6218 = vmatpush3.bf16.msra.mxu0 %v7695_v24 }
 0x214   :  { %6219 = vmatprep.subr.bf16.mxu0 %v7697_v25 }
 0x217   :  { %6220 = vmatpush3.bf16.msra.mxu0 %v7697_v25 }
 0x218   :  { %6221 = vmatprep.subr.bf16.mxu0 %v7699_v53 }
 0x21b   :  { %6222 = vmatpush3.bf16.msra.mxu0 %v7699_v53 }
 0x21c   :  { %6223 = vmatprep.subr.bf16.mxu0 %v7701_v59 }
 0x21f   :  { %6224 = vmatpush3.bf16.msra.mxu0 %v7701_v59 }
 0x220   :  { %6225 = vmatprep.subr.bf16.mxu0 %v7703_v60 }
 0x223   :  { %6226 = vmatpush3.bf16.msra.mxu0 %v7703_v60 }
 0x224   :  { %6227 = vmatprep.subr.bf16.mxu0 %v7707_v61 }
 0x227   :  { %6228 = vmatpush3.bf16.msra.mxu0 %v7707_v61 }
 0x228   :  { %6229 = vmatprep.subr.bf16.mxu0 %v7709_v62 }
 0x22b   :  { %6230 = vmatpush3.bf16.msra.mxu0 %v7709_v62 }
 0x22c   :  { %6255 = vmatprep.subr.bf16.mxu0 %v7693_v50 }
 0x22e   :  { %6232 = vmatmul.mubr.msk.bf16.vlgmr.msra.gmra.mrb[36].mxu0 %vm5201_vm3, %v7297_v55  ;;  %vm2301_vm3 = vcmp.eq.s32.totalorder %v7598_v42, %v2296_v6  ;;  %v7134_v6 = vld [vmem:[%s8911_s2 + $0x150] sm:$0xff]  }
 0x22f   :  { %6256 = vmatpush3.bf16.msra.mxu0 %v7693_v50  ;;  %6271 = vmatprep.mubr.msk.bf16.mxu0 %vm5211_vm6, %v7297_v55  ;;  %vm5247_vm5 = vmpackc.low %vm2301_vm3, %vm2300_vm2  ;;  %vm2302_vm6 = vcmp.eq.s32.totalorder %v7598_v42, %v2299_v33 }
 0x230   :  { %6257 = vmatprep.subr.bf16.mxu0 %v7695_v24  ;;  %vm5249_vm9 = vmpackc.low %vm2302_vm6, %vm2302_vm6 }
 0x233   :  { %6258 = vmatpush3.bf16.msra.mxu0 %v7695_v24 }
 0x234   :  { %6259 = vmatprep.subr.bf16.mxu0 %v7697_v25 }
 0x237   :  { %6260 = vmatpush3.bf16.msra.mxu0 %v7697_v25 }
 0x238   :  { %6261 = vmatprep.subr.bf16.mxu0 %v7699_v53 }
 0x23b   :  { %6262 = vmatpush3.bf16.msra.mxu0 %v7699_v53 }
 0x23c   :  { %6263 = vmatprep.subr.bf16.mxu0 %v7701_v59 }
 0x23f   :  { %6264 = vmatpush3.bf16.msra.mxu0 %v7701_v59 }
 0x240   :  { %6265 = vmatprep.subr.bf16.mxu0 %v7703_v60 }
 0x243   :  { %6266 = vmatpush3.bf16.msra.mxu0 %v7703_v60 }
 0x244   :  { %6267 = vmatprep.subr.bf16.mxu0 %v7707_v61 }
 0x247   :  { %6268 = vmatpush3.bf16.msra.mxu0 %v7707_v61 }
 0x248   :  { %6269 = vmatprep.subr.bf16.mxu0 %v7709_v62 }
 0x24b   :  { %6270 = vmatpush3.bf16.msra.mxu0 %v7709_v62 }
 0x24c   :  { %6295 = vmatprep.subr.bf16.mxu0 %v7693_v50 }
 0x24e   :  { %6272 = vmatmul.mubr.msk.bf16.vlgmr.msra.gmra.mrb[40].mxu0 %vm5213_vm8, %v7297_v55  ;;  %vm2485_vm8 = vcmp.eq.s32.totalorder %v7598_v42, %v2478_v10  ;;  %v7142_v10 = vld [vmem:[%s8911_s2 + $0x190] sm:$0xff]  }
 0x24f   :  { %6296 = vmatpush3.bf16.msra.mxu0 %v7693_v50  ;;  %6311 = vmatprep.mubr.msk.bf16.mxu0 %vm5223_vm11, %v7297_v55  ;;  %vm5259_vm10 = vmpackc.low %vm2486_vm7, %vm2485_vm8 }
 0x250   :  { %6297 = vmatprep.subr.bf16.mxu0 %v7695_v24 }
 0x253   :  { %6298 = vmatpush3.bf16.msra.mxu0 %v7695_v24 }
 0x254   :  { %6299 = vmatprep.subr.bf16.mxu0 %v7697_v25 }
 0x257   :  { %6300 = vmatpush3.bf16.msra.mxu0 %v7697_v25 }
 0x258   :  { %6301 = vmatprep.subr.bf16.mxu0 %v7699_v53 }
 0x25b   :  { %6302 = vmatpush3.bf16.msra.mxu0 %v7699_v53 }
 0x25c   :  { %6303 = vmatprep.subr.bf16.mxu0 %v7701_v59 }
 0x25f   :  { %6304 = vmatpush3.bf16.msra.mxu0 %v7701_v59 }
 0x260   :  { %6305 = vmatprep.subr.bf16.mxu0 %v7703_v60 }
 0x261   :  { %v7916_v15 = vpop.f32.mrb[0].mxu1  ;;  %v6013_v41 = vpop.f32.mrb[16].mxu0 }
 0x262   :  { %v498_v16 = vpop.f32.mrb[1].mxu1  ;;  %v584_v43 = vpop.f32.mrb[17].mxu0  ;;  %v615_v20 = vpack.c.bf16 %v6013_v41, %v6013_v41  ;;  %v529_v3 = vpack.c.bf16 %v7916_v15, %v7916_v15  ;;  %v7122_v15 = vld [vmem:[%s8911_s2 + $0xf0] sm:$0xff]   ;;  %v7123_v41 = vld [vmem:[%s8911_s2 + $0xf8] sm:$0xff]  }
 0x263   :  { %v5994_v17 = vpop.f32.mrb[2].mxu1  ;;  %v6014_v44 = vpop.f32.mrb[18].mxu0  ;;  %6306 = vmatpush3.bf16.msra.mxu0 %v7703_v60 }
 0x264   :  { %v501_v18 = vpop.f32.mrb[3].mxu1  ;;  %v587_v45 = vpop.f32.mrb[19].mxu0  ;;  %6307 = vmatprep.subr.bf16.mxu0 %v7707_v61  ;;  %v7124_v17 = vld [vmem:[%s8911_s2 + $0x100] sm:$0xff]  }
 0x265   :  { %v528_v19 = vpack.c.bf16 %v501_v18, %v498_v16  ;;  %v614_v38 = vpack.c.bf16 %v587_v45, %v584_v43  ;;  %v2484_v18 = vpop.permute.xlu1 %2483 }
 0x266   :  { %vm2487_vm11 = vcmp.eq.s32.totalorder %v7598_v42, %v2484_v18 }
 0x267   :  { %6031 = vmatprep.mubr.bf16.mxu1 %v614_v38  ;;  %6308 = vmatpush3.bf16.msra.mxu0 %v7707_v61  ;;  %vm5261_vm14 = vmpackc.low %vm2487_vm11, %vm2487_vm11 }
 0x268   :  { %6032 = vmatmul.mubr.bf16.vlgmr.msra.gmra.mrb[4].mxu1 %v615_v20  ;;  %6309 = vmatprep.subr.bf16.mxu0 %v7709_v62  ;;  %v7125_v20 = vld [vmem:[%s8911_s2 + $0x108] sm:$0xff]  }
 0x269   :  { %6036 = vmatpush3.bf16.msra.mxu1 %v7833_v31  ;;  %6051 = vmatprep.mubr.bf16.mxu1 %v528_v19  ;;  %v7116_v31 = vld [vmem:[%s8911_s2 + $0xc0] sm:$0xff]   ;;  %v2666_v21 = vpop.permute.xlu1 %2665 }
 0x26a   :  { %6037 = vmatprep.subr.bf16.mxu1 %v7101_v46  ;;  %vm2671_vm13 = vcmp.eq.s32.totalorder %v7598_v42, %v2666_v21  ;;  %v7150_v21 = vld [vmem:[%s8911_s2 + $0x1d0] sm:$0xff]  }
 0x26b   :  { %6310 = vmatpush3.bf16.msra.mxu0 %v7709_v62 }
 0x26c   :  { %6335 = vmatprep.subr.bf16.mxu0 %v7693_v50 }
 0x26d   :  { %6038 = vmatpush3.bf16.msra.mxu1 %v7101_v46  ;;  %v2663_v46 = vpop.permute.xlu0 %2662  ;;  %v2848_v5 = vpop.permute.xlu1 %2847 }
 0x26e   :  { %6312 = vmatmul.mubr.msk.bf16.vlgmr.msra.gmra.mrb[44].mxu0 %vm5225_vm15, %v7297_v55  ;;  %6039 = vmatprep.subr.bf16.mxu1 %v7102_v22  ;;  %vm2670_vm12 = vcmp.eq.s32.totalorder %v7598_v42, %v2663_v46  ;;  %vm2855_vm2 = vcmp.eq.s32.totalorder %v7598_v42, %v2848_v5  ;;  %v7158_v5 = vld [vmem:[%s8911_s2 + $0x210] sm:$0xff]  }
 0x26f   :  { %6336 = vmatpush3.bf16.msra.mxu0 %v7693_v50  ;;  %6351 = vmatprep.mubr.msk.bf16.mxu0 %vm5235_vm0, %v7297_v55  ;;  %vm5271_vm15 = vmpackc.low %vm2671_vm13, %vm2670_vm12 }
 0x270   :  { %6337 = vmatprep.subr.bf16.mxu0 %v7695_v24 }
 0x271   :  { %6040 = vmatpush3.bf16.msra.mxu1 %v7102_v22  ;;  %v7127_v22 = vld [vmem:[%s8911_s2 + $0x118] sm:$0xff]  }
 0x272   :  { %6041 = vmatprep.subr.bf16.mxu1 %v7103_v49 }
 0x273   :  { %6338 = vmatpush3.bf16.msra.mxu0 %v7695_v24 }
 0x274   :  { %6339 = vmatprep.subr.bf16.mxu0 %v7697_v25 }
 0x275   :  { %6042 = vmatpush3.bf16.msra.mxu1 %v7103_v49  ;;  %v7128_v49 = vld [vmem:[%s8911_s2 + $0x120] sm:$0xff]  }
 0x276   :  { %6043 = vmatprep.subr.bf16.mxu1 %v7104_v23 }
 0x277   :  { %6340 = vmatpush3.bf16.msra.mxu0 %v7697_v25 }
 0x278   :  { %6341 = vmatprep.subr.bf16.mxu0 %v7699_v53 }
 0x279   :  { %6044 = vmatpush3.bf16.msra.mxu1 %v7104_v23  ;;  %v7129_v23 = vld [vmem:[%s8911_s2 + $0x128] sm:$0xff]  }
 0x27a   :  { %6045 = vmatprep.subr.bf16.mxu1 %v7105_v54 }
 0x27b   :  { %6342 = vmatpush3.bf16.msra.mxu0 %v7699_v53 }
 0x27c   :  { %6343 = vmatprep.subr.bf16.mxu0 %v7701_v59 }
 0x27d   :  { %6046 = vmatpush3.bf16.msra.mxu1 %v7105_v54  ;;  %v7130_v54 = vld [vmem:[%s8911_s2 + $0x130] sm:$0xff]  }
 0x27e   :  { %6047 = vmatprep.subr.bf16.mxu1 %v7106_v56 }
 0x27f   :  { %6344 = vmatpush3.bf16.msra.mxu0 %v7701_v59 }
 0x280   :  { %6345 = vmatprep.subr.bf16.mxu0 %v7703_v60 }
 0x281   :  { %6048 = vmatpush3.bf16.msra.mxu1 %v7106_v56  ;;  %v7961_v58 = vpop.f32.mrb[20].mxu0  ;;  %v7131_v56 = vld [vmem:[%s8911_s2 + $0x138] sm:$0xff]  }
 0x282   :  { %v862_v52 = vpop.f32.mrb[21].mxu0  ;;  %6049 = vmatprep.subr.bf16.mxu1 %v7107_v57  ;;  %v893_v37 = vpack.c.bf16 %v7961_v58, %v7961_v58 }
 0x283   :  { %v6074_v0 = vpop.f32.mrb[22].mxu0  ;;  %6346 = vmatpush3.bf16.msra.mxu0 %v7703_v60 }
 0x284   :  { %v865_v1 = vpop.f32.mrb[23].mxu0  ;;  %6347 = vmatprep.subr.bf16.mxu0 %v7707_v61  ;;  %v2669_v0 = vpop.permute.xlu0 %2668 }
 0x285   :  { %6050 = vmatpush3.bf16.msra.mxu1 %v7107_v57  ;;  %v892_v2 = vpack.c.bf16 %v865_v1, %v862_v52  ;;  %v7132_v52 = vld [vmem:[%s8911_s2 + $0x140] sm:$0xff]   ;;  %vm2672_vm0 = vcmp.eq.s32.totalorder %v7598_v42, %v2669_v0 }
 0x286   :  { %6075 = vmatprep.subr.bf16.mxu1 %v7108_v63  ;;  %vm5273_vm3 = vmpackc.low %vm2672_vm0, %vm2672_vm0 }
 0x287   :  { %6348 = vmatpush3.bf16.msra.mxu0 %v7707_v61 }
 0x288   :  { %6052 = vmatmul.mubr.bf16.vlgmr.msra.gmra.mrb[4].mxu1 %v529_v3  ;;  %6349 = vmatprep.subr.bf16.mxu0 %v7709_v62  ;;  %v7133_v3 = vld [vmem:[%s8911_s2 + $0x148] sm:$0xff]  }
 0x289   :  { %6076 = vmatpush3.bf16.msra.mxu1 %v7108_v63  ;;  %6091 = vmatprep.mubr.bf16.mxu1 %v892_v2 }
 0x28a   :  { %6077 = vmatprep.subr.bf16.mxu1 %v7109_v4 }
 0x28b   :  { %6350 = vmatpush3.bf16.msra.mxu0 %v7709_v62 }
 0x28c   :  { %6375 = vmatprep.subr.bf16.mxu0 %v7693_v50 }
 0x28d   :  { %6078 = vmatpush3.bf16.msra.mxu1 %v7109_v4  ;;  %v2851_v4 = vpop.permute.xlu0 %2850 }
 0x28e   :  { %6352 = vmatmul.mubr.msk.bf16.vlgmr.msra.gmra.mrb[48].mxu0 %vm5237_vm4, %v7297_v55  ;;  %6079 = vmatprep.subr.bf16.mxu1 %v7110_v7  ;;  %vm2856_vm1 = vcmp.eq.s32.totalorder %v7598_v42, %v2851_v4 }
 0x28f   :  { %6376 = vmatpush3.bf16.msra.mxu0 %v7693_v50  ;;  %6391 = vmatprep.mubr.msk.bf16.mxu0 %vm5247_vm5, %v7297_v55  ;;  %vm5283_vm4 = vmpackc.low %vm2856_vm1, %vm2855_vm2 }
 0x290   :  { %6377 = vmatprep.subr.bf16.mxu0 %v7695_v24 }
 0x291   :  { %6080 = vmatpush3.bf16.msra.mxu1 %v7110_v7  ;;  %v7135_v7 = vld [vmem:[%s8911_s2 + $0x158] sm:$0xff]  }
 0x292   :  { %6081 = vmatprep.subr.bf16.mxu1 %v7111_v8 }
 0x293   :  { %6378 = vmatpush3.bf16.msra.mxu0 %v7695_v24 }
 0x294   :  { %6379 = vmatprep.subr.bf16.mxu0 %v7697_v25 }
 0x295   :  { %6082 = vmatpush3.bf16.msra.mxu1 %v7111_v8  ;;  %v7136_v8 = vld [vmem:[%s8911_s2 + $0x160] sm:$0xff]  }
 0x296   :  { %6083 = vmatprep.subr.bf16.mxu1 %v7112_v9 }
 0x297   :  { %6380 = vmatpush3.bf16.msra.mxu0 %v7697_v25 }
 0x298   :  { %6381 = vmatprep.subr.bf16.mxu0 %v7699_v53 }
 0x299   :  { %6084 = vmatpush3.bf16.msra.mxu1 %v7112_v9  ;;  %v7137_v9 = vld [vmem:[%s8911_s2 + $0x168] sm:$0xff]  }
 0x29a   :  { %6085 = vmatprep.subr.bf16.mxu1 %v7113_v26 }
 0x29b   :  { %6382 = vmatpush3.bf16.msra.mxu0 %v7699_v53 }
 0x29c   :  { %6383 = vmatprep.subr.bf16.mxu0 %v7701_v59 }
 0x29d   :  { %6086 = vmatpush3.bf16.msra.mxu1 %v7113_v26  ;;  %v7138_v26 = vld [vmem:[%s8911_s2 + $0x170] sm:$0xff]  }
 0x29e   :  { %6087 = vmatprep.subr.bf16.mxu1 %v7114_v27 }
 0x29f   :  { %6384 = vmatpush3.bf16.msra.mxu0 %v7701_v59 }
 0x2a0   :  { %6385 = vmatprep.subr.bf16.mxu0 %v7703_v60 }
 0x2a1   :  { %6088 = vmatpush3.bf16.msra.mxu1 %v7114_v27  ;;  %v8010_v29 = vpop.f32.mrb[24].mxu0  ;;  %v7139_v27 = vld [vmem:[%s8911_s2 + $0x178] sm:$0xff]  }
 0x2a2   :  { %v1047_v30 = vpop.f32.mrb[25].mxu0  ;;  %6089 = vmatprep.subr.bf16.mxu1 %v7115_v28  ;;  %v1078_v38 = vpack.c.bf16 %v8010_v29, %v8010_v29 }
 0x2a3   :  { %v6114_v32 = vpop.f32.mrb[26].mxu0  ;;  %6386 = vmatpush3.bf16.msra.mxu0 %v7703_v60 }
 0x2a4   :  { %v1050_v35 = vpop.f32.mrb[27].mxu0  ;;  %6387 = vmatprep.subr.bf16.mxu0 %v7707_v61  ;;  %v2854_v32 = vpop.permute.xlu1 %2853 }
 0x2a5   :  { %6090 = vmatpush3.bf16.msra.mxu1 %v7115_v28  ;;  %v1077_v36 = vpack.c.bf16 %v1050_v35, %v1047_v30  ;;  %v7140_v30 = vld [vmem:[%s8911_s2 + $0x180] sm:$0xff]   ;;  %vm2857_vm5 = vcmp.eq.s32.totalorder %v7598_v42, %v2854_v32 }
 0x2a6   :  { %6115 = vmatprep.subr.bf16.mxu1 %v7116_v31  ;;  %vm5285_vm8 = vmpackc.low %vm2857_vm5, %vm2857_vm5 }
 0x2a7   :  { %6388 = vmatpush3.bf16.msra.mxu0 %v7707_v61 }
 0x2a8   :  { %6092 = vmatmul.mubr.bf16.vlgmr.msra.gmra.mrb[4].mxu1 %v893_v37  ;;  %6389 = vmatprep.subr.bf16.mxu0 %v7709_v62  ;;  %v7141_v37 = vld [vmem:[%s8911_s2 + $0x188] sm:$0xff]   ;;  %v3036_v40 = vpop.permute.xlu1 %3035 }
 0x2a9   :  { %6116 = vmatpush3.bf16.msra.mxu1 %v7116_v31  ;;  %6131 = vmatprep.mubr.bf16.mxu1 %v1077_v36  ;;  %vm3041_vm7 = vcmp.eq.s32.totalorder %v7598_v42, %v3036_v40  ;;  %v7166_v40 = vld [vmem:[%s8911_s2 + $0x250] sm:$0xff]  }
 0x2aa   :  { %6117 = vmatprep.subr.bf16.mxu1 %v7117_v39 }
 0x2ab   :  { %6390 = vmatpush3.bf16.msra.mxu0 %v7709_v62 }
 0x2ac   :  { %6415 = vmatprep.subr.bf16.mxu0 %v7693_v50  ;;  %v3218_v46 = vpop.permute.xlu1 %3217 }
 0x2ad   :  { %6118 = vmatpush3.bf16.msra.mxu1 %v7117_v39  ;;  %v3033_v39 = vpop.permute.xlu0 %3032  ;;  %vm3225_vm12 = vcmp.eq.s32.totalorder %v7598_v42, %v3218_v46  ;;  %v7174_v46 = vld [vmem:[%s8911_s2 + $0x290] sm:$0xff]  }
 0x2ae   :  { %6392 = vmatmul.mubr.msk.bf16.vlgmr.msra.gmra.mrb[52].mxu0 %vm5249_vm9, %v7297_v55  ;;  %6119 = vmatprep.subr.bf16.mxu1 %v7118_v11  ;;  %vm3040_vm6 = vcmp.eq.s32.totalorder %v7598_v42, %v3033_v39 }
 0x2af   :  { %6416 = vmatpush3.bf16.msra.mxu0 %v7693_v50  ;;  %6431 = vmatprep.mubr.msk.bf16.mxu0 %vm5259_vm10, %v7297_v55  ;;  %vm5295_vm9 = vmpackc.low %vm3041_vm7, %vm3040_vm6 }
 0x2b0   :  { %6417 = vmatprep.subr.bf16.mxu0 %v7695_v24 }
 0x2b1   :  { %6120 = vmatpush3.bf16.msra.mxu1 %v7118_v11  ;;  %v7143_v11 = vld [vmem:[%s8911_s2 + $0x198] sm:$0xff]  }
 0x2b2   :  { %6121 = vmatprep.subr.bf16.mxu1 %v7119_v12 }
 0x2b3   :  { %6418 = vmatpush3.bf16.msra.mxu0 %v7695_v24 }
 0x2b4   :  { %6419 = vmatprep.subr.bf16.mxu0 %v7697_v25 }
 0x2b5   :  { %6122 = vmatpush3.bf16.msra.mxu1 %v7119_v12  ;;  %v7144_v12 = vld [vmem:[%s8911_s2 + $0x1a0] sm:$0xff]  }
 0x2b6   :  { %6123 = vmatprep.subr.bf16.mxu1 %v7120_v13 }
 0x2b7   :  { %6420 = vmatpush3.bf16.msra.mxu0 %v7697_v25 }
 0x2b8   :  { %6421 = vmatprep.subr.bf16.mxu0 %v7699_v53 }
 0x2b9   :  { %6124 = vmatpush3.bf16.msra.mxu1 %v7120_v13  ;;  %v7145_v13 = vld [vmem:[%s8911_s2 + $0x1a8] sm:$0xff]  }
 0x2ba   :  { %6125 = vmatprep.subr.bf16.mxu1 %v7121_v14 }
 0x2bb   :  { %6422 = vmatpush3.bf16.msra.mxu0 %v7699_v53 }
 0x2bc   :  { %6423 = vmatprep.subr.bf16.mxu0 %v7701_v59 }
 0x2bd   :  { %6126 = vmatpush3.bf16.msra.mxu1 %v7121_v14  ;;  %v7146_v14 = vld [vmem:[%s8911_s2 + $0x1b0] sm:$0xff]  }
 0x2be   :  { %6127 = vmatprep.subr.bf16.mxu1 %v7122_v15 }
 0x2bf   :  { %6424 = vmatpush3.bf16.msra.mxu0 %v7701_v59 }
 0x2c0   :  { %6425 = vmatprep.subr.bf16.mxu0 %v7703_v60 }
 0x2c1   :  { %6128 = vmatpush3.bf16.msra.mxu1 %v7122_v15  ;;  %v8059_v16 = vpop.f32.mrb[28].mxu0  ;;  %v7147_v15 = vld [vmem:[%s8911_s2 + $0x1b8] sm:$0xff]  }
 0x2c2   :  { %v1232_v43 = vpop.f32.mrb[29].mxu0  ;;  %6129 = vmatprep.subr.bf16.mxu1 %v7123_v41  ;;  %v1263_v2 = vpack.c.bf16 %v8059_v16, %v8059_v16 }
 0x2c3   :  { %v6154_v44 = vpop.f32.mrb[30].mxu0  ;;  %6426 = vmatpush3.bf16.msra.mxu0 %v7703_v60 }
 0x2c4   :  { %v1235_v45 = vpop.f32.mrb[31].mxu0  ;;  %6427 = vmatprep.subr.bf16.mxu0 %v7707_v61  ;;  %v3039_v44 = vpop.permute.xlu0 %3038 }
 0x2c5   :  { %6130 = vmatpush3.bf16.msra.mxu1 %v7123_v41  ;;  %v1262_v19 = vpack.c.bf16 %v1235_v45, %v1232_v43  ;;  %v7148_v43 = vld [vmem:[%s8911_s2 + $0x1c0] sm:$0xff]   ;;  %vm3042_vm10 = vcmp.eq.s32.totalorder %v7598_v42, %v3039_v44 }
 0x2c6   :  { %6155 = vmatprep.subr.bf16.mxu1 %v7124_v17  ;;  %vm5297_vm13 = vmpackc.low %vm3042_vm10, %vm3042_vm10 }
 0x2c7   :  { %6428 = vmatpush3.bf16.msra.mxu0 %v7707_v61 }
 0x2c8   :  { %6132 = vmatmul.mubr.bf16.vlgmr.msra.gmra.mrb[4].mxu1 %v1078_v38  ;;  %6429 = vmatprep.subr.bf16.mxu0 %v7709_v62  ;;  %v7149_v38 = vld [vmem:[%s8911_s2 + $0x1c8] sm:$0xff]  }
 0x2c9   :  { %6156 = vmatpush3.bf16.msra.mxu1 %v7124_v17  ;;  %6171 = vmatprep.mubr.bf16.mxu1 %v1262_v19 }
 0x2ca   :  { %6157 = vmatprep.subr.bf16.mxu1 %v7125_v20 }
 0x2cb   :  { %6430 = vmatpush3.bf16.msra.mxu0 %v7709_v62 }
 0x2cc   :  { %6455 = vmatprep.subr.bf16.mxu0 %v7693_v50 }
 0x2cd   :  { %6158 = vmatpush3.bf16.msra.mxu1 %v7125_v20  ;;  %v3221_v20 = vpop.permute.xlu0 %3220 }
 0x2ce   :  { %6432 = vmatmul.mubr.msk.bf16.vlgmr.msra.gmra.mrb[56].mxu0 %vm5261_vm14, %v7297_v55  ;;  %6159 = vmatprep.subr.bf16.mxu1 %v7126_v47  ;;  %vm3226_vm11 = vcmp.eq.s32.totalorder %v7598_v42, %v3221_v20 }
 0x2cf   :  { %6456 = vmatpush3.bf16.msra.mxu0 %v7693_v50  ;;  %6471 = vmatprep.mubr.msk.bf16.mxu0 %vm5271_vm15, %v7297_v55  ;;  %vm5307_vm14 = vmpackc.low %vm3226_vm11, %vm3225_vm12 }
 0x2d0   :  { %6457 = vmatprep.subr.bf16.mxu0 %v7695_v24 }
 0x2d1   :  { %6160 = vmatpush3.bf16.msra.mxu1 %v7126_v47  ;;  %v7151_v47 = vld [vmem:[%s8911_s2 + $0x1d8] sm:$0xff]  }
 0x2d2   :  { %6161 = vmatprep.subr.bf16.mxu1 %v7127_v22 }
 0x2d3   :  { %6458 = vmatpush3.bf16.msra.mxu0 %v7695_v24 }
 0x2d4   :  { %6459 = vmatprep.subr.bf16.mxu0 %v7697_v25 }
 0x2d5   :  { %6162 = vmatpush3.bf16.msra.mxu1 %v7127_v22  ;;  %v7152_v22 = vld [vmem:[%s8911_s2 + $0x1e0] sm:$0xff]  }
 0x2d6   :  { %6163 = vmatprep.subr.bf16.mxu1 %v7128_v49 }
 0x2d7   :  { %6460 = vmatpush3.bf16.msra.mxu0 %v7697_v25 }
 0x2d8   :  { %6461 = vmatprep.subr.bf16.mxu0 %v7699_v53 }
 0x2d9   :  { %6164 = vmatpush3.bf16.msra.mxu1 %v7128_v49  ;;  %v7153_v49 = vld [vmem:[%s8911_s2 + $0x1e8] sm:$0xff]  }
 0x2da   :  { %6165 = vmatprep.subr.bf16.mxu1 %v7129_v23 }
 0x2db   :  { %6462 = vmatpush3.bf16.msra.mxu0 %v7699_v53 }
 0x2dc   :  { %6463 = vmatprep.subr.bf16.mxu0 %v7701_v59 }
 0x2dd   :  { %6166 = vmatpush3.bf16.msra.mxu1 %v7129_v23  ;;  %v7154_v23 = vld [vmem:[%s8911_s2 + $0x1f0] sm:$0xff]  }
 0x2de   :  { %6167 = vmatprep.subr.bf16.mxu1 %v7130_v54 }
 0x2df   :  { %6464 = vmatpush3.bf16.msra.mxu0 %v7701_v59 }
 0x2e0   :  { %6465 = vmatprep.subr.bf16.mxu0 %v7703_v60 }
 0x2e1   :  { %6168 = vmatpush3.bf16.msra.mxu1 %v7130_v54  ;;  %v8108_v57 = vpop.f32.mrb[32].mxu0  ;;  %v7155_v54 = vld [vmem:[%s8911_s2 + $0x1f8] sm:$0xff]  }
 0x2e2   :  { %v1417_v58 = vpop.f32.mrb[33].mxu0  ;;  %6169 = vmatprep.subr.bf16.mxu1 %v7131_v56  ;;  %v1448_v36 = vpack.c.bf16 %v8108_v57, %v8108_v57 }
 0x2e3   :  { %v6194_v63 = vpop.f32.mrb[34].mxu0  ;;  %6466 = vmatpush3.bf16.msra.mxu0 %v7703_v60 }
 0x2e4   :  { %v1420_v48 = vpop.f32.mrb[35].mxu0  ;;  %6467 = vmatprep.subr.bf16.mxu0 %v7707_v61  ;;  %v3224_v63 = vpop.permute.xlu1 %3223 }
 0x2e5   :  { %6170 = vmatpush3.bf16.msra.mxu1 %v7131_v56  ;;  %v1447_v1 = vpack.c.bf16 %v1420_v48, %v1417_v58  ;;  %v7156_v58 = vld [vmem:[%s8911_s2 + $0x200] sm:$0xff]   ;;  %vm3227_vm15 = vcmp.eq.s32.totalorder %v7598_v42, %v3224_v63 }
 0x2e6   :  { %6195 = vmatprep.subr.bf16.mxu1 %v7132_v52  ;;  %vm5309_vm2 = vmpackc.low %vm3227_vm15, %vm3227_vm15 }
 0x2e7   :  { %6468 = vmatpush3.bf16.msra.mxu0 %v7707_v61 }
 0x2e8   :  { %6172 = vmatmul.mubr.bf16.vlgmr.msra.gmra.mrb[4].mxu1 %v1263_v2  ;;  %6469 = vmatprep.subr.bf16.mxu0 %v7709_v62  ;;  %v7157_v2 = vld [vmem:[%s8911_s2 + $0x208] sm:$0xff]   ;;  %v3406_v4 = vpop.permute.xlu1 %3405 }
 0x2e9   :  { %6196 = vmatpush3.bf16.msra.mxu1 %v7132_v52  ;;  %6211 = vmatprep.mubr.bf16.mxu1 %v1447_v1  ;;  %vm3411_vm1 = vcmp.eq.s32.totalorder %v7598_v42, %v3406_v4  ;;  %v7182_v4 = vld [vmem:[%s8911_s2 + $0x2d0] sm:$0xff]  }
 0x2ea   :  { %6197 = vmatprep.subr.bf16.mxu1 %v7133_v3 }
 0x2eb   :  { %6470 = vmatpush3.bf16.msra.mxu0 %v7709_v62 }
 0x2ec   :  { %6495 = vmatprep.subr.bf16.mxu0 %v7693_v50  ;;  %v3588_v39 = vpop.permute.xlu1 %3587 }
 0x2ed   :  { %6198 = vmatpush3.bf16.msra.mxu1 %v7133_v3  ;;  %v3403_v3 = vpop.permute.xlu0 %3402  ;;  %vm3595_vm6 = vcmp.eq.s32.totalorder %v7598_v42, %v3588_v39  ;;  %v7190_v39 = vld [vmem:[%s8911_s2 + $0x310] sm:$0xff]  }
 0x2ee   :  { %6472 = vmatmul.mubr.msk.bf16.vlgmr.msra.gmra.mrb[60].mxu0 %vm5273_vm3, %v7297_v55  ;;  %6199 = vmatprep.subr.bf16.mxu1 %v7134_v6  ;;  %vm3410_vm0 = vcmp.eq.s32.totalorder %v7598_v42, %v3403_v3 }
 0x2ef   :  { %6496 = vmatpush3.bf16.msra.mxu0 %v7693_v50  ;;  %6511 = vmatprep.mubr.msk.bf16.mxu0 %vm5283_vm4, %v7297_v55  ;;  %vm5319_vm3 = vmpackc.low %vm3411_vm1, %vm3410_vm0 }
 0x2f0   :  { %6497 = vmatprep.subr.bf16.mxu0 %v7695_v24 }
 0x2f1   :  { %6200 = vmatpush3.bf16.msra.mxu1 %v7134_v6  ;;  %v7159_v6 = vld [vmem:[%s8911_s2 + $0x218] sm:$0xff]  }
 0x2f2   :  { %6201 = vmatprep.subr.bf16.mxu1 %v7135_v7 }
 0x2f3   :  { %6498 = vmatpush3.bf16.msra.mxu0 %v7695_v24 }
 0x2f4   :  { %6499 = vmatprep.subr.bf16.mxu0 %v7697_v25 }
 0x2f5   :  { %6202 = vmatpush3.bf16.msra.mxu1 %v7135_v7  ;;  %v7160_v7 = vld [vmem:[%s8911_s2 + $0x220] sm:$0xff]  }
 0x2f6   :  { %6203 = vmatprep.subr.bf16.mxu1 %v7136_v8 }
 0x2f7   :  { %6500 = vmatpush3.bf16.msra.mxu0 %v7697_v25 }
 0x2f8   :  { %6501 = vmatprep.subr.bf16.mxu0 %v7699_v53 }
 0x2f9   :  { %6204 = vmatpush3.bf16.msra.mxu1 %v7136_v8  ;;  %v7161_v8 = vld [vmem:[%s8911_s2 + $0x228] sm:$0xff]  }
 0x2fa   :  { %6205 = vmatprep.subr.bf16.mxu1 %v7137_v9 }
 0x2fb   :  { %6502 = vmatpush3.bf16.msra.mxu0 %v7699_v53 }
 0x2fc   :  { %6503 = vmatprep.subr.bf16.mxu0 %v7701_v59 }
 0x2fd   :  { %6206 = vmatpush3.bf16.msra.mxu1 %v7137_v9  ;;  %v7162_v9 = vld [vmem:[%s8911_s2 + $0x230] sm:$0xff]  }
 0x2fe   :  { %6207 = vmatprep.subr.bf16.mxu1 %v7138_v26 }
 0x2ff   :  { %6504 = vmatpush3.bf16.msra.mxu0 %v7701_v59 }
 0x300   :  { %6505 = vmatprep.subr.bf16.mxu0 %v7703_v60 }
 0x301   :  { %6208 = vmatpush3.bf16.msra.mxu1 %v7138_v26  ;;  %v8157_v28 = vpop.f32.mrb[36].mxu0  ;;  %v7163_v26 = vld [vmem:[%s8911_s2 + $0x238] sm:$0xff]  }
 0x302   :  { %v1602_v29 = vpop.f32.mrb[37].mxu0  ;;  %6209 = vmatprep.subr.bf16.mxu1 %v7139_v27  ;;  %v1633_v19 = vpack.c.bf16 %v8157_v28, %v8157_v28 }
 0x303   :  { %v6234_v31 = vpop.f32.mrb[38].mxu0  ;;  %6506 = vmatpush3.bf16.msra.mxu0 %v7703_v60 }
 0x304   :  { %v1605_v33 = vpop.f32.mrb[39].mxu0  ;;  %6507 = vmatprep.subr.bf16.mxu0 %v7707_v61  ;;  %v3409_v31 = vpop.permute.xlu0 %3408 }
 0x305   :  { %6210 = vmatpush3.bf16.msra.mxu1 %v7139_v27  ;;  %v1632_v35 = vpack.c.bf16 %v1605_v33, %v1602_v29  ;;  %v7164_v29 = vld [vmem:[%s8911_s2 + $0x240] sm:$0xff]   ;;  %vm3412_vm4 = vcmp.eq.s32.totalorder %v7598_v42, %v3409_v31 }
 0x306   :  { %6235 = vmatprep.subr.bf16.mxu1 %v7140_v30  ;;  %vm5321_vm7 = vmpackc.low %vm3412_vm4, %vm3412_vm4 }
 0x307   :  { %6508 = vmatpush3.bf16.msra.mxu0 %v7707_v61 }
 0x308   :  { %6212 = vmatmul.mubr.bf16.vlgmr.msra.gmra.mrb[4].mxu1 %v1448_v36  ;;  %6509 = vmatprep.subr.bf16.mxu0 %v7709_v62  ;;  %v7165_v36 = vld [vmem:[%s8911_s2 + $0x248] sm:$0xff]  }
 0x309   :  { %6236 = vmatpush3.bf16.msra.mxu1 %v7140_v30  ;;  %6251 = vmatprep.mubr.bf16.mxu1 %v1632_v35 }
 0x30a   :  { %6237 = vmatprep.subr.bf16.mxu1 %v7141_v37 }
 0x30b   :  { %6510 = vmatpush3.bf16.msra.mxu0 %v7709_v62 }
 0x30c   :  { %6535 = vmatprep.subr.bf16.mxu0 %v7693_v50 }
 0x30d   :  { %6238 = vmatpush3.bf16.msra.mxu1 %v7141_v37  ;;  %v3591_v37 = vpop.permute.xlu0 %3590 }
 0x30e   :  { %6512 = vmatmul.mubr.msk.bf16.vlgmr.msra.gmra.mrb[64].mxu0 %vm5285_vm8, %v7297_v55  ;;  %6239 = vmatprep.subr.bf16.mxu1 %v7142_v10  ;;  %vm3596_vm5 = vcmp.eq.s32.totalorder %v7598_v42, %v3591_v37 }
 0x30f   :  { %6536 = vmatpush3.bf16.msra.mxu0 %v7693_v50  ;;  %6551 = vmatprep.mubr.msk.bf16.mxu0 %vm5295_vm9, %v7297_v55  ;;  %vm5331_vm8 = vmpackc.low %vm3596_vm5, %vm3595_vm6 }
 0x310   :  { %6537 = vmatprep.subr.bf16.mxu0 %v7695_v24 }
 0x311   :  { %6240 = vmatpush3.bf16.msra.mxu1 %v7142_v10  ;;  %v7167_v10 = vld [vmem:[%s8911_s2 + $0x258] sm:$0xff]  }
 0x312   :  { %6241 = vmatprep.subr.bf16.mxu1 %v7143_v11 }
 0x313   :  { %6538 = vmatpush3.bf16.msra.mxu0 %v7695_v24 }
 0x314   :  { %6539 = vmatprep.subr.bf16.mxu0 %v7697_v25 }
 0x315   :  { %6242 = vmatpush3.bf16.msra.mxu1 %v7143_v11  ;;  %v7168_v11 = vld [vmem:[%s8911_s2 + $0x260] sm:$0xff]  }
 0x316   :  { %6243 = vmatprep.subr.bf16.mxu1 %v7144_v12 }
 0x317   :  { %6540 = vmatpush3.bf16.msra.mxu0 %v7697_v25 }
 0x318   :  { %6541 = vmatprep.subr.bf16.mxu0 %v7699_v53 }
 0x319   :  { %6244 = vmatpush3.bf16.msra.mxu1 %v7144_v12  ;;  %v7169_v12 = vld [vmem:[%s8911_s2 + $0x268] sm:$0xff]  }
 0x31a   :  { %6245 = vmatprep.subr.bf16.mxu1 %v7145_v13 }
 0x31b   :  { %6542 = vmatpush3.bf16.msra.mxu0 %v7699_v53 }
 0x31c   :  { %6543 = vmatprep.subr.bf16.mxu0 %v7701_v59 }
 0x31d   :  { %6246 = vmatpush3.bf16.msra.mxu1 %v7145_v13  ;;  %v7170_v13 = vld [vmem:[%s8911_s2 + $0x270] sm:$0xff]  }
 0x31e   :  { %6247 = vmatprep.subr.bf16.mxu1 %v7146_v14 }
 0x31f   :  { %6544 = vmatpush3.bf16.msra.mxu0 %v7701_v59 }
 0x320   :  { %6545 = vmatprep.subr.bf16.mxu0 %v7703_v60 }
 0x321   :  { %6248 = vmatpush3.bf16.msra.mxu1 %v7146_v14  ;;  %v8206_v41 = vpop.f32.mrb[40].mxu0  ;;  %v7171_v14 = vld [vmem:[%s8911_s2 + $0x278] sm:$0xff]  }
 0x322   :  { %v1787_v16 = vpop.f32.mrb[41].mxu0  ;;  %6249 = vmatprep.subr.bf16.mxu1 %v7147_v15  ;;  %v1818_v1 = vpack.c.bf16 %v8206_v41, %v8206_v41 }
 0x323   :  { %v6274_v17 = vpop.f32.mrb[42].mxu0  ;;  %6546 = vmatpush3.bf16.msra.mxu0 %v7703_v60 }
 0x324   :  { %v1790_v18 = vpop.f32.mrb[43].mxu0  ;;  %6547 = vmatprep.subr.bf16.mxu0 %v7707_v61  ;;  %v3594_v17 = vpop.permute.xlu1 %3593 }
 0x325   :  { %6250 = vmatpush3.bf16.msra.mxu1 %v7147_v15  ;;  %v1817_v45 = vpack.c.bf16 %v1790_v18, %v1787_v16  ;;  %v7172_v16 = vld [vmem:[%s8911_s2 + $0x280] sm:$0xff]   ;;  %vm3597_vm9 = vcmp.eq.s32.totalorder %v7598_v42, %v3594_v17 }
 0x326   :  { %6275 = vmatprep.subr.bf16.mxu1 %v7148_v43  ;;  %vm5333_vm12 = vmpackc.low %vm3597_vm9, %vm3597_vm9 }
 0x327   :  { %6548 = vmatpush3.bf16.msra.mxu0 %v7707_v61 }
 0x328   :  { %6252 = vmatmul.mubr.bf16.vlgmr.msra.gmra.mrb[4].mxu1 %v1633_v19  ;;  %6549 = vmatprep.subr.bf16.mxu0 %v7709_v62  ;;  %v7173_v19 = vld [vmem:[%s8911_s2 + $0x288] sm:$0xff]   ;;  %v3776_v20 = vpop.permute.xlu1 %3775 }
 0x329   :  { %6276 = vmatpush3.bf16.msra.mxu1 %v7148_v43  ;;  %6291 = vmatprep.mubr.bf16.mxu1 %v1817_v45  ;;  %vm3781_vm11 = vcmp.eq.s32.totalorder %v7598_v42, %v3776_v20  ;;  %v7198_v20 = vld [vmem:[%s8911_s2 + $0x350] sm:$0xff]  }
 0x32a   :  { %6277 = vmatprep.subr.bf16.mxu1 %v7149_v38 }
 0x32b   :  { %6550 = vmatpush3.bf16.msra.mxu0 %v7709_v62 }
 0x32c   :  { %6575 = vmatprep.subr.bf16.mxu0 %v7693_v50  ;;  %v3958_v3 = vpop.permute.xlu1 %3957 }
 0x32d   :  { %6278 = vmatpush3.bf16.msra.mxu1 %v7149_v38  ;;  %v3773_v38 = vpop.permute.xlu0 %3772  ;;  %vm3965_vm0 = vcmp.eq.s32.totalorder %v7598_v42, %v3958_v3  ;;  %v7206_v3 = vld [vmem:[%s8911_s2 + $0x390] sm:$0xff]  }
 0x32e   :  { %6552 = vmatmul.mubr.msk.bf16.vlgmr.msra.gmra.mrb[68].mxu0 %vm5297_vm13, %v7297_v55  ;;  %6279 = vmatprep.subr.bf16.mxu1 %v7150_v21  ;;  %vm3780_vm10 = vcmp.eq.s32.totalorder %v7598_v42, %v3773_v38 }
 0x32f   :  { %6576 = vmatpush3.bf16.msra.mxu0 %v7693_v50  ;;  %6591 = vmatprep.mubr.msk.bf16.mxu0 %vm5307_vm14, %v7297_v55  ;;  %vm5343_vm13 = vmpackc.low %vm3781_vm11, %vm3780_vm10 }
 0x330   :  { %6577 = vmatprep.subr.bf16.mxu0 %v7695_v24 }
 0x331   :  { %6280 = vmatpush3.bf16.msra.mxu1 %v7150_v21  ;;  %v7175_v21 = vld [vmem:[%s8911_s2 + $0x298] sm:$0xff]  }
 0x332   :  { %6281 = vmatprep.subr.bf16.mxu1 %v7151_v47 }
 0x333   :  { %6578 = vmatpush3.bf16.msra.mxu0 %v7695_v24 }
 0x334   :  { %6579 = vmatprep.subr.bf16.mxu0 %v7697_v25 }
 0x335   :  { %6282 = vmatpush3.bf16.msra.mxu1 %v7151_v47  ;;  %v7176_v47 = vld [vmem:[%s8911_s2 + $0x2a0] sm:$0xff]  }
 0x336   :  { %6283 = vmatprep.subr.bf16.mxu1 %v7152_v22 }
 0x337   :  { %6580 = vmatpush3.bf16.msra.mxu0 %v7697_v25 }
 0x338   :  { %6581 = vmatprep.subr.bf16.mxu0 %v7699_v53 }
 0x339   :  { %6284 = vmatpush3.bf16.msra.mxu1 %v7152_v22  ;;  %v7177_v22 = vld [vmem:[%s8911_s2 + $0x2a8] sm:$0xff]  }
 0x33a   :  { %6285 = vmatprep.subr.bf16.mxu1 %v7153_v49 }
 0x33b   :  { %6582 = vmatpush3.bf16.msra.mxu0 %v7699_v53 }
 0x33c   :  { %6583 = vmatprep.subr.bf16.mxu0 %v7701_v59 }
 0x33d   :  { %6286 = vmatpush3.bf16.msra.mxu1 %v7153_v49  ;;  %v7178_v49 = vld [vmem:[%s8911_s2 + $0x2b0] sm:$0xff]  }
 0x33e   :  { %6287 = vmatprep.subr.bf16.mxu1 %v7154_v23 }
 0x33f   :  { %6584 = vmatpush3.bf16.msra.mxu0 %v7701_v59 }
 0x340   :  { %6585 = vmatprep.subr.bf16.mxu0 %v7703_v60 }
 0x341   :  { %6288 = vmatpush3.bf16.msra.mxu1 %v7154_v23  ;;  %v8255_v56 = vpop.f32.mrb[44].mxu0  ;;  %v7179_v23 = vld [vmem:[%s8911_s2 + $0x2b8] sm:$0xff]  }
 0x342   :  { %v1972_v57 = vpop.f32.mrb[45].mxu0  ;;  %6289 = vmatprep.subr.bf16.mxu1 %v7155_v54  ;;  %v2003_v35 = vpack.c.bf16 %v8255_v56, %v8255_v56 }
 0x343   :  { %v6314_v52 = vpop.f32.mrb[46].mxu0  ;;  %6586 = vmatpush3.bf16.msra.mxu0 %v7703_v60 }
 0x344   :  { %v1975_v0 = vpop.f32.mrb[47].mxu0  ;;  %6587 = vmatprep.subr.bf16.mxu0 %v7707_v61  ;;  %v3779_v52 = vpop.permute.xlu0 %3778 }
 0x345   :  { %6290 = vmatpush3.bf16.msra.mxu1 %v7155_v54  ;;  %v2002_v48 = vpack.c.bf16 %v1975_v0, %v1972_v57  ;;  %v7180_v57 = vld [vmem:[%s8911_s2 + $0x2c0] sm:$0xff]   ;;  %vm3782_vm14 = vcmp.eq.s32.totalorder %v7598_v42, %v3779_v52 }
 0x346   :  { %6315 = vmatprep.subr.bf16.mxu1 %v7156_v58  ;;  %vm5345_vm1 = vmpackc.low %vm3782_vm14, %vm3782_vm14 }
 0x347   :  { %6588 = vmatpush3.bf16.msra.mxu0 %v7707_v61 }
 0x348   :  { %6292 = vmatmul.mubr.bf16.vlgmr.msra.gmra.mrb[4].mxu1 %v1818_v1  ;;  %6589 = vmatprep.subr.bf16.mxu0 %v7709_v62  ;;  %v7181_v1 = vld [vmem:[%s8911_s2 + $0x2c8] sm:$0xff]  }
 0x349   :  { %6316 = vmatpush3.bf16.msra.mxu1 %v7156_v58  ;;  %6331 = vmatprep.mubr.bf16.mxu1 %v2002_v48 }
 0x34a   :  { %6317 = vmatprep.subr.bf16.mxu1 %v7157_v2 }
 0x34b   :  { %6590 = vmatpush3.bf16.msra.mxu0 %v7709_v62 }
 0x34c   :  { %6615 = vmatprep.subr.bf16.mxu0 %v7693_v50 }
 0x34d   :  { %6318 = vmatpush3.bf16.msra.mxu1 %v7157_v2  ;;  %v3961_v2 = vpop.permute.xlu0 %3960 }
 0x34e   :  { %6592 = vmatmul.mubr.msk.bf16.vlgmr.msra.gmra.mrb[72].mxu0 %vm5309_vm2, %v7297_v55  ;;  %6319 = vmatprep.subr.bf16.mxu1 %v7158_v5  ;;  %vm3966_vm15 = vcmp.eq.s32.totalorder %v7598_v42, %v3961_v2 }
 0x34f   :  { %6616 = vmatpush3.bf16.msra.mxu0 %v7693_v50  ;;  %6631 = vmatprep.mubr.msk.bf16.mxu0 %vm5319_vm3, %v7297_v55  ;;  %vm5355_vm2 = vmpackc.low %vm3966_vm15, %vm3965_vm0 }
 0x350   :  { %6617 = vmatprep.subr.bf16.mxu0 %v7695_v24 }
 0x351   :  { %6320 = vmatpush3.bf16.msra.mxu1 %v7158_v5  ;;  %v7183_v5 = vld [vmem:[%s8911_s2 + $0x2d8] sm:$0xff]  }
 0x352   :  { %6321 = vmatprep.subr.bf16.mxu1 %v7159_v6 }
 0x353   :  { %6618 = vmatpush3.bf16.msra.mxu0 %v7695_v24 }
 0x354   :  { %6619 = vmatprep.subr.bf16.mxu0 %v7697_v25 }
 0x355   :  { %6322 = vmatpush3.bf16.msra.mxu1 %v7159_v6  ;;  %v7184_v6 = vld [vmem:[%s8911_s2 + $0x2e0] sm:$0xff]  }
 0x356   :  { %6323 = vmatprep.subr.bf16.mxu1 %v7160_v7 }
 0x357   :  { %6620 = vmatpush3.bf16.msra.mxu0 %v7697_v25 }
 0x358   :  { %6621 = vmatprep.subr.bf16.mxu0 %v7699_v53 }
 0x359   :  { %6324 = vmatpush3.bf16.msra.mxu1 %v7160_v7  ;;  %v7185_v7 = vld [vmem:[%s8911_s2 + $0x2e8] sm:$0xff]  }
 0x35a   :  { %6325 = vmatprep.subr.bf16.mxu1 %v7161_v8 }
 0x35b   :  { %6622 = vmatpush3.bf16.msra.mxu0 %v7699_v53 }
 0x35c   :  { %6623 = vmatprep.subr.bf16.mxu0 %v7701_v59 }
 0x35d   :  { %6326 = vmatpush3.bf16.msra.mxu1 %v7161_v8  ;;  %v7186_v8 = vld [vmem:[%s8911_s2 + $0x2f0] sm:$0xff]  }
 0x35e   :  { %6327 = vmatprep.subr.bf16.mxu1 %v7162_v9 }
 0x35f   :  { %6624 = vmatpush3.bf16.msra.mxu0 %v7701_v59 }
 0x360   :  { %6625 = vmatprep.subr.bf16.mxu0 %v7703_v60 }
 0x361   :  { %6328 = vmatpush3.bf16.msra.mxu1 %v7162_v9  ;;  %v8304_v27 = vpop.f32.mrb[48].mxu0  ;;  %v7187_v9 = vld [vmem:[%s8911_s2 + $0x2f8] sm:$0xff]  }
 0x362   :  { %v2157_v28 = vpop.f32.mrb[49].mxu0  ;;  %6329 = vmatprep.subr.bf16.mxu1 %v7163_v26  ;;  %v2188_v45 = vpack.c.bf16 %v8304_v27, %v8304_v27 }
 0x363   :  { %v6354_v30 = vpop.f32.mrb[50].mxu0  ;;  %6626 = vmatpush3.bf16.msra.mxu0 %v7703_v60 }
 0x364   :  { %v2160_v32 = vpop.f32.mrb[51].mxu0  ;;  %6627 = vmatprep.subr.bf16.mxu0 %v7707_v61  ;;  %v3964_v30 = vpop.permute.xlu1 %3963 }
 0x365   :  { %6330 = vmatpush3.bf16.msra.mxu1 %v7163_v26  ;;  %v2187_v33 = vpack.c.bf16 %v2160_v32, %v2157_v28  ;;  %v7188_v28 = vld [vmem:[%s8911_s2 + $0x300] sm:$0xff]   ;;  %vm3967_vm3 = vcmp.eq.s32.totalorder %v7598_v42, %v3964_v30 }
 0x366   :  { %6355 = vmatprep.subr.bf16.mxu1 %v7164_v29  ;;  %vm5357_vm6 = vmpackc.low %vm3967_vm3, %vm3967_vm3 }
 0x367   :  { %6628 = vmatpush3.bf16.msra.mxu0 %v7707_v61 }
 0x368   :  { %6332 = vmatmul.mubr.bf16.vlgmr.msra.gmra.mrb[4].mxu1 %v2003_v35  ;;  %6629 = vmatprep.subr.bf16.mxu0 %v7709_v62  ;;  %v7189_v35 = vld [vmem:[%s8911_s2 + $0x308] sm:$0xff]   ;;  %v4146_v37 = vpop.permute.xlu1 %4145 }
 0x369   :  { %6356 = vmatpush3.bf16.msra.mxu1 %v7164_v29  ;;  %6371 = vmatprep.mubr.bf16.mxu1 %v2187_v33  ;;  %vm4151_vm5 = vcmp.eq.s32.totalorder %v7598_v42, %v4146_v37  ;;  %v7214_v37 = vld [vmem:[%s8911_s2 + $0x3d0] sm:$0xff]  }
 0x36a   :  { %6357 = vmatprep.subr.bf16.mxu1 %v7165_v36 }
 0x36b   :  { %6630 = vmatpush3.bf16.msra.mxu0 %v7709_v62 }
 0x36c   :  { %6655 = vmatprep.subr.bf16.mxu0 %v7693_v50  ;;  %v4328_v38 = vpop.permute.xlu1 %4327 }
 0x36d   :  { %6358 = vmatpush3.bf16.msra.mxu1 %v7165_v36  ;;  %v4143_v36 = vpop.permute.xlu0 %4142  ;;  %vm4335_vm10 = vcmp.eq.s32.totalorder %v7598_v42, %v4328_v38  ;;  %v7222_v38 = vld [vmem:[%s8911_s2 + $0x410] sm:$0xff]  }
 0x36e   :  { %6632 = vmatmul.mubr.msk.bf16.vlgmr.msra.gmra.mrb[76].mxu0 %vm5321_vm7, %v7297_v55  ;;  %6359 = vmatprep.subr.bf16.mxu1 %v7166_v40  ;;  %vm4150_vm4 = vcmp.eq.s32.totalorder %v7598_v42, %v4143_v36 }
 0x36f   :  { %6656 = vmatpush3.bf16.msra.mxu0 %v7693_v50  ;;  %6671 = vmatprep.mubr.msk.bf16.mxu0 %vm5331_vm8, %v7297_v55  ;;  %vm5367_vm7 = vmpackc.low %vm4151_vm5, %vm4150_vm4 }
 0x370   :  { %6657 = vmatprep.subr.bf16.mxu0 %v7695_v24 }
 0x371   :  { %6360 = vmatpush3.bf16.msra.mxu1 %v7166_v40  ;;  %v7191_v40 = vld [vmem:[%s8911_s2 + $0x318] sm:$0xff]  }
 0x372   :  { %6361 = vmatprep.subr.bf16.mxu1 %v7167_v10 }
 0x373   :  { %6658 = vmatpush3.bf16.msra.mxu0 %v7695_v24 }
 0x374   :  { %6659 = vmatprep.subr.bf16.mxu0 %v7697_v25 }
 0x375   :  { %6362 = vmatpush3.bf16.msra.mxu1 %v7167_v10  ;;  %v7192_v10 = vld [vmem:[%s8911_s2 + $0x320] sm:$0xff]  }
 0x376   :  { %6363 = vmatprep.subr.bf16.mxu1 %v7168_v11 }
 0x377   :  { %6660 = vmatpush3.bf16.msra.mxu0 %v7697_v25 }
 0x378   :  { %6661 = vmatprep.subr.bf16.mxu0 %v7699_v53 }
 0x379   :  { %6364 = vmatpush3.bf16.msra.mxu1 %v7168_v11  ;;  %v7193_v11 = vld [vmem:[%s8911_s2 + $0x328] sm:$0xff]  }
 0x37a   :  { %6365 = vmatprep.subr.bf16.mxu1 %v7169_v12 }
 0x37b   :  { %6662 = vmatpush3.bf16.msra.mxu0 %v7699_v53 }
 0x37c   :  { %6663 = vmatprep.subr.bf16.mxu0 %v7701_v59 }
 0x37d   :  { %6366 = vmatpush3.bf16.msra.mxu1 %v7169_v12  ;;  %v7194_v12 = vld [vmem:[%s8911_s2 + $0x330] sm:$0xff]  }
 0x37e   :  { %6367 = vmatprep.subr.bf16.mxu1 %v7170_v13 }
 0x37f   :  { %6664 = vmatpush3.bf16.msra.mxu0 %v7701_v59 }
 0x380   :  { %6665 = vmatprep.subr.bf16.mxu0 %v7703_v60 }
 0x381   :  { %6368 = vmatpush3.bf16.msra.mxu1 %v7170_v13  ;;  %v8353_v15 = vpop.f32.mrb[52].mxu0  ;;  %v7195_v13 = vld [vmem:[%s8911_s2 + $0x338] sm:$0xff]  }
 0x382   :  { %v2342_v41 = vpop.f32.mrb[53].mxu0  ;;  %6369 = vmatprep.subr.bf16.mxu1 %v7171_v14  ;;  %v2373_v48 = vpack.c.bf16 %v8353_v15, %v8353_v15 }
 0x383   :  { %v6394_v43 = vpop.f32.mrb[54].mxu0  ;;  %6666 = vmatpush3.bf16.msra.mxu0 %v7703_v60 }
 0x384   :  { %v2345_v44 = vpop.f32.mrb[55].mxu0  ;;  %6667 = vmatprep.subr.bf16.mxu0 %v7707_v61  ;;  %v4149_v43 = vpop.permute.xlu0 %4148 }
 0x385   :  { %6370 = vmatpush3.bf16.msra.mxu1 %v7171_v14  ;;  %v2372_v18 = vpack.c.bf16 %v2345_v44, %v2342_v41  ;;  %v7196_v41 = vld [vmem:[%s8911_s2 + $0x340] sm:$0xff]   ;;  %vm4152_vm8 = vcmp.eq.s32.totalorder %v7598_v42, %v4149_v43 }
 0x386   :  { %6395 = vmatprep.subr.bf16.mxu1 %v7172_v16  ;;  %vm5369_vm11 = vmpackc.low %vm4152_vm8, %vm4152_vm8 }
 0x387   :  { %6668 = vmatpush3.bf16.msra.mxu0 %v7707_v61 }
 0x388   :  { %6372 = vmatmul.mubr.bf16.vlgmr.msra.gmra.mrb[4].mxu1 %v2188_v45  ;;  %6669 = vmatprep.subr.bf16.mxu0 %v7709_v62  ;;  %v7197_v45 = vld [vmem:[%s8911_s2 + $0x348] sm:$0xff]  }
 0x389   :  { %6396 = vmatpush3.bf16.msra.mxu1 %v7172_v16  ;;  %6411 = vmatprep.mubr.bf16.mxu1 %v2372_v18 }
 0x38a   :  { %6397 = vmatprep.subr.bf16.mxu1 %v7173_v19 }
 0x38b   :  { %6670 = vmatpush3.bf16.msra.mxu0 %v7709_v62 }
 0x38c   :  { %6695 = vmatprep.subr.bf16.mxu0 %v7693_v50 }
 0x38d   :  { %6398 = vmatpush3.bf16.msra.mxu1 %v7173_v19  ;;  %v4331_v19 = vpop.permute.xlu0 %4330 }
 0x38e   :  { %6672 = vmatmul.mubr.msk.bf16.vlgmr.msra.gmra.mrb[80].mxu0 %vm5333_vm12, %v7297_v55  ;;  %6399 = vmatprep.subr.bf16.mxu1 %v7174_v46  ;;  %vm4336_vm9 = vcmp.eq.s32.totalorder %v7598_v42, %v4331_v19 }
 0x38f   :  { %6696 = vmatpush3.bf16.msra.mxu0 %v7693_v50  ;;  %6711 = vmatprep.mubr.msk.bf16.mxu0 %vm5343_vm13, %v7297_v55  ;;  %vm5379_vm12 = vmpackc.low %vm4336_vm9, %vm4335_vm10 }
 0x390   :  { %6697 = vmatprep.subr.bf16.mxu0 %v7695_v24 }
 0x391   :  { %6400 = vmatpush3.bf16.msra.mxu1 %v7174_v46  ;;  %v7199_v46 = vld [vmem:[%s8911_s2 + $0x358] sm:$0xff]  }
 0x392   :  { %6401 = vmatprep.subr.bf16.mxu1 %v7175_v21 }
 0x393   :  { %6698 = vmatpush3.bf16.msra.mxu0 %v7695_v24 }
 0x394   :  { %6699 = vmatprep.subr.bf16.mxu0 %v7697_v25 }
 0x395   :  { %6402 = vmatpush3.bf16.msra.mxu1 %v7175_v21  ;;  %v7200_v21 = vld [vmem:[%s8911_s2 + $0x360] sm:$0xff]  }
 0x396   :  { %6403 = vmatprep.subr.bf16.mxu1 %v7176_v47 }
 0x397   :  { %6700 = vmatpush3.bf16.msra.mxu0 %v7697_v25 }
 0x398   :  { %6701 = vmatprep.subr.bf16.mxu0 %v7699_v53 }
 0x399   :  { %6404 = vmatpush3.bf16.msra.mxu1 %v7176_v47  ;;  %v7201_v47 = vld [vmem:[%s8911_s2 + $0x368] sm:$0xff]  }
 0x39a   :  { %6405 = vmatprep.subr.bf16.mxu1 %v7177_v22 }
 0x39b   :  { %6702 = vmatpush3.bf16.msra.mxu0 %v7699_v53 }
 0x39c   :  { %6703 = vmatprep.subr.bf16.mxu0 %v7701_v59 }
 0x39d   :  { %6406 = vmatpush3.bf16.msra.mxu1 %v7177_v22  ;;  %v7202_v22 = vld [vmem:[%s8911_s2 + $0x370] sm:$0xff]  }
 0x39e   :  { %6407 = vmatprep.subr.bf16.mxu1 %v7178_v49 }
 0x39f   :  { %6704 = vmatpush3.bf16.msra.mxu0 %v7701_v59 }
 0x3a0   :  { %6705 = vmatprep.subr.bf16.mxu0 %v7703_v60 }
 0x3a1   :  { %6408 = vmatpush3.bf16.msra.mxu1 %v7178_v49  ;;  %v8402_v54 = vpop.f32.mrb[56].mxu0  ;;  %v7203_v49 = vld [vmem:[%s8911_s2 + $0x378] sm:$0xff]  }
 0x3a2   :  { %v2527_v56 = vpop.f32.mrb[57].mxu0  ;;  %6409 = vmatprep.subr.bf16.mxu1 %v7179_v23  ;;  %v2558_v33 = vpack.c.bf16 %v8402_v54, %v8402_v54 }
 0x3a3   :  { %v6434_v58 = vpop.f32.mrb[58].mxu0  ;;  %6706 = vmatpush3.bf16.msra.mxu0 %v7703_v60 }
 0x3a4   :  { %v2530_v63 = vpop.f32.mrb[59].mxu0  ;;  %6707 = vmatprep.subr.bf16.mxu0 %v7707_v61  ;;  %v4334_v58 = vpop.permute.xlu1 %4333 }
 0x3a5   :  { %6410 = vmatpush3.bf16.msra.mxu1 %v7179_v23  ;;  %v2557_v0 = vpack.c.bf16 %v2530_v63, %v2527_v56  ;;  %v7204_v56 = vld [vmem:[%s8911_s2 + $0x380] sm:$0xff]   ;;  %vm4337_vm13 = vcmp.eq.s32.totalorder %v7598_v42, %v4334_v58 }
 0x3a6   :  { %6435 = vmatprep.subr.bf16.mxu1 %v7180_v57  ;;  %vm5381_vm0 = vmpackc.low %vm4337_vm13, %vm4337_vm13 }
 0x3a7   :  { %6708 = vmatpush3.bf16.msra.mxu0 %v7707_v61 }
 0x3a8   :  { %6412 = vmatmul.mubr.bf16.vlgmr.msra.gmra.mrb[4].mxu1 %v2373_v48  ;;  %6709 = vmatprep.subr.bf16.mxu0 %v7709_v62  ;;  %v7205_v48 = vld [vmem:[%s8911_s2 + $0x388] sm:$0xff]   ;;  %v4516_v2 = vpop.permute.xlu1 %4515 }
 0x3a9   :  { %6436 = vmatpush3.bf16.msra.mxu1 %v7180_v57  ;;  %6451 = vmatprep.mubr.bf16.mxu1 %v2557_v0  ;;  %vm4521_vm15 = vcmp.eq.s32.totalorder %v7598_v42, %v4516_v2 }
 0x3aa   :  { %6437 = vmatprep.subr.bf16.mxu1 %v7181_v1 }
 0x3ab   :  { %6710 = vmatpush3.bf16.msra.mxu0 %v7709_v62 }
 0x3ac   :  { %6735 = vmatprep.subr.bf16.mxu0 %v7693_v50  ;;  %v4698_v36 = vpop.permute.xlu1 %4697 }
 0x3ad   :  { %6438 = vmatpush3.bf16.msra.mxu1 %v7181_v1  ;;  %v4513_v1 = vpop.permute.xlu0 %4512  ;;  %vm4705_vm4 = vcmp.eq.s32.totalorder %v7598_v42, %v4698_v36  ;;  %v7247_v36 = vld [vmem:[%s8911_s2 + $0x4d8] sm:$0xff]  }
 0x3ae   :  { %6712 = vmatmul.mubr.msk.bf16.vlgmr.msra.gmra.mrb[84].mxu0 %vm5345_vm1, %v7297_v55  ;;  %6439 = vmatprep.subr.bf16.mxu1 %v7182_v4  ;;  %vm4520_vm14 = vcmp.eq.s32.totalorder %v7598_v42, %v4513_v1 }
 0x3af   :  { %6736 = vmatpush3.bf16.msra.mxu0 %v7693_v50  ;;  %6751 = vmatprep.mubr.msk.bf16.mxu0 %vm5355_vm2, %v7297_v55  ;;  %vm5391_vm1 = vmpackc.low %vm4521_vm15, %vm4520_vm14 }
 0x3b0   :  { %6737 = vmatprep.subr.bf16.mxu0 %v7695_v24 }
 0x3b1   :  { %6440 = vmatpush3.bf16.msra.mxu1 %v7182_v4  ;;  %v7207_v4 = vld [vmem:[%s8911_s2 + $0x398] sm:$0xff]  }
 0x3b2   :  { %6441 = vmatprep.subr.bf16.mxu1 %v7183_v5 }
 0x3b3   :  { %6738 = vmatpush3.bf16.msra.mxu0 %v7695_v24 }
 0x3b4   :  { %6739 = vmatprep.subr.bf16.mxu0 %v7697_v25 }
 0x3b5   :  { %6442 = vmatpush3.bf16.msra.mxu1 %v7183_v5  ;;  %v7208_v5 = vld [vmem:[%s8911_s2 + $0x3a0] sm:$0xff]  }
 0x3b6   :  { %6443 = vmatprep.subr.bf16.mxu1 %v7184_v6 }
 0x3b7   :  { %6740 = vmatpush3.bf16.msra.mxu0 %v7697_v25 }
 0x3b8   :  { %6741 = vmatprep.subr.bf16.mxu0 %v7699_v53 }
 0x3b9   :  { %6444 = vmatpush3.bf16.msra.mxu1 %v7184_v6  ;;  %v7209_v6 = vld [vmem:[%s8911_s2 + $0x3a8] sm:$0xff]  }
 0x3ba   :  { %6445 = vmatprep.subr.bf16.mxu1 %v7185_v7 }
 0x3bb   :  { %6742 = vmatpush3.bf16.msra.mxu0 %v7699_v53 }
 0x3bc   :  { %6743 = vmatprep.subr.bf16.mxu0 %v7701_v59 }
 0x3bd   :  { %6446 = vmatpush3.bf16.msra.mxu1 %v7185_v7  ;;  %v7210_v7 = vld [vmem:[%s8911_s2 + $0x3b0] sm:$0xff]  }
 0x3be   :  { %6447 = vmatprep.subr.bf16.mxu1 %v7186_v8 }
 0x3bf   :  { %6744 = vmatpush3.bf16.msra.mxu0 %v7701_v59 }
 0x3c0   :  { %6745 = vmatprep.subr.bf16.mxu0 %v7703_v60 }
 0x3c1   :  { %6448 = vmatpush3.bf16.msra.mxu1 %v7186_v8  ;;  %v8451_v26 = vpop.f32.mrb[60].mxu0  ;;  %v7211_v8 = vld [vmem:[%s8911_s2 + $0x3b8] sm:$0xff]  }
 0x3c2   :  { %v2712_v27 = vpop.f32.mrb[61].mxu0  ;;  %6449 = vmatprep.subr.bf16.mxu1 %v7187_v9  ;;  %v2743_v18 = vpack.c.bf16 %v8451_v26, %v8451_v26 }
 0x3c3   :  { %v6474_v29 = vpop.f32.mrb[62].mxu0  ;;  %6746 = vmatpush3.bf16.msra.mxu0 %v7703_v60 }
 0x3c4   :  { %v2715_v31 = vpop.f32.mrb[63].mxu0  ;;  %6747 = vmatprep.subr.bf16.mxu0 %v7707_v61  ;;  %v4519_v29 = vpop.permute.xlu0 %4518 }
 0x3c5   :  { %6450 = vmatpush3.bf16.msra.mxu1 %v7187_v9  ;;  %v2742_v32 = vpack.c.bf16 %v2715_v31, %v2712_v27  ;;  %v7212_v27 = vld [vmem:[%s8911_s2 + $0x3c0] sm:$0xff]   ;;  %vm4522_vm2 = vcmp.eq.s32.totalorder %v7598_v42, %v4519_v29 }
 0x3c6   :  { %6475 = vmatprep.subr.bf16.mxu1 %v7188_v28  ;;  %vm5393_vm5 = vmpackc.low %vm4522_vm2, %vm4522_vm2 }
 0x3c7   :  { %6748 = vmatpush3.bf16.msra.mxu0 %v7707_v61 }
 0x3c8   :  { %6452 = vmatmul.mubr.bf16.vlgmr.msra.gmra.mrb[4].mxu1 %v2558_v33  ;;  %6749 = vmatprep.subr.bf16.mxu0 %v7709_v62  ;;  %v7213_v33 = vld [vmem:[%s8911_s2 + $0x3c8] sm:$0xff]  }
 0x3c9   :  { %6476 = vmatpush3.bf16.msra.mxu1 %v7188_v28  ;;  %6491 = vmatprep.mubr.bf16.mxu1 %v2742_v32 }
 0x3ca   :  { %6477 = vmatprep.subr.bf16.mxu1 %v7189_v35 }
 0x3cb   :  { %6750 = vmatpush3.bf16.msra.mxu0 %v7709_v62 }
 0x3cc   :  { %6775 = vmatprep.subr.bf16.mxu0 %v7693_v50 }
 0x3cd   :  { %6478 = vmatpush3.bf16.msra.mxu1 %v7189_v35  ;;  %v4701_v35 = vpop.permute.xlu0 %4700 }
 0x3ce   :  { %6752 = vmatmul.mubr.msk.bf16.vlgmr.msra.gmra.mrb[88].mxu0 %vm5357_vm6, %v7297_v55  ;;  %6479 = vmatprep.subr.bf16.mxu1 %v7190_v39  ;;  %vm4706_vm3 = vcmp.eq.s32.totalorder %v7598_v42, %v4701_v35  ;;  %v7246_v35 = vld [vmem:[%s8911_s2 + $0x4d0] sm:$0xff]  }
 0x3cf   :  { %6776 = vmatpush3.bf16.msra.mxu0 %v7693_v50  ;;  %6791 = vmatprep.mubr.msk.bf16.mxu0 %vm5367_vm7, %v7297_v55  ;;  %vm5403_vm6 = vmpackc.low %vm4706_vm3, %vm4705_vm4 }
 0x3d0   :  { %6777 = vmatprep.subr.bf16.mxu0 %v7695_v24 }
 0x3d1   :  { %6480 = vmatpush3.bf16.msra.mxu1 %v7190_v39  ;;  %v7215_v39 = vld [vmem:[%s8911_s2 + $0x3d8] sm:$0xff]   ;;  %v4883_v19 = vpop.permute.xlu0 %4882 }
 0x3d2   :  { %6481 = vmatprep.subr.bf16.mxu1 %v7191_v40  ;;  %vm4890_vm8 = vcmp.eq.s32.totalorder %v7598_v42, %v4883_v19  ;;  %v7258_v19 = vld [vmem:[%s8911_s2 + $0x530] sm:$0xff]  }
 0x3d3   :  { %6778 = vmatpush3.bf16.msra.mxu0 %v7695_v24 }
 0x3d4   :  { %6779 = vmatprep.subr.bf16.mxu0 %v7697_v25 }
 0x3d5   :  { %6482 = vmatpush3.bf16.msra.mxu1 %v7191_v40  ;;  %v7216_v40 = vld [vmem:[%s8911_s2 + $0x3e0] sm:$0xff]  }
 0x3d6   :  { %6483 = vmatprep.subr.bf16.mxu1 %v7192_v10 }
 0x3d7   :  { %6780 = vmatpush3.bf16.msra.mxu0 %v7697_v25 }
 0x3d8   :  { %6781 = vmatprep.subr.bf16.mxu0 %v7699_v53 }
 0x3d9   :  { %6484 = vmatpush3.bf16.msra.mxu1 %v7192_v10  ;;  %v7217_v10 = vld [vmem:[%s8911_s2 + $0x3e8] sm:$0xff]  }
 0x3da   :  { %6485 = vmatprep.subr.bf16.mxu1 %v7193_v11 }
 0x3db   :  { %6782 = vmatpush3.bf16.msra.mxu0 %v7699_v53 }
 0x3dc   :  { %6783 = vmatprep.subr.bf16.mxu0 %v7701_v59 }
 0x3dd   :  { %6486 = vmatpush3.bf16.msra.mxu1 %v7193_v11  ;;  %v7218_v11 = vld [vmem:[%s8911_s2 + $0x3f0] sm:$0xff]  }
 0x3de   :  { %6487 = vmatprep.subr.bf16.mxu1 %v7194_v12 }
 0x3df   :  { %6784 = vmatpush3.bf16.msra.mxu0 %v7701_v59 }
 0x3e0   :  { %6785 = vmatprep.subr.bf16.mxu0 %v7703_v60 }
 0x3e1   :  { %6488 = vmatpush3.bf16.msra.mxu1 %v7194_v12  ;;  %v8500_v14 = vpop.f32.mrb[64].mxu0  ;;  %v7219_v12 = vld [vmem:[%s8911_s2 + $0x3f8] sm:$0xff]  }
 0x3e2   :  { %v2897_v15 = vpop.f32.mrb[65].mxu0  ;;  %6489 = vmatprep.subr.bf16.mxu1 %v7195_v13  ;;  %v2928_v0 = vpack.c.bf16 %v8500_v14, %v8500_v14  ;;  %v4704_v14 = vpop.permute.xlu1 %4703 }
 0x3e3   :  { %v6514_v16 = vpop.f32.mrb[66].mxu0  ;;  %6786 = vmatpush3.bf16.msra.mxu0 %v7703_v60  ;;  %vm4707_vm7 = vcmp.eq.s32.totalorder %v7598_v42, %v4704_v14 }
 0x3e4   :  { %v2900_v17 = vpop.f32.mrb[67].mxu0  ;;  %6787 = vmatprep.subr.bf16.mxu0 %v7707_v61  ;;  %vm5405_vm10 = vmpackc.low %vm4707_vm7, %vm4707_vm7 }
 0x3e5   :  { %6490 = vmatpush3.bf16.msra.mxu1 %v7195_v13  ;;  %v2927_v44 = vpack.c.bf16 %v2900_v17, %v2897_v15 }
 0x3e6   :  { %6515 = vmatprep.subr.bf16.mxu1 %v7196_v41 }
 0x3e7   :  { %6788 = vmatpush3.bf16.msra.mxu0 %v7707_v61 }
 0x3e8   :  { %6492 = vmatmul.mubr.bf16.vlgmr.msra.gmra.mrb[4].mxu1 %v2743_v18  ;;  %6789 = vmatprep.subr.bf16.mxu0 %v7709_v62  ;;  %v7221_v18 = vld [vmem:[%s8911_s2 + $0x408] sm:$0xff]  }
 0x3e9   :  { %6516 = vmatpush3.bf16.msra.mxu1 %v7196_v41  ;;  %6531 = vmatprep.mubr.bf16.mxu1 %v2927_v44  ;;  %v7220_v41 = vld [vmem:[%s8911_s2 + $0x400] sm:$0xff]  }
 0x3ea   :  { %6517 = vmatprep.subr.bf16.mxu1 %v7197_v45 }
 0x3eb   :  { %6790 = vmatpush3.bf16.msra.mxu0 %v7709_v62 }
 0x3ec   :  { %6815 = vmatprep.subr.bf16.mxu0 %v7693_v50 }
 0x3ed   :  { %6518 = vmatpush3.bf16.msra.mxu1 %v7197_v45  ;;  %v4886_v45 = vpop.permute.xlu1 %4885 }
 0x3ee   :  { %6792 = vmatmul.mubr.msk.bf16.vlgmr.msra.gmra.mrb[92].mxu0 %vm5369_vm11, %v7297_v55  ;;  %6519 = vmatprep.subr.bf16.mxu1 %v7198_v20  ;;  %vm4891_vm9 = vcmp.eq.s32.totalorder %v7598_v42, %v4886_v45  ;;  %v7257_v45 = vld [vmem:[%s8911_s2 + $0x528] sm:$0xff]  }
 0x3ef   :  { %6816 = vmatpush3.bf16.msra.mxu0 %v7693_v50  ;;  %6831 = vmatprep.mubr.msk.bf16.mxu0 %vm5379_vm12, %v7297_v55  ;;  %vm5415_vm11 = vmpackc.low %vm4891_vm9, %vm4890_vm8 }
 0x3f0   :  { %6817 = vmatprep.subr.bf16.mxu0 %v7695_v24 }
 0x3f1   :  { %6520 = vmatpush3.bf16.msra.mxu1 %v7198_v20  ;;  %v7223_v20 = vld [vmem:[%s8911_s2 + $0x418] sm:$0xff]  }
 0x3f2   :  { %6521 = vmatprep.subr.bf16.mxu1 %v7199_v46 }
 0x3f3   :  { %6818 = vmatpush3.bf16.msra.mxu0 %v7695_v24 }
 0x3f4   :  { %6819 = vmatprep.subr.bf16.mxu0 %v7697_v25 }
 0x3f5   :  { %6522 = vmatpush3.bf16.msra.mxu1 %v7199_v46  ;;  %v7224_v46 = vld [vmem:[%s8911_s2 + $0x420] sm:$0xff]  }
 0x3f6   :  { %6523 = vmatprep.subr.bf16.mxu1 %v7200_v21 }
 0x3f7   :  { %6820 = vmatpush3.bf16.msra.mxu0 %v7697_v25 }
 0x3f8   :  { %6821 = vmatprep.subr.bf16.mxu0 %v7699_v53 }
 0x3f9   :  { %6524 = vmatpush3.bf16.msra.mxu1 %v7200_v21  ;;  %v7226_v21 = vld [vmem:[%s8911_s2 + $0x430] sm:$0xff]  }
 0x3fa   :  { %6525 = vmatprep.subr.bf16.mxu1 %v7201_v47 }
 0x3fb   :  { %6822 = vmatpush3.bf16.msra.mxu0 %v7699_v53 }
 0x3fc   :  { %6823 = vmatprep.subr.bf16.mxu0 %v7701_v59 }
 0x3fd   :  { %6526 = vmatpush3.bf16.msra.mxu1 %v7201_v47 }
 0x3fe   :  { %6527 = vmatprep.subr.bf16.mxu1 %v7202_v22 }
 0x3ff   :  { %6824 = vmatpush3.bf16.msra.mxu0 %v7701_v59 }
 0x400   :  { %6825 = vmatprep.subr.bf16.mxu0 %v7703_v60 }
 0x401   :  { %6528 = vmatpush3.bf16.msra.mxu1 %v7202_v22  ;;  %v8549_v23 = vpop.f32.mrb[68].mxu0 }
 0x402   :  { %v3082_v54 = vpop.f32.mrb[69].mxu0  ;;  %6529 = vmatprep.subr.bf16.mxu1 %v7203_v49  ;;  %v3113_v32 = vpack.c.bf16 %v8549_v23, %v8549_v23 }
 0x403   :  { %v6554_v57 = vpop.f32.mrb[70].mxu0  ;;  %6826 = vmatpush3.bf16.msra.mxu0 %v7703_v60 }
 0x404   :  { %v3085_v52 = vpop.f32.mrb[71].mxu0  ;;  %6827 = vmatprep.subr.bf16.mxu0 %v7707_v61  ;;  %v7235_v57 = vld [vmem:[%s8911_s2 + $0x478] sm:$0xff]  }
 0x405   :  { %6530 = vmatpush3.bf16.msra.mxu1 %v7203_v49  ;;  %v3112_v63 = vpack.c.bf16 %v3085_v52, %v3082_v54  ;;  %v7229_v54 = vld [vmem:[%s8911_s2 + $0x448] sm:$0xff]  }
 0x406   :  { %6555 = vmatprep.subr.bf16.mxu1 %v7204_v56 }
 0x407   :  { %6828 = vmatpush3.bf16.msra.mxu0 %v7707_v61 }
 0x408   :  { %6532 = vmatmul.mubr.bf16.vlgmr.msra.gmra.mrb[4].mxu1 %v2928_v0  ;;  %6829 = vmatprep.subr.bf16.mxu0 %v7709_v62 }
 0x409   :  { %6556 = vmatpush3.bf16.msra.mxu1 %v7204_v56  ;;  %6571 = vmatprep.mubr.bf16.mxu1 %v3112_v63  ;;  %v4889_v56 = vpop.permute.xlu0 %4888  ;;  %v7236_v63 = vld [vmem:[%s8911_s2 + $0x480] sm:$0xff]  }
 0x40a   :  { %6557 = vmatprep.subr.bf16.mxu1 %v7205_v48  ;;  %vm4892_vm12 = vcmp.eq.s32.totalorder %v7598_v42, %v4889_v56  ;;  %v7232_v42 = vld [vmem:[%s8911_s2 + $0x460] sm:$0xff]   ;;  %v7267_v56 = vld [vmem:[%s8911_s2 + $0x578] sm:$0xff]  }
 0x40b   :  { %6830 = vmatpush3.bf16.msra.mxu0 %v7709_v62  ;;  %vm5417_vm13 = vmpackc.low %vm4892_vm12, %vm4892_vm12 }
 0x40c   :  { %6855 = vmatprep.subr.bf16.mxu0 %v7693_v50 }
 0x40d   :  { %6558 = vmatpush3.bf16.msra.mxu1 %v7205_v48 }
 0x40e   :  { %6832 = vmatmul.mubr.msk.bf16.vlgmr.msra.gmra.mrb[96].mxu0 %vm5381_vm0, %v7297_v55  ;;  %6559 = vmatprep.subr.bf16.mxu1 %v7206_v3 }
 0x40f   :  { %6856 = vmatpush3.bf16.msra.mxu0 %v7693_v50  ;;  %6871 = vmatprep.mubr.msk.bf16.mxu0 %vm5391_vm1, %v7297_v55 }
 0x410   :  { %6857 = vmatprep.subr.bf16.mxu0 %v7695_v24 }
 0x411   :  { %6560 = vmatpush3.bf16.msra.mxu1 %v7206_v3  ;;  %v7237_v3 = vld [vmem:[%s8911_s2 + $0x488] sm:$0xff]  }
 0x412   :  { %6561 = vmatprep.subr.bf16.mxu1 %v7207_v4 }
 0x413   :  { %6858 = vmatpush3.bf16.msra.mxu0 %v7695_v24 }
 0x414   :  { %6859 = vmatprep.subr.bf16.mxu0 %v7697_v25 }
 0x415   :  { %6562 = vmatpush3.bf16.msra.mxu1 %v7207_v4  ;;  %v7238_v4 = vld [vmem:[%s8911_s2 + $0x490] sm:$0xff]  }
 0x416   :  { %6563 = vmatprep.subr.bf16.mxu1 %v7208_v5 }
 0x417   :  { %6860 = vmatpush3.bf16.msra.mxu0 %v7697_v25 }
 0x418   :  { %6861 = vmatprep.subr.bf16.mxu0 %v7699_v53 }
 0x419   :  { %6564 = vmatpush3.bf16.msra.mxu1 %v7208_v5  ;;  %v7239_v5 = vld [vmem:[%s8911_s2 + $0x498] sm:$0xff]  }
 0x41a   :  { %6565 = vmatprep.subr.bf16.mxu1 %v7209_v6 }
 0x41b   :  { %6862 = vmatpush3.bf16.msra.mxu0 %v7699_v53 }
 0x41c   :  { %6863 = vmatprep.subr.bf16.mxu0 %v7701_v59 }
 0x41d   :  { %6566 = vmatpush3.bf16.msra.mxu1 %v7209_v6  ;;  %v7240_v6 = vld [vmem:[%s8911_s2 + $0x4a0] sm:$0xff]  }
 0x41e   :  { %6567 = vmatprep.subr.bf16.mxu1 %v7210_v7 }
 0x41f   :  { %6864 = vmatpush3.bf16.msra.mxu0 %v7701_v59 }
 0x420   :  { %6865 = vmatprep.subr.bf16.mxu0 %v7703_v60 }
 0x421   :  { %6568 = vmatpush3.bf16.msra.mxu1 %v7210_v7  ;;  %v8598_v9 = vpop.f32.mrb[72].mxu0  ;;  %v7241_v7 = vld [vmem:[%s8911_s2 + $0x4a8] sm:$0xff]  }
 0x422   :  { %v3267_v26 = vpop.f32.mrb[73].mxu0  ;;  %6569 = vmatprep.subr.bf16.mxu1 %v7211_v8  ;;  %v3298_v44 = vpack.c.bf16 %v8598_v9, %v8598_v9  ;;  %v7243_v9 = vld [vmem:[%s8911_s2 + $0x4b8] sm:$0xff]  }
 0x423   :  { %v6594_v28 = vpop.f32.mrb[74].mxu0  ;;  %6866 = vmatpush3.bf16.msra.mxu0 %v7703_v60 }
 0x424   :  { %v3270_v30 = vpop.f32.mrb[75].mxu0  ;;  %6867 = vmatprep.subr.bf16.mxu0 %v7707_v61  ;;  %v7244_v28 = vld [vmem:[%s8911_s2 + $0x4c0] sm:$0xff]  }
 0x425   :  { %6570 = vmatpush3.bf16.msra.mxu1 %v7211_v8  ;;  %v3297_v31 = vpack.c.bf16 %v3270_v30, %v3267_v26  ;;  %v7242_v8 = vld [vmem:[%s8911_s2 + $0x4b0] sm:$0xff]  }
 0x426   :  { %6595 = vmatprep.subr.bf16.mxu1 %v7212_v27 }
 0x427   :  { %6868 = vmatpush3.bf16.msra.mxu0 %v7707_v61 }
 0x428   :  { %6572 = vmatmul.mubr.bf16.vlgmr.msra.gmra.mrb[4].mxu1 %v3113_v32  ;;  %6869 = vmatprep.subr.bf16.mxu0 %v7709_v62 }
 0x429   :  { %6596 = vmatpush3.bf16.msra.mxu1 %v7212_v27  ;;  %6611 = vmatprep.mubr.bf16.mxu1 %v3297_v31 }
 0x42a   :  { %6597 = vmatprep.subr.bf16.mxu1 %v7213_v33 }
 0x42b   :  { %6870 = vmatpush3.bf16.msra.mxu0 %v7709_v62 }
 0x42c   :  { %6895 = vmatprep.subr.bf16.mxu0 %v7693_v50 }
 0x42d   :  { %6598 = vmatpush3.bf16.msra.mxu1 %v7213_v33  ;;  %v7245_v33 = vld [vmem:[%s8911_s2 + $0x4c8] sm:$0xff]  }
 0x42e   :  { %6872 = vmatmul.mubr.msk.bf16.vlgmr.msra.gmra.mrb[100].mxu0 %vm5393_vm5, %v7297_v55  ;;  %6599 = vmatprep.subr.bf16.mxu1 %v7214_v37 }
 0x42f   :  { %6896 = vmatpush3.bf16.msra.mxu0 %v7693_v50  ;;  %6911 = vmatprep.mubr.msk.bf16.mxu0 %vm5403_vm6, %v7297_v55 }
 0x430   :  { %6897 = vmatprep.subr.bf16.mxu0 %v7695_v24 }
 0x431   :  { %6600 = vmatpush3.bf16.msra.mxu1 %v7214_v37  ;;  %v7248_v37 = vld [vmem:[%s8911_s2 + $0x4e0] sm:$0xff]  }
 0x432   :  { %6601 = vmatprep.subr.bf16.mxu1 %v7215_v39 }
 0x433   :  { %6898 = vmatpush3.bf16.msra.mxu0 %v7695_v24 }
 0x434   :  { %6899 = vmatprep.subr.bf16.mxu0 %v7697_v25 }
 0x435   :  { %6602 = vmatpush3.bf16.msra.mxu1 %v7215_v39  ;;  %v7249_v39 = vld [vmem:[%s8911_s2 + $0x4e8] sm:$0xff]  }
 0x436   :  { %6603 = vmatprep.subr.bf16.mxu1 %v7216_v40 }
 0x437   :  { %6900 = vmatpush3.bf16.msra.mxu0 %v7697_v25 }
 0x438   :  { %6901 = vmatprep.subr.bf16.mxu0 %v7699_v53 }
 0x439   :  { %6604 = vmatpush3.bf16.msra.mxu1 %v7216_v40  ;;  %v7250_v40 = vld [vmem:[%s8911_s2 + $0x4f0] sm:$0xff]  }
 0x43a   :  { %6605 = vmatprep.subr.bf16.mxu1 %v7217_v10 }
 0x43b   :  { %6902 = vmatpush3.bf16.msra.mxu0 %v7699_v53 }
 0x43c   :  { %6903 = vmatprep.subr.bf16.mxu0 %v7701_v59 }
 0x43d   :  { %6606 = vmatpush3.bf16.msra.mxu1 %v7217_v10  ;;  %v7251_v10 = vld [vmem:[%s8911_s2 + $0x4f8] sm:$0xff]  }
 0x43e   :  { %6607 = vmatprep.subr.bf16.mxu1 %v7218_v11 }
 0x43f   :  { %6904 = vmatpush3.bf16.msra.mxu0 %v7701_v59 }
 0x440   :  { %6905 = vmatprep.subr.bf16.mxu0 %v7703_v60 }
 0x441   :  { %6608 = vmatpush3.bf16.msra.mxu1 %v7218_v11  ;;  %v8647_v13 = vpop.f32.mrb[76].mxu0 }
 0x442   :  { %v3452_v15 = vpop.f32.mrb[77].mxu0  ;;  %6609 = vmatprep.subr.bf16.mxu1 %v7219_v12 }
 0x443   :  { %v6634_v16 = vpop.f32.mrb[78].mxu0  ;;  %6906 = vmatpush3.bf16.msra.mxu0 %v7703_v60 }
 0x444   :  { %v3455_v43 = vpop.f32.mrb[79].mxu0  ;;  %6907 = vmatprep.subr.bf16.mxu0 %v7707_v61 }
 0x445   :  { %6610 = vmatpush3.bf16.msra.mxu1 %v7219_v12  ;;  %v3482_v17 = vpack.c.bf16 %v3455_v43, %v3452_v15  ;;  %v7253_v43 = vld [vmem:[%s8911_s2 + $0x508] sm:$0xff]  }
 0x446   :  { %6635 = vmatprep.subr.bf16.mxu1 %v7220_v41 }
 0x447   :  { %6908 = vmatpush3.bf16.msra.mxu0 %v7707_v61 }
 0x448   :  { %6612 = vmatmul.mubr.bf16.vlgmr.msra.gmra.mrb[4].mxu1 %v3298_v44  ;;  %6909 = vmatprep.subr.bf16.mxu0 %v7709_v62  ;;  %v7255_v44 = vld [vmem:[%s8911_s2 + $0x518] sm:$0xff]  }
 0x449   :  { %6636 = vmatpush3.bf16.msra.mxu1 %v7220_v41  ;;  %6651 = vmatprep.mubr.bf16.mxu1 %v3482_v17  ;;  %v7254_v17 = vld [vmem:[%s8911_s2 + $0x510] sm:$0xff]  }
 0x44a   :  { %6637 = vmatprep.subr.bf16.mxu1 %v7221_v18 }
 0x44b   :  { %6910 = vmatpush3.bf16.msra.mxu0 %v7709_v62 }
 0x44c   :  { %6935 = vmatprep.subr.bf16.mxu0 %v7693_v50 }
 0x44d   :  { %6638 = vmatpush3.bf16.msra.mxu1 %v7221_v18  ;;  %v7256_v18 = vld [vmem:[%s8911_s2 + $0x520] sm:$0xff]  }
 0x44e   :  { %6912 = vmatmul.mubr.msk.bf16.vlgmr.msra.gmra.mrb[104].mxu0 %vm5405_vm10, %v7297_v55  ;;  %6639 = vmatprep.subr.bf16.mxu1 %v7222_v38 }
 0x44f   :  { %6936 = vmatpush3.bf16.msra.mxu0 %v7693_v50  ;;  %6951 = vmatprep.mubr.msk.bf16.mxu0 %vm5415_vm11, %v7297_v55  ;;  %v7225_v50 = vld [vmem:[%s8911_s2 + $0x428] sm:$0xff]  }
 0x450   :  { %6937 = vmatprep.subr.bf16.mxu0 %v7695_v24 }
 0x451   :  { %6640 = vmatpush3.bf16.msra.mxu1 %v7222_v38  ;;  %v7259_v38 = vld [vmem:[%s8911_s2 + $0x538] sm:$0xff]  }
 0x452   :  { %6641 = vmatprep.subr.bf16.mxu1 %v7223_v20 }
 0x453   :  { %6938 = vmatpush3.bf16.msra.mxu0 %v7695_v24  ;;  %v7227_v24 = vld [vmem:[%s8911_s2 + $0x438] sm:$0xff]  }
 0x454   :  { %6939 = vmatprep.subr.bf16.mxu0 %v7697_v25 }
 0x455   :  { %6642 = vmatpush3.bf16.msra.mxu1 %v7223_v20 }
 0x456   :  { %6643 = vmatprep.subr.bf16.mxu1 %v7224_v46 }
 0x457   :  { %6940 = vmatpush3.bf16.msra.mxu0 %v7697_v25 }
 0x458   :  { %6941 = vmatprep.subr.bf16.mxu0 %v7699_v53 }
 0x459   :  { %6644 = vmatpush3.bf16.msra.mxu1 %v7224_v46 }
 0x45a   :  { %6645 = vmatprep.subr.bf16.mxu1 %v7225_v50 }
 0x45b   :  { %6942 = vmatpush3.bf16.msra.mxu0 %v7699_v53  ;;  %v7228_v53 = vld [vmem:[%s8911_s2 + $0x440] sm:$0xff]  }
 0x45c   :  { %6943 = vmatprep.subr.bf16.mxu0 %v7701_v59 }
 0x45d   :  { %6646 = vmatpush3.bf16.msra.mxu1 %v7225_v50  ;;  %v7260_v50 = vld [vmem:[%s8911_s2 + $0x540] sm:$0xff]  }
 0x45e   :  { %6647 = vmatprep.subr.bf16.mxu1 %v7226_v21 }
 0x45f   :  { %6944 = vmatpush3.bf16.msra.mxu0 %v7701_v59  ;;  %v3483_v59 = vpack.c.bf16 %v8647_v13, %v8647_v13  ;;  %v7252_v13 = vld [vmem:[%s8911_s2 + $0x500] sm:$0xff]  }
 0x460   :  { %6945 = vmatprep.subr.bf16.mxu0 %v7703_v60 }
 0x461   :  { %6648 = vmatpush3.bf16.msra.mxu1 %v7226_v21  ;;  %v6673_v25 = vpop.f32.mrb[80].mxu0 }
 0x462   :  { %v3637_v47 = vpop.f32.mrb[81].mxu0  ;;  %6649 = vmatprep.subr.bf16.mxu1 %v7227_v24  ;;  %v3668_v2 = vpack.c.bf16 %v6673_v25, %v6673_v25 }
 0x463   :  { %v6674_v22 = vpop.f32.mrb[82].mxu0  ;;  %6946 = vmatpush3.bf16.msra.mxu0 %v7703_v60  ;;  %v7230_v60 = vld [vmem:[%s8911_s2 + $0x450] sm:$0xff]  }
 0x464   :  { %v3640_v49 = vpop.f32.mrb[83].mxu0  ;;  %6947 = vmatprep.subr.bf16.mxu0 %v7707_v61  ;;  %v7262_v22 = vld [vmem:[%s8911_s2 + $0x550] sm:$0xff]  }
 0x465   :  { %6650 = vmatpush3.bf16.msra.mxu1 %v7227_v24  ;;  %v3667_v23 = vpack.c.bf16 %v3640_v49, %v3637_v47  ;;  %v7263_v49 = vld [vmem:[%s8911_s2 + $0x558] sm:$0xff]  }
 0x466   :  { %6675 = vmatprep.subr.bf16.mxu1 %v7228_v53 }
 0x467   :  { %6948 = vmatpush3.bf16.msra.mxu0 %v7707_v61  ;;  %v7231_v61 = vld [vmem:[%s8911_s2 + $0x458] sm:$0xff]  }
 0x468   :  { %6652 = vmatmul.mubr.bf16.vlgmr.msra.gmra.mrb[4].mxu1 %v3483_v59  ;;  %6949 = vmatprep.subr.bf16.mxu0 %v7709_v62  ;;  %v7265_v59 = vld [vmem:[%s8911_s2 + $0x568] sm:$0xff]  }
 0x469   :  { %6676 = vmatpush3.bf16.msra.mxu1 %v7228_v53  ;;  %6691 = vmatprep.mubr.bf16.mxu1 %v3667_v23  ;;  %v7261_v53 = vld [vmem:[%s8911_s2 + $0x548] sm:$0xff]   ;;  %v7264_v23 = vld [vmem:[%s8911_s2 + $0x560] sm:$0xff]  }
 0x46a   :  { %6677 = vmatprep.subr.bf16.mxu1 %v7229_v54 }
 0x46b   :  { %6950 = vmatpush3.bf16.msra.mxu0 %v7709_v62  ;;  %v7233_v62 = vld [vmem:[%s8911_s2 + $0x468] sm:$0xff]  }
 0x46d   :  { %6678 = vmatpush3.bf16.msra.mxu1 %v7229_v54  ;;  %v7266_v54 = vld [vmem:[%s8911_s2 + $0x570] sm:$0xff]  }
 0x46e   :  { %6952 = vmatmul.mubr.msk.bf16.vlgmr.msra.gmra.mrb[108].mxu0 %vm5417_vm13, %v7297_v55  ;;  %6679 = vmatprep.subr.bf16.mxu1 %v7230_v60  ;;  %v7234_v55 = vld [vmem:[%s8911_s2 + $0x470] sm:$0xff]  }
 0x471   :  { %6680 = vmatpush3.bf16.msra.mxu1 %v7230_v60 }
 0x472   :  { %6681 = vmatprep.subr.bf16.mxu1 %v7231_v61 }
 0x475   :  { %6682 = vmatpush3.bf16.msra.mxu1 %v7231_v61 }
 0x476   :  { %6683 = vmatprep.subr.bf16.mxu1 %v7232_v42 }
 0x479   :  { %6684 = vmatpush3.bf16.msra.mxu1 %v7232_v42  ;;  %v7268_v42 = vld [vmem:[%s8911_s2 + $0x580] sm:$0xff]  }
 0x47a   :  { %6685 = vmatprep.subr.bf16.mxu1 %v7233_v62 }
 0x47d   :  { %6686 = vmatpush3.bf16.msra.mxu1 %v7233_v62 }
 0x47e   :  { %6687 = vmatprep.subr.bf16.mxu1 %v7234_v55 }
 0x481   :  { %6688 = vmatpush3.bf16.msra.mxu1 %v7234_v55  ;;  %v6713_v58 = vpop.f32.mrb[84].mxu0 }
 0x482   :  { %v3822_v52 = vpop.f32.mrb[85].mxu0  ;;  %6689 = vmatprep.subr.bf16.mxu1 %v7235_v57  ;;  %v3853_v32 = vpack.c.bf16 %v6713_v58, %v6713_v58 }
 0x483   :  { %v6714_v0 = vpop.f32.mrb[86].mxu0 }
 0x484   :  { %v3825_v48 = vpop.f32.mrb[87].mxu0  ;;  %v7271_v0 = vld [vmem:[%s8911_s2 + $0x598] sm:$0xff]  }
 0x485   :  { %6690 = vmatpush3.bf16.msra.mxu1 %v7235_v57  ;;  %v3852_v1 = vpack.c.bf16 %v3825_v48, %v3822_v52  ;;  %v7269_v52 = vld [vmem:[%s8911_s2 + $0x588] sm:$0xff]   ;;  %v7272_v48 = vld [vmem:[%s8911_s2 + $0x5a0] sm:$0xff]  }
 0x486   :  { %6715 = vmatprep.subr.bf16.mxu1 %v7236_v63 }
 0x488   :  { %6692 = vmatmul.mubr.bf16.vlgmr.msra.gmra.mrb[4].mxu1 %v3668_v2  ;;  %v7274_v2 = vld [vmem:[%s8911_s2 + $0x5b0] sm:$0xff]  }
 0x489   :  { %6716 = vmatpush3.bf16.msra.mxu1 %v7236_v63  ;;  %6731 = vmatprep.mubr.bf16.mxu1 %v3852_v1  ;;  %v7270_v63 = vld [vmem:[%s8911_s2 + $0x590] sm:$0xff]   ;;  %v7273_v1 = vld [vmem:[%s8911_s2 + $0x5a8] sm:$0xff]  }
 0x48a   :  { %6717 = vmatprep.subr.bf16.mxu1 %v7237_v3 }
 0x48d   :  { %6718 = vmatpush3.bf16.msra.mxu1 %v7237_v3  ;;  %v7275_v3 = vld [vmem:[%s8911_s2 + $0x5b8] sm:$0xff]  }
 0x48e   :  { %6719 = vmatprep.subr.bf16.mxu1 %v7238_v4 }
 0x491   :  { %6720 = vmatpush3.bf16.msra.mxu1 %v7238_v4 }
 0x492   :  { %6721 = vmatprep.subr.bf16.mxu1 %v7239_v5 }
 0x495   :  { %6722 = vmatpush3.bf16.msra.mxu1 %v7239_v5 }
 0x496   :  { %6723 = vmatprep.subr.bf16.mxu1 %v7240_v6 }
 0x499   :  { %6724 = vmatpush3.bf16.msra.mxu1 %v7240_v6  ;;  %v7276_v6 = vld [vmem:[%s8911_s2 + $0x5c0] sm:$0xff]  }
 0x49a   :  { %6725 = vmatprep.subr.bf16.mxu1 %v7241_v7 }
 0x49d   :  { %6726 = vmatpush3.bf16.msra.mxu1 %v7241_v7 }
 0x49e   :  { %6727 = vmatprep.subr.bf16.mxu1 %v7242_v8 }
 0x4a1   :  { %6728 = vmatpush3.bf16.msra.mxu1 %v7242_v8  ;;  %v6753_v26 = vpop.f32.mrb[88].mxu0 }
 0x4a2   :  { %v4007_v27 = vpop.f32.mrb[89].mxu0  ;;  %6729 = vmatprep.subr.bf16.mxu1 %v7243_v9  ;;  %v4038_v16 = vpack.c.bf16 %v6753_v26, %v6753_v26 }
 0x4a3   :  { %v6754_v29 = vpop.f32.mrb[90].mxu0 }
 0x4a4   :  { %v4010_v30 = vpop.f32.mrb[91].mxu0  ;;  %v7279_v29 = vld [vmem:[%s8911_s2 + $0x5d8] sm:$0xff]  }
 0x4a5   :  { %6730 = vmatpush3.bf16.msra.mxu1 %v7243_v9  ;;  %v4037_v31 = vpack.c.bf16 %v4010_v30, %v4007_v27  ;;  %v7277_v27 = vld [vmem:[%s8911_s2 + $0x5c8] sm:$0xff]   ;;  %v7280_v30 = vld [vmem:[%s8911_s2 + $0x5e0] sm:$0xff]  }
 0x4a6   :  { %6755 = vmatprep.subr.bf16.mxu1 %v7244_v28 }
 0x4a8   :  { %6732 = vmatmul.mubr.bf16.vlgmr.msra.gmra.mrb[4].mxu1 %v3853_v32  ;;  %v7282_v32 = vld [vmem:[%s8911_s2 + $0x5f0] sm:$0xff]  }
 0x4a9   :  { %6756 = vmatpush3.bf16.msra.mxu1 %v7244_v28  ;;  %6771 = vmatprep.mubr.bf16.mxu1 %v4037_v31  ;;  %v7278_v28 = vld [vmem:[%s8911_s2 + $0x5d0] sm:$0xff]   ;;  %v7281_v31 = vld [vmem:[%s8911_s2 + $0x5e8] sm:$0xff]  }
 0x4aa   :  { %6757 = vmatprep.subr.bf16.mxu1 %v7245_v33 }
 0x4ad   :  { %6758 = vmatpush3.bf16.msra.mxu1 %v7245_v33  ;;  %v7283_v33 = vld [vmem:[%s8911_s2 + $0x5f8] sm:$0xff]  }
 0x4ae   :  { %6759 = vmatprep.subr.bf16.mxu1 %v7246_v35 }
 0x4b1   :  { %6760 = vmatpush3.bf16.msra.mxu1 %v7246_v35 }
 0x4b2   :  { %6761 = vmatprep.subr.bf16.mxu1 %v7247_v36 }
 0x4b5   :  { %6762 = vmatpush3.bf16.msra.mxu1 %v7247_v36 }
 0x4b6   :  { %6763 = vmatprep.subr.bf16.mxu1 %v7248_v37 }
 0x4b9   :  { %6764 = vmatpush3.bf16.msra.mxu1 %v7248_v37  ;;  %v7284_v37 = vld [vmem:[%s8911_s2 + $0x600] sm:$0xff]  }
 0x4ba   :  { %6765 = vmatprep.subr.bf16.mxu1 %v7249_v39 }
 0x4bd   :  { %6766 = vmatpush3.bf16.msra.mxu1 %v7249_v39 }
 0x4be   :  { %6767 = vmatprep.subr.bf16.mxu1 %v7250_v40 }
 0x4c1   :  { %6768 = vmatpush3.bf16.msra.mxu1 %v7250_v40  ;;  %v6793_v11 = vpop.f32.mrb[92].mxu0 }
 0x4c2   :  { %v4192_v12 = vpop.f32.mrb[93].mxu0  ;;  %6769 = vmatprep.subr.bf16.mxu1 %v7251_v10  ;;  %v4223_v47 = vpack.c.bf16 %v6793_v11, %v6793_v11 }
 0x4c3   :  { %v6794_v14 = vpop.f32.mrb[94].mxu0 }
 0x4c4   :  { %v4195_v15 = vpop.f32.mrb[95].mxu0  ;;  %v7287_v14 = vld [vmem:[%s8911_s2 + $0x618] sm:$0xff]  }
 0x4c5   :  { %6770 = vmatpush3.bf16.msra.mxu1 %v7251_v10  ;;  %v4222_v41 = vpack.c.bf16 %v4195_v15, %v4192_v12  ;;  %v7285_v12 = vld [vmem:[%s8911_s2 + $0x608] sm:$0xff]   ;;  %v7288_v15 = vld [vmem:[%s8911_s2 + $0x620] sm:$0xff]  }
 0x4c6   :  { %6795 = vmatprep.subr.bf16.mxu1 %v7252_v13 }
 0x4c8   :  { %6772 = vmatmul.mubr.bf16.vlgmr.msra.gmra.mrb[4].mxu1 %v4038_v16  ;;  %v7290_v16 = vld [vmem:[%s8911_s2 + $0x630] sm:$0xff]  }
 0x4c9   :  { %6796 = vmatpush3.bf16.msra.mxu1 %v7252_v13  ;;  %6811 = vmatprep.mubr.bf16.mxu1 %v4222_v41  ;;  %v7286_v13 = vld [vmem:[%s8911_s2 + $0x610] sm:$0xff]   ;;  %v7289_v41 = vld [vmem:[%s8911_s2 + $0x628] sm:$0xff]  }
 0x4ca   :  { %6797 = vmatprep.subr.bf16.mxu1 %v7253_v43 }
 0x4cd   :  { %6798 = vmatpush3.bf16.msra.mxu1 %v7253_v43  ;;  %v7291_v43 = vld [vmem:[%s8911_s2 + $0x638] sm:$0xff]  }
 0x4ce   :  { %6799 = vmatprep.subr.bf16.mxu1 %v7254_v17 }
 0x4d1   :  { %6800 = vmatpush3.bf16.msra.mxu1 %v7254_v17 }
 0x4d2   :  { %6801 = vmatprep.subr.bf16.mxu1 %v7255_v44 }
 0x4d5   :  { %6802 = vmatpush3.bf16.msra.mxu1 %v7255_v44 }
 0x4d6   :  { %6803 = vmatprep.subr.bf16.mxu1 %v7256_v18 }
 0x4d9   :  { %6804 = vmatpush3.bf16.msra.mxu1 %v7256_v18 }
 0x4da   :  { %6805 = vmatprep.subr.bf16.mxu1 %v7257_v45 }
 0x4dd   :  { %6806 = vmatpush3.bf16.msra.mxu1 %v7257_v45 }
 0x4de   :  { %6807 = vmatprep.subr.bf16.mxu1 %v7258_v19 }
 0x4e1   :  { %6808 = vmatpush3.bf16.msra.mxu1 %v7258_v19  ;;  %v6833_v20 = vpop.f32.mrb[96].mxu0 }
 0x4e2   :  { %v4377_v46 = vpop.f32.mrb[97].mxu0  ;;  %6809 = vmatprep.subr.bf16.mxu1 %v7259_v38  ;;  %v4408_v58 = vpack.c.bf16 %v6833_v20, %v6833_v20 }
 0x4e3   :  { %v6834_v21 = vpop.f32.mrb[98].mxu0 }
 0x4e4   :  { %v4380_v24 = vpop.f32.mrb[99].mxu0 }
 0x4e5   :  { %6810 = vmatpush3.bf16.msra.mxu1 %v7259_v38  ;;  %v4407_v25 = vpack.c.bf16 %v4380_v24, %v4377_v46 }
 0x4e6   :  { %6835 = vmatprep.subr.bf16.mxu1 %v7260_v50 }
 0x4e8   :  { %6812 = vmatmul.mubr.bf16.vlgmr.msra.gmra.mrb[4].mxu1 %v4223_v47 }
 0x4e9   :  { %6836 = vmatpush3.bf16.msra.mxu1 %v7260_v50  ;;  %6851 = vmatprep.mubr.bf16.mxu1 %v4407_v25  ;;  %v246_v25 = vadd.s32 16, %v7651_v34 }
 0x4ea   :  { %6837 = vmatprep.subr.bf16.mxu1 %v7261_v53 }
 0x4eb   :  { %vm5065_vm14 = vcmp.lt.s32.totalorder %v246_v25, 18 }
 0x4ed   :  { %6838 = vmatpush3.bf16.msra.mxu1 %v7261_v53 }
 0x4ee   :  { %6839 = vmatprep.subr.bf16.mxu1 %v7262_v22 }
 0x4f1   :  { %6840 = vmatpush3.bf16.msra.mxu1 %v7262_v22 }
 0x4f2   :  { %6841 = vmatprep.subr.bf16.mxu1 %v7263_v49 }
 0x4f5   :  { %6842 = vmatpush3.bf16.msra.mxu1 %v7263_v49 }
 0x4f6   :  { %6843 = vmatprep.subr.bf16.mxu1 %v7264_v23 }
 0x4f9   :  { %6844 = vmatpush3.bf16.msra.mxu1 %v7264_v23 }
 0x4fa   :  { %6845 = vmatprep.subr.bf16.mxu1 %v7265_v59 }
 0x4fd   :  { %6846 = vmatpush3.bf16.msra.mxu1 %v7265_v59 }
 0x4fe   :  { %6847 = vmatprep.subr.bf16.mxu1 %v7266_v54 }
 0x501   :  { %6848 = vmatpush3.bf16.msra.mxu1 %v7266_v54  ;;  %v6873_v60 = vpop.f32.mrb[100].mxu0  ;;  %v5068_v54 = vsel %vm5065_vm14, 1.0, %v7298_v51 }
 0x502   :  { %v4562_v61 = vpop.f32.mrb[101].mxu0  ;;  %6849 = vmatprep.subr.bf16.mxu1 %v7267_v56  ;;  %v4593_v26 = vpack.c.bf16 %v6873_v60, %v6873_v60 }
 0x503   :  { %v6874_v62 = vpop.f32.mrb[102].mxu0 }
 0x504   :  { %v4565_v55 = vpop.f32.mrb[103].mxu0 }
 0x505   :  { %6850 = vmatpush3.bf16.msra.mxu1 %v7267_v56  ;;  %v4592_v57 = vpack.c.bf16 %v4565_v55, %v4562_v61 }
 0x506   :  { %6875 = vmatprep.subr.bf16.mxu1 %v7268_v42 }
 0x508   :  { %6852 = vmatmul.mubr.bf16.vlgmr.msra.gmra.mrb[4].mxu1 %v4408_v58 }
 0x509   :  { %6876 = vmatpush3.bf16.msra.mxu1 %v7268_v42  ;;  %6891 = vmatprep.mubr.bf16.mxu1 %v4592_v57 }
 0x50a   :  { %6877 = vmatprep.subr.bf16.mxu1 %v7269_v52 }
 0x50d   :  { %6878 = vmatpush3.bf16.msra.mxu1 %v7269_v52 }
 0x50e   :  { %6879 = vmatprep.subr.bf16.mxu1 %v7270_v63 }
 0x511   :  { %6880 = vmatpush3.bf16.msra.mxu1 %v7270_v63 }
 0x512   :  { %6881 = vmatprep.subr.bf16.mxu1 %v7271_v0 }
 0x515   :  { %6882 = vmatpush3.bf16.msra.mxu1 %v7271_v0 }
 0x516   :  { %6883 = vmatprep.subr.bf16.mxu1 %v7272_v48 }
 0x519   :  { %6884 = vmatpush3.bf16.msra.mxu1 %v7272_v48 }
 0x51a   :  { %6885 = vmatprep.subr.bf16.mxu1 %v7273_v1 }
 0x51d   :  { %6886 = vmatpush3.bf16.msra.mxu1 %v7273_v1 }
 0x51e   :  { %6887 = vmatprep.subr.bf16.mxu1 %v7274_v2 }
 0x521   :  { %6888 = vmatpush3.bf16.msra.mxu1 %v7274_v2  ;;  %v6913_v4 = vpop.f32.mrb[104].mxu0 }
 0x522   :  { %v4747_v5 = vpop.f32.mrb[105].mxu0  ;;  %6889 = vmatprep.subr.bf16.mxu1 %v7275_v3  ;;  %v4778_v11 = vpack.c.bf16 %v6913_v4, %v6913_v4 }
 0x523   :  { %v6914_v7 = vpop.f32.mrb[106].mxu0 }
 0x524   :  { %v4750_v8 = vpop.f32.mrb[107].mxu0 }
 0x525   :  { %6890 = vmatpush3.bf16.msra.mxu1 %v7275_v3  ;;  %v4777_v9 = vpack.c.bf16 %v4750_v8, %v4747_v5 }
 0x526   :  { %6915 = vmatprep.subr.bf16.mxu1 %v7276_v6 }
 0x528   :  { %6892 = vmatmul.mubr.bf16.vlgmr.msra.gmra.mrb[4].mxu1 %v4593_v26 }
 0x529   :  { %6916 = vmatpush3.bf16.msra.mxu1 %v7276_v6  ;;  %6931 = vmatprep.mubr.bf16.mxu1 %v4777_v9 }
 0x52a   :  { %6917 = vmatprep.subr.bf16.mxu1 %v7277_v27 }
 0x52d   :  { %6918 = vmatpush3.bf16.msra.mxu1 %v7277_v27 }
 0x52e   :  { %6919 = vmatprep.subr.bf16.mxu1 %v7278_v28 }
 0x531   :  { %6920 = vmatpush3.bf16.msra.mxu1 %v7278_v28 }
 0x532   :  { %6921 = vmatprep.subr.bf16.mxu1 %v7279_v29 }
 0x535   :  { %6922 = vmatpush3.bf16.msra.mxu1 %v7279_v29 }
 0x536   :  { %6923 = vmatprep.subr.bf16.mxu1 %v7280_v30 }
 0x539   :  { %6924 = vmatpush3.bf16.msra.mxu1 %v7280_v30 }
 0x53a   :  { %6925 = vmatprep.subr.bf16.mxu1 %v7281_v31 }
 0x53d   :  { %6926 = vmatpush3.bf16.msra.mxu1 %v7281_v31 }
 0x53e   :  { %6927 = vmatprep.subr.bf16.mxu1 %v7282_v32 }
 0x541   :  { %6928 = vmatpush3.bf16.msra.mxu1 %v7282_v32  ;;  %v6953_v35 = vpop.f32.mrb[108].mxu0 }
 0x542   :  { %v4932_v36 = vpop.f32.mrb[109].mxu0  ;;  %6929 = vmatprep.subr.bf16.mxu1 %v7283_v33  ;;  %v4963_v17 = vpack.c.bf16 %v6953_v35, %v6953_v35 }
 0x543   :  { %v6954_v39 = vpop.f32.mrb[110].mxu0 }
 0x544   :  { %v4935_v40 = vpop.f32.mrb[111].mxu0 }
 0x545   :  { %6930 = vmatpush3.bf16.msra.mxu1 %v7283_v33  ;;  %v4962_v10 = vpack.c.bf16 %v4935_v40, %v4932_v36 }
 0x546   :  { %6955 = vmatprep.subr.bf16.mxu1 %v7284_v37 }
 0x548   :  { %6932 = vmatmul.mubr.bf16.vlgmr.msra.gmra.mrb[4].mxu1 %v4778_v11 }
 0x549   :  { %6956 = vmatpush3.bf16.msra.mxu1 %v7284_v37  ;;  %6971 = vmatprep.mubr.bf16.mxu1 %v4962_v10 }
 0x54a   :  { %6957 = vmatprep.subr.bf16.mxu1 %v7285_v12 }
 0x54d   :  { %6958 = vmatpush3.bf16.msra.mxu1 %v7285_v12 }
 0x54e   :  { %6959 = vmatprep.subr.bf16.mxu1 %v7286_v13 }
 0x551   :  { %6960 = vmatpush3.bf16.msra.mxu1 %v7286_v13 }
 0x552   :  { %6961 = vmatprep.subr.bf16.mxu1 %v7287_v14 }
 0x555   :  { %6962 = vmatpush3.bf16.msra.mxu1 %v7287_v14 }
 0x556   :  { %6963 = vmatprep.subr.bf16.mxu1 %v7288_v15 }
 0x559   :  { %6964 = vmatpush3.bf16.msra.mxu1 %v7288_v15 }
 0x55a   :  { %6965 = vmatprep.subr.bf16.mxu1 %v7289_v41 }
 0x55d   :  { %6966 = vmatpush3.bf16.msra.mxu1 %v7289_v41 }
 0x55e   :  { %6967 = vmatprep.subr.bf16.mxu1 %v7290_v16 }
 0x561   :  { %6968 = vmatpush3.bf16.msra.mxu1 %v7290_v16 }
 0x562   :  { %6969 = vmatprep.subr.bf16.mxu1 %v7291_v43 }
 0x565   :  { %6970 = vmatpush3.bf16.msra.mxu1 %v7291_v43 }
 0x568   :  { %6972 = vmatmul.mubr.bf16.vlgmr.msra.gmra.mrb[4].mxu1 %v4963_v17 }
 0x63b   :  { %v6973_v44 = vpop.f32.mrb[4].mxu1 }
 0x63c   :  { %v5046_v18 = vpop.f32.mrb[5].mxu1 }
 0x63d   :  { %v6974_v45 = vpop.f32.mrb[6].mxu1 }
 0x63e   :  { %v5049_v19 = vpop.f32.mrb[7].mxu1 }
 0x63f   :  { %v5069_v38 = vadd.f32 %v5049_v19, %v5046_v18 }
 0x641   :  { %v5070_v20 = vadd.f32 %v6973_v44, %v5069_v38 }
 0x643   :  { %v5071_v46 = vrot.slane %v5070_v20, 4 }
 0x645   :  { %v5072_v50 = vadd.f32 %v5071_v46, %v5070_v20 }
 0x647   :  { %v5073_v21 = vrot.slane %v5072_v50, 2 }
 0x649   :  { %v5074_v24 = vadd.f32 %v5073_v21, %v5072_v50 }
 0x64b   :  { %v5075_v47 = vrot.slane %v5074_v24, 1 }
 0x64d   :  { %v5076_v53 = vadd.f32 %v5075_v47, %v5074_v24 }
 0x64f   :  { %v5077_v22 = vmul.f32 0.055555556, %v5076_v53 }
 0x651   :  { %v5078_v49 = vsub.f32 %v5046_v18, %v5077_v22  ;;  %v5079_v23 = vsub.f32 %v5049_v19, %v5077_v22  ;;  %v5080_v59 = vsub.f32 %v6973_v44, %v5077_v22 }
 0x653   :  { %v5081_v56 = vmul.f32 %v5078_v49, %v5078_v49  ;;  %v5082_v60 = vmul.f32 %v5079_v23, %v5079_v23  ;;  %v5083_v61 = vmul.f32 %v5080_v59, %v5080_v59 }
 0x655   :  { %v5086_v42 = vmul.f32 %v5083_v61, %v5068_v54  ;;  %v5087_v62 = vadd.f32 %v5082_v60, %v5081_v56 }
 0x657   :  { %v5088_v55 = vadd.f32 %v5087_v62, %v5086_v42 }
 0x659   :  { %v5089_v57 = vrot.slane %v5088_v55, 4 }
 0x65b   :  { %v5090_v58 = vadd.f32 %v5089_v57, %v5088_v55 }
 0x65d   :  { %v5091_v52 = vrot.slane %v5090_v58, 2 }
 0x65f   :  { %v5092_v63 = vadd.f32 %v5091_v52, %v5090_v58 }
 0x661   :  { %v5093_v34 = vrot.slane %v5092_v63, 1 }
 0x663   :  { %v5094_v0 = vadd.f32 %v5093_v34, %v5092_v63 }
 0x665   :  { %v5095_v48 = vmul.f32 0.055555556, %v5094_v0 }
 0x667   :  { %v5096_v1 = vadd.f32 1e-05, %v5095_v48 }
 0x669   :  { %7294 = vrsqrt.f32 %v5096_v1 }
 0x673   :  { %v7295_v2 = vpop.eup %7294 }
 0x674   :  { %v5098_v3 = vmul.f32 %v7295_v2, %v5078_v49  ;;  %v5099_v4 = vmul.f32 %v7295_v2, %v5079_v23  ;;  %v5100_v5 = vmul.f32 %v7295_v2, %v5080_v59 }
 0x676   :  { %v5101_v51 = vmax.f32 %v5098_v3, 0.0  ;;  %v5102_v6 = vmax.f32 %v5099_v4, 0.0  ;;  %v5103_v7 = vmax.f32 %v5100_v5, 0.0 }
 0x678   :  { %5104 = vst [vmem:[%s8912_s4] sm:$0xff] %v5101_v51  ;;  %5105 = vst [vmem:[%s8912_s4 + $0x8] sm:$0xff] %v5102_v6 }
 0x679   :  { %5106 = vst [vmem:[%s8912_s4 + $0x10] sm:$0xff] %v5103_v7 }

</bundles_post_ra>
